<compile_context>
chip_gen: v6e
topology: v6e:2x2x1
jax: 0.10.0
libtpu: 0.0.40
codegen_flags: <defaults>
</compile_context>

<pallas_src>
import jax
import jax.numpy as jnp
from jax.experimental import pallas as pl
from jax.experimental.pallas import tpu as pltpu


# --------------------------------------------------------------------------- #
# pallas_call wrapper + kernel (kernel closes over static tb / V).
# --------------------------------------------------------------------------- #
def micron_pallas(hcur, hlast, hres, wfold, bfold, b1, w2, b2, adj, *, tb=128):
    B, twoE = hcur.shape
    H = wfold.shape[1]
    V = adj.shape[0]
    assert B % tb == 0, "pad the batch to a multiple of tb before calling"

    def kernel(hcur_ref, hlast_ref, hres_ref, wfold_ref, bfold_ref, b1_ref,
               w2_ref, b2_ref, adj_ref,
               drug_ref, drug_last_ref, drug_res_ref, losses_ref):
        f32 = jnp.float32
        inv_v = 1.0 / V        # closure constant: stays 1/V even if adj were tiled

        # ---- stacked prescription layer 1 on folded weights -----------------
        # x = [hcur; hlast; hcur - hlast]  (3*tb, 2E) bf16
        x = jnp.concatenate([hcur_ref[...], hlast_ref[...], hres_ref[...]], axis=0)
        z = jnp.dot(x, wfold_ref[...], preferred_element_type=f32)      # (3tb, 4E)
        # cur / last row blocks take the folded bias (bh@w1 + b1); the residual
        # block's health-net biases cancel, so it only takes b1.
        row = jax.lax.broadcasted_iota(jnp.int32, z.shape, 0)
        bias1 = jnp.where(row < 2 * tb, bfold_ref[...], b1_ref[...])
        a = jnp.maximum(z + bias1, 0.0).astype(w2_ref.dtype)            # (3tb, 4E) bf16

        # ---- stacked prescription layer 2 -----------------------------------
        d = jnp.dot(a, w2_ref[...], preferred_element_type=f32) + b2_ref[...]  # (3tb, V)
        drug = d[:tb]
        drug_last = d[tb:2 * tb]
        drug_res = d[2 * tb:]
        drug_ref[...] = drug.astype(drug_ref.dtype)
        drug_last_ref[...] = drug_last.astype(drug_last_ref.dtype)
        drug_res_ref[...] = drug_res.astype(drug_res_ref.dtype)

        # ---- per-patient losses (f32; exp + approx reciprocal on the EUP) ---
        def sigmoid(v):
            return pl.reciprocal(1.0 + jnp.exp(-v), approx=True)

        p = sigmoid(drug)                                               # (tb, V) f32
        p_alt = sigmoid(drug_last + drug_res)
        rec = inv_v * jnp.sum((p - p_alt) ** 2, axis=-1, keepdims=True)     # (tb, 1)
        pA = jnp.dot(p.astype(adj_ref.dtype), adj_ref[...],
                     preferred_element_type=f32)                        # (tb, V)
        bneg = inv_v * jnp.sum(pA * p, axis=-1, keepdims=True)              # (tb, 1)

        # Lane-dense merged loss block: col 0 = batch_neg, col 1 = rec_loss.
        col = jax.lax.broadcasted_iota(jnp.int32, (tb, 128), 1)
        losses_ref[...] = jnp.where(col == 0, bneg,
                                    jnp.where(col == 1, rec, 0.0))

    def tile(i):        # streamed per-batch-tile blocks
        return (i, 0)

    def resident(i):    # same block every step -> DMA'd once, stays in VMEM
        return (0, 0)

    grid_spec = pltpu.PrefetchScalarGridSpec(
        num_scalar_prefetch=0,
        grid=(B // tb,),
        in_specs=[
            pl.BlockSpec((tb, twoE), tile),      # hcur
            pl.BlockSpec((tb, twoE), tile),      # hlast
            pl.BlockSpec((tb, twoE), tile),      # hres (f32-computed residual)
            pl.BlockSpec((twoE, H), resident),   # Wfold = wh @ w1
            pl.BlockSpec((1, H), resident),      # bfold = bh @ w1 + b1
            pl.BlockSpec((1, H), resident),      # b1 (residual path bias)
            pl.BlockSpec((H, V), resident),      # w2
            pl.BlockSpec((1, V), resident),      # b2
            pl.BlockSpec((V, V), resident),      # DDI adjacency
        ],
        out_specs=[
            pl.BlockSpec((tb, V), tile),         # drug_rep            (bf16)
            pl.BlockSpec((tb, V), tile),         # drug_rep_last       (bf16)
            pl.BlockSpec((tb, V), tile),         # drug_residual_rep   (bf16)
            pl.BlockSpec((tb, 128), tile),       # merged losses       (f32)
        ],
    )
    out_shape = (
        jax.ShapeDtypeStruct((B, V), jnp.bfloat16),
        jax.ShapeDtypeStruct((B, V), jnp.bfloat16),
        jax.ShapeDtypeStruct((B, V), jnp.bfloat16),
        jax.ShapeDtypeStruct((B, 128), jnp.float32),
    )
    return pl.pallas_call(
        kernel,
        out_shape=out_shape,
        grid_spec=grid_spec,
        compiler_params=pltpu.CompilerParams(
            dimension_semantics=("parallel",),   # shard batch tiles across TCs (v7x)
        ),
    )(hcur, hlast, hres, wfold, bfold, b1, w2, b2, adj)


# --------------------------------------------------------------------------- #
# Parameter init (shapes follow MICRON.__init__, Linear weights stored (in,out))
# --------------------------------------------------------------------------- #
def init_params(key, vocab_size, emb_dim):
    k = jax.random.split(key, 9)
    E, V = emb_dim, vocab_size[2]
    initrange = 0.1

    def linear(kw, kb, fan_in, fan_out):
        bound = 1.0 / (fan_in ** 0.5)
        w = jax.random.uniform(kw, (fan_in, fan_out), jnp.float32, -bound, bound)
        b = jax.random.uniform(kb, (1, fan_out), jnp.float32, -bound, bound)
        return w, b

    emb0 = jax.random.uniform(k[0], (vocab_size[0], E), jnp.float32,
                              -initrange, initrange)
    emb1 = jax.random.uniform(k[1], (vocab_size[1], E), jnp.float32,
                              -initrange, initrange)
    wh, bh = linear(k[2], k[3], 2 * E, E)        # health_net
    w1, b1 = linear(k[4], k[5], E, 4 * E)        # prescription_net layer 1
    w2, b2 = linear(k[6], k[7], 4 * E, V)        # prescription_net layer 2

    adj = (jax.random.uniform(k[8], (V, V)) < 0.1).astype(jnp.float32)
    adj = jnp.maximum(adj, adj.T)                # symmetric DDI adjacency

    return dict(emb0=emb0, emb1=emb1, wh=wh, bh=bh,
                w1=w1, b1=b1, w2=w2, b2=b2, adj=adj)


# --------------------------------------------------------------------------- #
# Plain-JAX glue: embedding sums -> health representations (current / last)
# --------------------------------------------------------------------------- #
def build_health_reps(params, diag_cur, prod_cur, diag_last, prod_last, has_last):
    """*_cur / *_last: (B, L) int32 visit-code arrays; has_last: (B,) bool
    marking patients with >= 2 visits (len(input) < 2 branch otherwise)."""
    def sum_emb(table, codes):                   # (B, L) -> (B, E)
        return jnp.sum(table[codes], axis=1)

    hcur = jnp.concatenate([sum_emb(params["emb0"], diag_cur),
                            sum_emb(params["emb1"], prod_cur)], axis=-1)   # (B, 2E)
    hlast = jnp.concatenate([sum_emb(params["emb0"], diag_last),
                             sum_emb(params["emb1"], prod_last)], axis=-1)  # (B, 2E)
    hlast = jnp.where(has_last[:, None], hlast, 0.0)
    return hcur, hlast


def micron_forward_batch(params, hcur, hlast, *, tb=128):
    """Batched MICRON forward: one pallas_call for B patients."""
    B = hcur.shape[0]
    Bp = ((B + tb - 1) // tb) * tb

    hres = hcur - hlast                                  # f32 residual (no bf16 cancel)
    if Bp != B:
        pad = ((0, Bp - B), (0, 0))
        hcur = jnp.pad(hcur, pad)
        hlast = jnp.pad(hlast, pad)
        hres = jnp.pad(hres, pad)

    # Fold health_net into prescription layer 1 (one-time f32 precompute).
    wfold = params["wh"] @ params["w1"]                  # (2E, 4E)
    bfold = params["bh"] @ params["w1"] + params["b1"]   # (1, 4E)

    mxu = jnp.bfloat16   # MXU operands in bf16; biases & accumulation stay f32
    drug, drug_last, drug_res, losses = micron_pallas(
        hcur.astype(mxu), hlast.astype(mxu), hres.astype(mxu),
        wfold.astype(mxu), bfold, params["b1"],
        params["w2"].astype(mxu), params["b2"],
        params["adj"].astype(mxu), tb=tb)
    return (drug[:B], drug_last[:B], drug_res[:B],
            losses[:B, 0], losses[:B, 1])


# --------------------------------------------------------------------------- #
# Pure-JAX f32 reference (mirrors MICRON.forward per patient row)
# --------------------------------------------------------------------------- #
def micron_reference(params, hcur, hlast):
    def presc(h):
        z1 = jnp.maximum(h @ params["w1"] + params["b1"], 0.0)
        return z1 @ params["w2"] + params["b2"]

    h_cur = hcur @ params["wh"] + params["bh"]
    h_last = hlast @ params["wh"] + params["bh"]
    drug = presc(h_cur)
    drug_last = presc(h_last)
    drug_res = presc(h_cur - h_last)
    V = params["adj"].shape[0]
    p = jax.nn.sigmoid(drug)
    p_alt = jax.nn.sigmoid(drug_last + drug_res)
    rec_loss = jnp.sum((p - p_alt) ** 2, axis=-1) / V
    batch_neg = jnp.sum((p @ params["adj"]) * p, axis=-1) / V
    return drug, drug_last, drug_res, batch_neg, rec_loss


if __name__ == "__main__":
    E = 128                      # emb_dim (multiples of 128 -> lane-dense matmuls)
    vocab_size = (64, 48, 256)   # (diag vocab, procedure vocab, med vocab V)
    B = 200                      # patients per batch (padded to 256 internally)
    TB = 128                     # batch tile -> grid=(2,): both v7x TCs get a tile

    key = jax.random.PRNGKey(0)
    kp, kd0, kd1, kp0, kp1, km = jax.random.split(key, 6)
    params = init_params(kp, vocab_size, E)

    # Synthetic batch: each patient has a current visit (4 diag, 3 proc codes);
    # ~70% also have a previous visit.
    diag_cur = jax.random.randint(kd0, (B, 4), 0, vocab_size[0])
    prod_cur = jax.random.randint(kp0, (B, 3), 0, vocab_size[1])
    diag_last = jax.random.randint(kd1, (B, 4), 0, vocab_size[0])
    prod_last = jax.random.randint(kp1, (B, 3), 0, vocab_size[1])
    has_last = jax.random.uniform(km, (B,)) < 0.7

    hcur, hlast = build_health_reps(params, diag_cur, prod_cur,
                                    diag_last, prod_last, has_last)

    outs = micron_forward_batch(params, hcur, hlast, tb=TB)
    outs = jax.block_until_ready(outs)
    drug, drug_last, drug_res, batch_neg, rec_loss = outs

    V = vocab_size[2]
    assert drug.shape == (B, V)
    assert drug_last.shape == (B, V)
    assert drug_res.shape == (B, V)
    assert batch_neg.shape == (B,)
    assert rec_loss.shape == (B,)
    assert all(bool(jnp.all(jnp.isfinite(o.astype(jnp.float32)))) for o in outs)

    # Correctness vs pure-JAX f32 reference (loose tolerances: bf16 MXU path,
    # folded weights, bf16 drug outputs, approx-reciprocal sigmoid).
    r_drug, r_drug_last, r_drug_res, r_bn, r_rl = micron_reference(params, hcur, hlast)
    f32 = jnp.float32
    assert bool(jnp.allclose(drug.astype(f32), r_drug, atol=3e-2, rtol=3e-2))
    assert bool(jnp.allclose(drug_last.astype(f32), r_drug_last, atol=3e-2, rtol=3e-2))
    assert bool(jnp.allclose(drug_res.astype(f32), r_drug_res, atol=3e-2, rtol=3e-2))
    assert bool(jnp.allclose(batch_neg, r_bn, atol=2e-1, rtol=5e-2))
    assert bool(jnp.allclose(rec_loss, r_rl, atol=1e-3, rtol=2e-1))

    print("KERNEL_OK")
</pallas_src>

<mosaic_0001>
module attributes {stable_mosaic.version = 11 : i64} {
  func.func @kernel(%arg0: i32, %arg1: memref<128x256xbf16, #tpu.memory_space<vmem>>, %arg2: memref<128x256xbf16, #tpu.memory_space<vmem>>, %arg3: memref<128x256xbf16, #tpu.memory_space<vmem>>, %arg4: memref<256x512xbf16, #tpu.memory_space<vmem>>, %arg5: memref<1x512xf32, #tpu.memory_space<vmem>>, %arg6: memref<1x512xf32, #tpu.memory_space<vmem>>, %arg7: memref<512x256xbf16, #tpu.memory_space<vmem>>, %arg8: memref<1x256xf32, #tpu.memory_space<vmem>>, %arg9: memref<256x256xbf16, #tpu.memory_space<vmem>>, %arg10: memref<128x256xbf16, #tpu.memory_space<vmem>>, %arg11: memref<128x256xbf16, #tpu.memory_space<vmem>>, %arg12: memref<128x256xbf16, #tpu.memory_space<vmem>>, %arg13: memref<128x128xf32, #tpu.memory_space<vmem>>) attributes {dimension_semantics = [#tpu.dimension_semantics<parallel>], iteration_bounds = array<i64: 2>, scalar_prefetch = 0 : i64, scratch_operands = 0 : i64, tpu.core_type = #tpu.core_type<tc>, window_params = [{transform_indices = @transform_0, window_bounds = array<i64: 128, 256>}, {transform_indices = @transform_1, window_bounds = array<i64: 128, 256>}, {transform_indices = @transform_2, window_bounds = array<i64: 128, 256>}, {pipeline_mode = #tpu.pipeline_mode<synchronous>, transform_indices = @transform_3, window_bounds = array<i64: 256, 512>}, {pipeline_mode = #tpu.pipeline_mode<synchronous>, transform_indices = @transform_4, window_bounds = array<i64: 1, 512>}, {pipeline_mode = #tpu.pipeline_mode<synchronous>, transform_indices = @transform_5, window_bounds = array<i64: 1, 512>}, {pipeline_mode = #tpu.pipeline_mode<synchronous>, transform_indices = @transform_6, window_bounds = array<i64: 512, 256>}, {pipeline_mode = #tpu.pipeline_mode<synchronous>, transform_indices = @transform_7, window_bounds = array<i64: 1, 256>}, {pipeline_mode = #tpu.pipeline_mode<synchronous>, transform_indices = @transform_8, window_bounds = array<i64: 256, 256>}, {transform_indices = @transform_9, window_bounds = array<i64: 128, 256>}, {transform_indices = @transform_10, window_bounds = array<i64: 128, 256>}, {transform_indices = @transform_11, window_bounds = array<i64: 128, 256>}, {transform_indices = @transform_12, window_bounds = array<i64: 128, 128>}]} {
    %c0 = arith.constant 0 : index
    %c0_0 = arith.constant 0 : index
    %0 = vector.load %arg1[%c0, %c0_0] : memref<128x256xbf16, #tpu.memory_space<vmem>>, vector<128x256xbf16>
    %c0_1 = arith.constant 0 : index
    %c0_2 = arith.constant 0 : index
    %1 = vector.load %arg2[%c0_1, %c0_2] : memref<128x256xbf16, #tpu.memory_space<vmem>>, vector<128x256xbf16>
    %c0_3 = arith.constant 0 : index
    %c0_4 = arith.constant 0 : index
    %2 = vector.load %arg3[%c0_3, %c0_4] : memref<128x256xbf16, #tpu.memory_space<vmem>>, vector<128x256xbf16>
    %3 = tpu.concatenate %0, %1, %2 in 0 : vector<128x256xbf16>, vector<128x256xbf16>, vector<128x256xbf16> -> vector<384x256xbf16>
    %c0_5 = arith.constant 0 : index
    %c0_6 = arith.constant 0 : index
    %4 = vector.load %arg4[%c0_5, %c0_6] : memref<256x512xbf16, #tpu.memory_space<vmem>>, vector<256x512xbf16>
    %cst = arith.constant dense<0.000000e+00> : vector<384x512xf32>
    %5 = tpu.matmul %3, %4, %cst {dimension_numbers = #tpu.dot_dimension_numbers<[1], [0], [0], [1], [0, 0, 1, 1], [], []>} : vector<384x256xbf16>, vector<256x512xbf16>, vector<384x512xf32> -> vector<384x512xf32>
    %6 = tpu.iota {dimensions = array<i32: 0>} : vector<384x512xi32>
    %c256_i32 = arith.constant 256 : i32
    %7 = vector.broadcast %c256_i32 : i32 to vector<384x512xi32>
    %8 = arith.cmpi slt, %6, %7 : vector<384x512xi32>
    %c0_7 = arith.constant 0 : index
    %c0_8 = arith.constant 0 : index
    %9 = vector.load %arg5[%c0_7, %c0_8] : memref<1x512xf32, #tpu.memory_space<vmem>>, vector<1x512xf32>
    %c0_9 = arith.constant 0 : index
    %c0_10 = arith.constant 0 : index
    %10 = vector.load %arg6[%c0_9, %c0_10] : memref<1x512xf32, #tpu.memory_space<vmem>>, vector<1x512xf32>
    %11 = vector.shape_cast %9 : vector<1x512xf32> to vector<1x512xf32>
    %12 = vector.broadcast %11 : vector<1x512xf32> to vector<384x512xf32>
    %13 = vector.shape_cast %10 : vector<1x512xf32> to vector<1x512xf32>
    %14 = vector.broadcast %13 : vector<1x512xf32> to vector<384x512xf32>
    %15 = arith.select %8, %12, %14 : vector<384x512xi1>, vector<384x512xf32>
    %16 = arith.addf %5, %15 : vector<384x512xf32>
    %cst_11 = arith.constant 0.000000e+00 : f32
    %17 = vector.broadcast %cst_11 : f32 to vector<384x512xf32>
    %18 = arith.maximumf %16, %17 : vector<384x512xf32>
    %19 = arith.truncf %18 : vector<384x512xf32> to vector<384x512xbf16>
    %c0_12 = arith.constant 0 : index
    %c0_13 = arith.constant 0 : index
    %20 = vector.load %arg7[%c0_12, %c0_13] : memref<512x256xbf16, #tpu.memory_space<vmem>>, vector<512x256xbf16>
    %cst_14 = arith.constant dense<0.000000e+00> : vector<384x256xf32>
    %21 = tpu.matmul %19, %20, %cst_14 {dimension_numbers = #tpu.dot_dimension_numbers<[1], [0], [0], [1], [0, 0, 1, 1], [], []>} : vector<384x512xbf16>, vector<512x256xbf16>, vector<384x256xf32> -> vector<384x256xf32>
    %c0_15 = arith.constant 0 : index
    %c0_16 = arith.constant 0 : index
    %22 = vector.load %arg8[%c0_15, %c0_16] : memref<1x256xf32, #tpu.memory_space<vmem>>, vector<1x256xf32>
    %23 = vector.broadcast %22 : vector<1x256xf32> to vector<384x256xf32>
    %24 = arith.addf %21, %23 : vector<384x256xf32>
    %25 = vector.extract_strided_slice %24 {offsets = [0, 0], sizes = [128, 256], strides = [1, 1]} : vector<384x256xf32> to vector<128x256xf32>
    %26 = vector.extract_strided_slice %24 {offsets = [128, 0], sizes = [128, 256], strides = [1, 1]} : vector<384x256xf32> to vector<128x256xf32>
    %27 = vector.extract_strided_slice %24 {offsets = [256, 0], sizes = [128, 256], strides = [1, 1]} : vector<384x256xf32> to vector<128x256xf32>
    %28 = arith.truncf %25 : vector<128x256xf32> to vector<128x256xbf16>
    %c0_17 = arith.constant 0 : index
    %c0_18 = arith.constant 0 : index
    %29 = vector.load %arg10[%c0_17, %c0_18] : memref<128x256xbf16, #tpu.memory_space<vmem>>, vector<128x256xbf16>
    tpu.vector_store %arg10[%c0_17, %c0_18], %28 {strides = array<i32>} : memref<128x256xbf16, #tpu.memory_space<vmem>>, vector<128x256xbf16>,
    %30 = arith.truncf %26 : vector<128x256xf32> to vector<128x256xbf16>
    %c0_19 = arith.constant 0 : index
    %c0_20 = arith.constant 0 : index
    %31 = vector.load %arg11[%c0_19, %c0_20] : memref<128x256xbf16, #tpu.memory_space<vmem>>, vector<128x256xbf16>
    tpu.vector_store %arg11[%c0_19, %c0_20], %30 {strides = array<i32>} : memref<128x256xbf16, #tpu.memory_space<vmem>>, vector<128x256xbf16>,
    %32 = arith.truncf %27 : vector<128x256xf32> to vector<128x256xbf16>
    %c0_21 = arith.constant 0 : index
    %c0_22 = arith.constant 0 : index
    %33 = vector.load %arg12[%c0_21, %c0_22] : memref<128x256xbf16, #tpu.memory_space<vmem>>, vector<128x256xbf16>
    tpu.vector_store %arg12[%c0_21, %c0_22], %32 {strides = array<i32>} : memref<128x256xbf16, #tpu.memory_space<vmem>>, vector<128x256xbf16>,
    %cst_23 = arith.constant 0.000000e+00 : f32
    %34 = vector.broadcast %cst_23 : f32 to vector<128x256xf32>
    %35 = arith.subf %34, %25 : vector<128x256xf32>
    %36 = math.exp %35 : vector<128x256xf32>
    %cst_24 = arith.constant 1.000000e+00 : f32
    %37 = vector.broadcast %cst_24 : f32 to vector<128x256xf32>
    %38 = arith.addf %37, %36 : vector<128x256xf32>
    %39 = tpu.reciprocal %38 {approx = true} : vector<128x256xf32> -> vector<128x256xf32>
    %40 = arith.addf %26, %27 : vector<128x256xf32>
    %cst_25 = arith.constant 0.000000e+00 : f32
    %41 = vector.broadcast %cst_25 : f32 to vector<128x256xf32>
    %42 = arith.subf %41, %40 : vector<128x256xf32>
    %43 = math.exp %42 : vector<128x256xf32>
    %cst_26 = arith.constant 1.000000e+00 : f32
    %44 = vector.broadcast %cst_26 : f32 to vector<128x256xf32>
    %45 = arith.addf %44, %43 : vector<128x256xf32>
    %46 = tpu.reciprocal %45 {approx = true} : vector<128x256xf32> -> vector<128x256xf32>
    %47 = arith.subf %39, %46 : vector<128x256xf32>
    %48 = arith.mulf %47, %47 : vector<128x256xf32>
    %cst_27 = arith.constant dense<0.000000e+00> : vector<128xf32>
    %49 = vector.multi_reduction <add>, %48, %cst_27 [1] : vector<128x256xf32> to vector<128xf32>
    %50 = vector.shape_cast %49 : vector<128xf32> to vector<128x1xf32>
    %cst_28 = arith.constant 3.906250e-03 : f32
    %51 = vector.broadcast %cst_28 : f32 to vector<128x1xf32>
    %52 = arith.mulf %51, %50 : vector<128x1xf32>
    %53 = arith.truncf %39 : vector<128x256xf32> to vector<128x256xbf16>
    %c0_29 = arith.constant 0 : index
    %c0_30 = arith.constant 0 : index
    %54 = vector.load %arg9[%c0_29, %c0_30] : memref<256x256xbf16, #tpu.memory_space<vmem>>, vector<256x256xbf16>
    %cst_31 = arith.constant dense<0.000000e+00> : vector<128x256xf32>
    %55 = tpu.matmul %53, %54, %cst_31 {dimension_numbers = #tpu.dot_dimension_numbers<[1], [0], [0], [1], [0, 0, 1, 1], [], []>} : vector<128x256xbf16>, vector<256x256xbf16>, vector<128x256xf32> -> vector<128x256xf32>
    %56 = arith.mulf %55, %39 : vector<128x256xf32>
    %cst_32 = arith.constant dense<0.000000e+00> : vector<128xf32>
    %57 = vector.multi_reduction <add>, %56, %cst_32 [1] : vector<128x256xf32> to vector<128xf32>
    %58 = vector.shape_cast %57 : vector<128xf32> to vector<128x1xf32>
    %cst_33 = arith.constant 3.906250e-03 : f32
    %59 = vector.broadcast %cst_33 : f32 to vector<128x1xf32>
    %60 = arith.mulf %59, %58 : vector<128x1xf32>
    %61 = tpu.iota {dimensions = array<i32: 1>} : vector<128x128xi32>
    %c0_i32 = arith.constant 0 : i32
    %62 = vector.broadcast %c0_i32 : i32 to vector<128x128xi32>
    %63 = arith.cmpi eq, %61, %62 : vector<128x128xi32>
    %c1_i32 = arith.constant 1 : i32
    %64 = vector.broadcast %c1_i32 : i32 to vector<128x128xi32>
    %65 = arith.cmpi eq, %61, %64 : vector<128x128xi32>
    %cst_34 = arith.constant 0.000000e+00 : f32
    %66 = vector.shape_cast %52 : vector<128x1xf32> to vector<128x1xf32>
    %67 = vector.broadcast %66 : vector<128x1xf32> to vector<128x128xf32>
    %68 = vector.broadcast %cst_34 : f32 to vector<128x128xf32>
    %69 = arith.select %65, %67, %68 : vector<128x128xi1>, vector<128x128xf32>
    %70 = vector.shape_cast %60 : vector<128x1xf32> to vector<128x1xf32>
    %71 = vector.broadcast %70 : vector<128x1xf32> to vector<128x128xf32>
    %72 = arith.select %63, %71, %69 : vector<128x128xi1>, vector<128x128xf32>
    %c0_35 = arith.constant 0 : index
    %c0_36 = arith.constant 0 : index
    %73 = vector.load %arg13[%c0_35, %c0_36] : memref<128x128xf32, #tpu.memory_space<vmem>>, vector<128x128xf32>
    tpu.vector_store %arg13[%c0_35, %c0_36], %72 {strides = array<i32>} : memref<128x128xf32, #tpu.memory_space<vmem>>, vector<128x128xf32>,
    return
  }
  func.func @transform_0(%arg0: i32) -> (i32, i32) {
    %c0_i32 = arith.constant 0 : i32
    %c0_i32_0 = arith.constant 0 : i32
    return %arg0, %c0_i32 : i32, i32
  }
  func.func @transform_1(%arg0: i32) -> (i32, i32) {
    %c0_i32 = arith.constant 0 : i32
    %c0_i32_0 = arith.constant 0 : i32
    return %arg0, %c0_i32 : i32, i32
  }
  func.func @transform_2(%arg0: i32) -> (i32, i32) {
    %c0_i32 = arith.constant 0 : i32
    %c0_i32_0 = arith.constant 0 : i32
    return %arg0, %c0_i32 : i32, i32
  }
  func.func @transform_3(%arg0: i32) -> (i32, i32) {
    %c0_i32 = arith.constant 0 : i32
    %c0_i32_0 = arith.constant 0 : i32
    %c0_i32_1 = arith.constant 0 : i32
    return %c0_i32, %c0_i32_0 : i32, i32
  }
  func.func @transform_4(%arg0: i32) -> (i32, i32) {
    %c0_i32 = arith.constant 0 : i32
    %c0_i32_0 = arith.constant 0 : i32
    %c0_i32_1 = arith.constant 0 : i32
    return %c0_i32, %c0_i32_0 : i32, i32
  }
  func.func @transform_5(%arg0: i32) -> (i32, i32) {
    %c0_i32 = arith.constant 0 : i32
    %c0_i32_0 = arith.constant 0 : i32
    %c0_i32_1 = arith.constant 0 : i32
    return %c0_i32, %c0_i32_0 : i32, i32
  }
  func.func @transform_6(%arg0: i32) -> (i32, i32) {
    %c0_i32 = arith.constant 0 : i32
    %c0_i32_0 = arith.constant 0 : i32
    %c0_i32_1 = arith.constant 0 : i32
    return %c0_i32, %c0_i32_0 : i32, i32
  }
  func.func @transform_7(%arg0: i32) -> (i32, i32) {
    %c0_i32 = arith.constant 0 : i32
    %c0_i32_0 = arith.constant 0 : i32
    %c0_i32_1 = arith.constant 0 : i32
    return %c0_i32, %c0_i32_0 : i32, i32
  }
  func.func @transform_8(%arg0: i32) -> (i32, i32) {
    %c0_i32 = arith.constant 0 : i32
    %c0_i32_0 = arith.constant 0 : i32
    %c0_i32_1 = arith.constant 0 : i32
    return %c0_i32, %c0_i32_0 : i32, i32
  }
  func.func @transform_9(%arg0: i32) -> (i32, i32) {
    %c0_i32 = arith.constant 0 : i32
    %c0_i32_0 = arith.constant 0 : i32
    return %arg0, %c0_i32 : i32, i32
  }
  func.func @transform_10(%arg0: i32) -> (i32, i32) {
    %c0_i32 = arith.constant 0 : i32
    %c0_i32_0 = arith.constant 0 : i32
    return %arg0, %c0_i32 : i32, i32
  }
  func.func @transform_11(%arg0: i32) -> (i32, i32) {
    %c0_i32 = arith.constant 0 : i32
    %c0_i32_0 = arith.constant 0 : i32
    return %arg0, %c0_i32 : i32, i32
  }
  func.func @transform_12(%arg0: i32) -> (i32, i32) {
    %c0_i32 = arith.constant 0 : i32
    %c0_i32_0 = arith.constant 0 : i32
    return %arg0, %c0_i32 : i32, i32
  }
}

</mosaic_0001>

<bundles_post_ra>
// kernel: tpu_custom_call.1
= control target key start
LH: loop header
LB: loop body
LE: loop exit
PB: predicated region body
PF: predicated region fallthrough
CT: control target
= control target key end

     0   :  { %s7759_s0 = inlined_call_operand.hbm [shape: bf16[256,256], index: 0, kind: input, shape index: {}]   ;;  %s7760_s1 = inlined_call_operand.hbm [shape: bf16[256,256], index: 1, kind: input, shape index: {}]   ;;  %s7761_s2 = inlined_call_operand.hbm [shape: bf16[256,256], index: 2, kind: input, shape index: {}]   ;;  %s7762_s3 = inlined_call_operand.hbm [shape: bf16[256,512], index: 3, kind: input, shape index: {}]   ;;  %s7763_s4 = inlined_call_operand.vmem [shape: f32[1,512], index: 4, kind: input, shape index: {}]   ;;  %s7764_s5 = inlined_call_operand.vmem [shape: f32[1,512], index: 5, kind: input, shape index: {}]   ;;  %s7765_s6 = inlined_call_operand.hbm [shape: bf16[512,256], index: 6, kind: input, shape index: {}]   ;;  %s7766_s7 = inlined_call_operand.vmem [shape: f32[1,256], index: 7, kind: input, shape index: {}]   ;;  %s7767_s8 = inlined_call_operand.hbm [shape: bf16[256,256], index: 8, kind: input, shape index: {}]   ;;  %s7768_s9 = inlined_call_operand.hbm [shape: bf16[256,256], index: 9, kind: output, shape index: {0}]   ;;  %s7769_s10 = inlined_call_operand.hbm [shape: bf16[256,256], index: 10, kind: output, shape index: {1}]   ;;  %s7770_s11 = inlined_call_operand.hbm [shape: bf16[256,256], index: 11, kind: output, shape index: {2}]   ;;  %s7771_s12 = inlined_call_operand.hbm [shape: f32[256,128], index: 12, kind: output, shape index: {3}]  }
   0x1   :  { %7837 = sst [smem:[#allocation51_spill]] %s7760_s1 }
   0x2   :  { %7838 = sst [smem:[#allocation52_spill]] %s7762_s3 }
   0x3   :  { %7839 = sst [smem:[#allocation53_spill]] %s7765_s6 }
   0x4   :  { %7840 = sst [smem:[#allocation54_spill]] %s7768_s9 }
   0x5   :  { %7841 = sst [smem:[#allocation55_spill]] %s7770_s11 }
   0x6   :  { %7842 = sst [smem:[#allocation56_spill]] %s7771_s12 }
   0x7   :  { %18 = vsyncpa [#allocation3], 0 }
   0x8   :  { %20 = vsyncpa [#allocation3 + $0x1], 0 }
   0x9   :  { %21 = vsyncpa [#allocation6], 0 }
   0xa   :  { %23 = vsyncpa [#allocation6 + $0x1], 0 }
   0xb   :  { %24 = vsyncpa [#allocation9], 0 }
   0xc   :  { %25 = vsyncpa [#allocation12], 0 }
   0xd   :  { %26 = vsyncpa [#allocation4], 0 }
   0xe   :  { %28 = vsyncpa [#allocation4 + $0x1], 0 }
   0xf   :  { %29 = vsyncpa [#allocation15], 0 }
  0x10   :  { %31 = vsyncpa [#allocation15 + $0x1], 0 }
  0x11   :  { %32 = vsyncpa [#allocation18], 0 }
  0x12   :  { %34 = vsyncpa [#allocation18 + $0x1], 0  ;;  %s6453_s21 = smov 0   ;;  %s6455_s22 = smov 0  }
  0x13   :  { %s6457_s23 = smov 0   ;;  %s6459_s24 = smov 0  }
  0x14 LB: > { %7843 = sst [smem:[#allocation26_spill]] %s6358_s21  ;;  %s6474_s25 = sadd.s32 4294967295, %s6370_s24   ;;  %s6370_s24 = sphi %s6459_s24, %s7923_s24   ;;  %s6366_s23 = sphi %s6457_s23, %s7927_s23   ;;  %s6362_s22 = sphi %s6455_s22, %s7926_s22   ;;  %s6358_s21 = sphi %s6453_s21, %s7925_s21  }
  0x15   : > { %7844 = sst [smem:[#allocation27_spill]] %s6370_s24  ;;  %s7775_s26 = sadd.s32 4294967294, %s6370_s24  }
  0x16   : > { %s6478_s27 = sadd.s32 1, %s6370_s24   ;;  %s47_s28 = sadd.s32 1, %s6366_s23 }
  0x17   : > { %7845 = sst [smem:[#allocation28_spill]] %s6478_s27  ;;  %s44_s29 = ssub.s32 %s6370_s24, %s6478_s27 }
  0x18   : > { %p54_p0 = scmp.ne.s32.totalorder %s6366_s23, %s6362_s22  ;;  %p45_p1 = scmp.eq.s32.totalorder %s44_s29, 0 }
  0x19   : > { %p55_p2 = scmp.eq.s32.totalorder %s6370_s24, 0  ;;  %p60_p3 = scmp.ne.s32.totalorder %s6362_s22, %s6358_s21 }
  0x1a   : > { %p7786_p4 = scmp.eq.s32.totalorder %s6474_s25, 0  ;;  %p262_p7 = scmp.eq.s32.totalorder %s6474_s25, 1 }
  0x1b   : > { %s6490_s30 = scalar_select %p45_p1, %s6366_s23, %s47_s28  }
  0x1c   : > { %p6492_p5 = por %p55_p2, %p54_p0  ;;  %p6498_p6 = por %p7786_p4, %p60_p3 }
  0x1d   : > { %7846 = sst [smem:[#allocation29_spill]] %s6490_s30  ;;  %p268_p8 = scmp.eq.s32.totalorder %s7775_s26, 1 }
  0x1e   : > { %s7848_s14 = scalar_select %p6498_p6, 1, 0 }
  0x1f   : > { %p4976_p9 = scmp.ge.s32.totalorder %s6370_s24, 1  ;;  %p353_p10 = scmp.lt.s32.totalorder %s6370_s24, 3 }
  0x20   : > { %p6507_p11 = por %p262_p7, %p54_p0  ;;  %p6511_p12 = por %p268_p8, %p60_p3 }
  0x21   : > { %p6515_p13 = pnand %p4976_p9, %p353_p10  ;;  %s6372_s18 = smov [#allocation8]  }
  0x22   : > { %s7849_s15 = scalar_select %p6507_p11, 1, 0 }
  0x23   : > { %s7850_s16 = scalar_select %p6511_p12, 1, 0 }
  0x24   : > { %s7852_s17 = scalar_select %p6515_p13, 1, 0 }
  0x25   : > { %7851 = sst [smem:[#allocation30_spill]] %s7850_s16  ;;  %p5396_p1 = pneg %p6515_p13 }
  0x26   : > { %s365_s19 = sshll.u32 %s6372_s18, 4  ;;  %p5432_p3 = scmp.lt.s32.totalorder %s6370_s24, 2  ;;  %s366_s19 = int_to_ptr.vmem [resolvable:$true] %s365_s19 }
  0x27   : > { %p6523_p2 = pnand %p5396_p1, %p7786_p4  ;;  %s6057_s28 = scalar_lea.vmem %s366_s19, 8192 }
  0x28   : > { %p6058_p8 = scmp.ne.s32.totalorder %s366_s19, %s6057_s28  ;;  %p6065_p12 = scmp.lt.s32.totalorder %s366_s19, %s366_s19 }
  0x29   : > { %s7853_s20 = scalar_select %p6523_p2, 1, 0 }
  0x2a   : > { %p7787_p7 = pneg %p6523_p2  ;;  %p6066_p11 = scmp.lt.s32.totalorder %s6057_s28, %s6057_s28 }
  0x2c   : > { %p6060_p9 = pnand %p6058_p8, %p7787_p7  ;;  %p6067_p6 = por %p6066_p11, %p6065_p12 }
  0x2e   : > { %p6061_p10 = pneg %p6060_p9 }
  0x30   : > { %p6068_p13 = pnand %p6067_p6, %p6061_p10 }
  0x32   : > { %6071 = shalt.err (!%p6068_p13)
}
  0x33   : > { %s6373_s29 = smov 256   ;;  %s6374_s18 = smov 16  }
  0x34   : > { %s7854_s3 = sld [smem:[#allocation52_spill]]  ;;  %s7783_s27 = sand.u32 1, %s6366_s23  }
  0x35   : > { %s6541_s16 = sshll.u32 %s6370_s24, 11  ;;  %s6545_s28 = sshll.u32 %s7783_s27, 7 }
  0x36   : > { %p6551_p6 = pnand %p5432_p3, %p6492_p5  ;;  %s436_s12 = sand.u32 1, %s6370_s24  }
  0x37   : > { %s7856_s1 = sld [smem:[#allocation51_spill]]  ;;  %s440_s30 = scalar_lea.vmem [#allocation5], %s6545_s28 }
  0x38   : > { %s6565_s13 = scalar_lea.sflag [#allocation6], %s436_s12  ;;  %p6571_p11 = pneg %p6551_p6 }
  0x3a   : > { %5399 = dma.hbm_to_vmem [thread:$0]  (!%p6523_p2), %s7854_s3, 8192, %s366_s19, [#allocation9], %s6373_s29, %s6373_s29, %s6374_s18  }
  0x3b   : > { %s448_s19 = sshll.u32 %s440_s30, 4  ;;  %s6563_s19 = int_to_ptr.vmem [resolvable:$true] %s448_s19 }
  0x3d   : > { %s6560_s26 = scalar_lea.hbm %s7856_s1, %s6541_s16  ;;  %s6077_s27 = scalar_lea.hbm %s7856_s1, 4096 }
  0x3e   : > { %s6072_s29 = scalar_lea.hbm %s6560_s26, 2048  ;;  %p6078_p1 = scmp.lt.s32.totalorder %s6560_s26, %s7856_s1 }
  0x3f   : > { %p6073_p5 = scmp.ne.s32.totalorder %s6560_s26, %s6072_s29  ;;  %p6079_p3 = scmp.lt.s32.totalorder %s6077_s27, %s6072_s29 }
  0x41   : > { %p6075_p12 = pnand %p6571_p11, %p6073_p5  ;;  %p6080_p8 = por %p6079_p3, %p6078_p1 }
  0x43   : > { %p6076_p13 = pneg %p6075_p12 }
  0x45   : > { %p6081_p9 = pnand %p6080_p8, %p6076_p13 }
  0x47   : > { %6084 = shalt.err (!%p6081_p9)
}
  0x48   : > { %s6085_s12 = scalar_lea.vmem %s6563_s19, 2048  ;;  %s6375_s24 = smov [#allocation5]  }
  0x49   : > { %p6086_p10 = scmp.ne.s32.totalorder %s6563_s19, %s6085_s12  ;;  %s6090_s9 = sshll.u32 %s6375_s24, 4  ;;  %s6091_s9 = int_to_ptr.vmem [resolvable:$false] %s6090_s9 }
  0x4a   : > { %s6092_s11 = scalar_lea.vmem %s6091_s9, 4096  ;;  %p6093_p0 = scmp.lt.s32.totalorder %s6563_s19, %s6091_s9 }
  0x4b   : > { %p6088_p5 = pnand %p6086_p10, %p6571_p11  ;;  %p6094_p4 = scmp.lt.s32.totalorder %s6092_s11, %s6085_s12 }
  0x4d   : > { %p6089_p12 = pneg %p6088_p5  ;;  %p6095_p7 = por %p6094_p4, %p6093_p0 }
  0x4f   : > { %p6096_p2 = pnand %p6095_p7, %p6089_p12 }
  0x51   : > { %6099 = shalt.err (!%p6096_p2)
}
  0x52   : > { %s7790_s3 = smov 128   ;;  %s7792_s27 = smov 8  }
  0x53   : > { %5412 = dma.hbm_to_vmem [thread:$0]  (!%p6551_p6), %s6560_s26, 2048, %s6563_s19, %s6565_s13, %s7790_s3, %s7790_s3, %s7792_s27  }
  0x54   : > { %s6378_s24 = smov [#allocation10]   ;;  %s6379_s30 = smov [#allocation11]  }
  0x55   : > { %s384_s29 = sshll.u32 %s6378_s24, 4  ;;  %s400_s12 = sshll.u32 %s6379_s30, 4  ;;  %s385_s29 = int_to_ptr.vmem [resolvable:$true] %s384_s29  ;;  %s401_s12 = int_to_ptr.vmem [resolvable:$true] %s400_s12 }
  0x56   : > { %s6111_s9 = scalar_lea.vmem %s385_s29, 8192  ;;  %p7858_p2 = scmp.ne.s32.totalorder %s7853_s20, 0 }
  0x57   : > { %p6112_p4 = scmp.ne.s32.totalorder %s385_s29, %s6111_s9  ;;  %p6119_p1 = scmp.lt.s32.totalorder %s385_s29, %s385_s29 }
  0x58   : > { %p7859_p0 = pneg %p7858_p2  ;;  %p6120_p3 = scmp.lt.s32.totalorder %s6111_s9, %s6111_s9 }
  0x5a   : > { %p6114_p7 = pnand %p6112_p4, %p7859_p0  ;;  %p6121_p8 = por %p6120_p3, %p6119_p1 }
  0x5c   : > { %p6115_p13 = pneg %p6114_p7 }
  0x5e   : > { %p6122_p9 = pnand %p6121_p8, %p6115_p13 }
  0x60   : > { %6125 = shalt.err (!%p6122_p9)
}
  0x61   : > { %s7860_s6 = sld [smem:[#allocation53_spill]]  ;;  %s6137_s11 = scalar_lea.vmem %s401_s12, 4096 }
  0x62   : > { %p6138_p10 = scmp.ne.s32.totalorder %s401_s12, %s6137_s11  ;;  %p7861_p5 = pmov %p7859_p0 }
  0x63   : > { %p6145_p0 = scmp.lt.s32.totalorder %s401_s12, %s401_s12  ;;  %p6146_p7 = scmp.lt.s32.totalorder %s6137_s11, %s6137_s11 }
  0x64   : > { %p6140_p12 = pnand %p6138_p10, %p7861_p5 }
  0x65   : > { %p6147_p13 = por %p6146_p7, %p6145_p0 }
  0x66   : > { %p6141_p4 = pneg %p6140_p12 }
  0x67   : > { %5402 = dma.hbm_to_vmem [thread:$0]  (!%p7858_p2), %s7860_s6, 8192, %s385_s29, [#allocation9], %s7790_s3, %s7790_s3, %s7792_s27  }
  0x68   : > { %p6148_p1 = pnand %p6147_p13, %p6141_p4 }
  0x6a   : > { %6151 = shalt.err (!%p6148_p1)
}
  0x6b   : > { %5405 = dma.hbm_to_vmem [thread:$0]  (!%p7858_p2), %s7767_s8, 4096, %s401_s12, [#allocation12], %s7790_s3, %s7790_s3, %s7792_s27  }
  0x6c   : > { %s6623_s26 = scalar_lea.hbm %s7759_s0, %s6541_s16  ;;  %s418_s20 = scalar_lea.vmem [#allocation2], %s6545_s28 }
  0x6d   : > { %s426_s19 = sshll.u32 %s418_s20, 4  ;;  %s6632_s30 = scalar_lea.hbm %s7761_s2, %s6541_s16  ;;  %s6626_s19 = int_to_ptr.vmem [resolvable:$true] %s426_s19 }
  0x6e   : > { %s7862_s1 = sand.u32 1, %s6366_s23   ;;  %s6152_s12 = scalar_lea.hbm %s6623_s26, 2048 }
  0x6f   : > { %s415_s6 = scalar_lea.sflag [#allocation3], %s7862_s1  ;;  %p6153_p2 = scmp.ne.s32.totalorder %s6623_s26, %s6152_s12 }
  0x70   : > { %s6157_s3 = scalar_lea.hbm %s7759_s0, 4096  ;;  %p6158_p9 = scmp.lt.s32.totalorder %s6623_s26, %s7759_s0 }
  0x71   : > { %p6155_p3 = pnand %p6153_p2, %p6571_p11  ;;  %p6159_p10 = scmp.lt.s32.totalorder %s6157_s3, %s6152_s12 }
  0x73   : > { %p6156_p8 = pneg %p6155_p3  ;;  %p6160_p5 = por %p6159_p10, %p6158_p9 }
  0x75   : > { %p6161_p12 = pnand %p6160_p5, %p6156_p8 }
  0x77   : > { %6164 = shalt.err (!%p6161_p12)
}
  0x78   : > { %s6165_s1 = scalar_lea.vmem %s6626_s19, 2048  ;;  %s6380_s16 = smov [#allocation2]  }
  0x79   : > { %p6166_p4 = scmp.ne.s32.totalorder %s6626_s19, %s6165_s1  ;;  %s6170_s11 = sshll.u32 %s6380_s16, 4  ;;  %s6171_s11 = int_to_ptr.vmem [resolvable:$false] %s6170_s11 }
  0x7a   : > { %s6172_s24 = scalar_lea.vmem %s6171_s11, 4096  ;;  %p6173_p13 = scmp.lt.s32.totalorder %s6626_s19, %s6171_s11 }
  0x7b   : > { %p6168_p0 = pnand %p6166_p4, %p6571_p11  ;;  %p6174_p1 = scmp.lt.s32.totalorder %s6172_s24, %s6165_s1 }
  0x7d   : > { %p6169_p7 = pneg %p6168_p0  ;;  %p6175_p2 = por %p6174_p1, %p6173_p13 }
  0x7f   : > { %p6176_p3 = pnand %p6175_p2, %p6169_p7 }
  0x81   : > { %6179 = shalt.err (!%p6176_p3)
}
  0x82   : > { %s7863_s3 = smov 8   ;;  %s7864_s27 = smov 128  }
  0x83   : > { %5409 = dma.hbm_to_vmem [thread:$0]  (!%p6551_p6), %s6623_s26, 2048, %s6626_s19, %s415_s6, %s7864_s27, %s7864_s27, %s7863_s3  }
  0x84   : > { %s462_s12 = scalar_lea.vmem [#allocation7], %s6545_s28  ;;  %s6180_s9 = scalar_lea.hbm %s6632_s30, 2048 }
  0x85   : > { %s470_s29 = sshll.u32 %s462_s12, 4  ;;  %p6181_p8 = scmp.ne.s32.totalorder %s6632_s30, %s6180_s9  ;;  %s471_s29 = int_to_ptr.vmem [resolvable:$true] %s470_s29 }
  0x86   : > { %s6185_s16 = scalar_lea.hbm %s7761_s2, 4096  ;;  %p6186_p5 = scmp.lt.s32.totalorder %s6632_s30, %s7761_s2 }
  0x87   : > { %p6183_p9 = pnand %p6181_p8, %p6571_p11  ;;  %p6187_p12 = scmp.lt.s32.totalorder %s6185_s16, %s6180_s9 }
  0x89   : > { %p6184_p10 = pneg %p6183_p9  ;;  %p6188_p4 = por %p6187_p12, %p6186_p5 }
  0x8b   : > { %p6189_p0 = pnand %p6188_p4, %p6184_p10 }
  0x8d   : > { %6192 = shalt.err (!%p6189_p0)
}
  0x8e   : > { %s6193_s6 = scalar_lea.vmem %s471_s29, 2048  ;;  %s6381_s28 = smov [#allocation7]  }
  0x8f   : > { %p6194_p7 = scmp.ne.s32.totalorder %s471_s29, %s6193_s6  ;;  %s6198_s26 = sshll.u32 %s6381_s28, 4  ;;  %s6199_s26 = int_to_ptr.vmem [resolvable:$false] %s6198_s26 }
  0x90   : > { %s6200_s19 = scalar_lea.vmem %s6199_s26, 4096  ;;  %p6201_p2 = scmp.lt.s32.totalorder %s471_s29, %s6199_s26 }
  0x91   : > { %p6196_p13 = pnand %p6194_p7, %p6571_p11  ;;  %p6202_p3 = scmp.lt.s32.totalorder %s6200_s19, %s6193_s6 }
  0x93   : > { %p6197_p1 = pneg %p6196_p13  ;;  %p6203_p8 = por %p6202_p3, %p6201_p2 }
  0x95   : > { %p6204_p9 = pnand %p6203_p8, %p6197_p1 }
  0x97   : > { %6207 = shalt.err (!%p6204_p9)
}
  0x98   : > { %5415 = dma.hbm_to_vmem [thread:$0]  (!%p6551_p6), %s6632_s30, 2048, %s471_s29, %s6565_s13, %s7864_s27, %s7864_s27, %s7863_s3  }
  0x99   : > { %p7865_p11 = scmp.ne.s32.totalorder %s7852_s17, 0 }
  0x9b   : > { %482 = sbr.rel (%p7865_p11) target bundleno = 1101 (0x44d), region = 56 }
  0xa0   : > { %s6683_s18 = sand.u32 1, %s6362_s22   ;;  %p7866_p10 = scmp.ne.s32.totalorder %s7848_s14, 0 }
  0xa1   : > { %s6686_s12 = sshll.u32 %s6683_s18, 7  ;;  %s485_s9 = scalar_lea.sflag [#allocation3], %s6683_s18 }
  0xa2   : > { %s6690_s21 = scalar_lea.vmem [#allocation2], %s6686_s12 }
  0xa3   : > { %6329 = dma.done.wait (%p7866_p10), %s485_s9, 2048  }
  0xa4   : > { %6331 = vsyncadd (%p7866_p10), %s485_s9, 4294965248  ;;  %s493_s17 = sand.u32 1, %s6474_s25   ;;  %s6700_s30 = scalar_lea.vmem [#allocation5], %s6686_s12 }
  0xa5   : > { %s494_s13 = scalar_lea.sflag [#allocation6], %s493_s17 }
  0xa6   : > { %6333 = dma.done.wait (%p7866_p10), %s494_s13, 4096  }
  0xa7   : > { %6335 = vsyncadd (%p7866_p10), %s494_s13, 4294963200  ;;  %s6707_s3 = scalar_lea.vmem [#allocation7], %s6686_s12  ;;  %p7867_p6 = scmp.eq.s32.totalorder %s6474_s25, 0 }
  0xa9   : > { %6337 = dma.done.wait (%p7867_p6), [#allocation9], 16384   ;;  %p7868_p5 = pmov %p7867_p6 }
  0xab   : > { %6339 = vsyncadd (%p7868_p5), [#allocation9], 4294950912  ;;  %p7869_p12 = pmov %p7868_p5 }
  0xac   : > { %p7870_p4 = pmov %p7868_p5 }
  0xad   : > { %6341 = dma.done.wait (%p7869_p12), [#allocation12], 4096  }
  0xae   : > { %6343 = vsyncadd (%p7870_p4), [#allocation12], 4294963200  ;;  %v5478_v0 = vld [vmem:[#allocation8 + $0xe4] ss:$16 sps:$4 sm:$0xff]   ;;  %v5480_v1 = vld [vmem:[#allocation8 + $0xec] ss:$16 sps:$4 sm:$0xff]  }
  0xaf   : > { %1596 = vmatprep.subr.bf16.mxu0 %v5478_v0  ;;  %v5482_v2 = vld [vmem:[#allocation8 + $0xe0] ss:$16 sps:$4 sm:$0xff]   ;;  %v5483_v3 = vld [vmem:[#allocation8 + $0xe8] ss:$16 sps:$4 sm:$0xff]   ;;  %1869 = vmatprep.subr.bf16.mxu1 %v5480_v1  ;;  %v5484_v4 = vld [vmem:[#allocation8 + $0xc4] ss:$16 sps:$4 sm:$0xff]  }
  0xb0   : > { %1597 = vmatpush1.bf16.msra.mxu0 %v5482_v2  ;;  %1870 = vmatpush1.bf16.msra.mxu1 %v5483_v3  ;;  %v5486_v5 = vld [vmem:[#allocation8 + $0xcc] ss:$16 sps:$4 sm:$0xff]   ;;  %v5488_v6 = vld [vmem:[#allocation8 + $0xc0] ss:$16 sps:$4 sm:$0xff]   ;;  %v5489_v7 = vld [vmem:[#allocation8 + $0xc8] ss:$16 sps:$4 sm:$0xff]  }
  0xb1   : > { %1598 = vmatprep.subr.bf16.mxu0 %v5484_v4  ;;  %1871 = vmatprep.subr.bf16.mxu1 %v5486_v5  ;;  %v5490_v8 = vld [vmem:[#allocation8 + $0xa4] ss:$16 sps:$4 sm:$0xff]   ;;  %v5492_v9 = vld [vmem:[#allocation8 + $0xac] ss:$16 sps:$4 sm:$0xff]   ;;  %v5494_v10 = vld [vmem:[#allocation8 + $0xa0] ss:$16 sps:$4 sm:$0xff]  }
  0xb2   : > { %v5495_v11 = vld [vmem:[#allocation8 + $0xa8] ss:$16 sps:$4 sm:$0xff]   ;;  %v5496_v12 = vld [vmem:[#allocation8 + $0x84] ss:$16 sps:$4 sm:$0xff]   ;;  %v5498_v13 = vld [vmem:[#allocation8 + $0x8c] ss:$16 sps:$4 sm:$0xff]  }
  0xb3   : > { %v5500_v14 = vld [vmem:[#allocation8 + $0x80] ss:$16 sps:$4 sm:$0xff]   ;;  %v5501_v15 = vld [vmem:[#allocation8 + $0x88] ss:$16 sps:$4 sm:$0xff]   ;;  %v5502_v16 = vld [vmem:[#allocation8 + $0x64] ss:$16 sps:$4 sm:$0xff]  }
  0xb4   : > { %1599 = vmatpush1.bf16.msra.mxu0 %v5488_v6  ;;  %1872 = vmatpush1.bf16.msra.mxu1 %v5489_v7  ;;  %v5504_v17 = vld [vmem:[#allocation8 + $0x6c] ss:$16 sps:$4 sm:$0xff]   ;;  %v5506_v18 = vld [vmem:[#allocation8 + $0x60] ss:$16 sps:$4 sm:$0xff]   ;;  %v5507_v19 = vld [vmem:[#allocation8 + $0x68] ss:$16 sps:$4 sm:$0xff]  }
  0xb5   : > { %1600 = vmatprep.subr.bf16.mxu0 %v5490_v8  ;;  %1873 = vmatprep.subr.bf16.mxu1 %v5492_v9  ;;  %v5508_v20 = vld [vmem:[#allocation8 + $0x44] ss:$16 sps:$4 sm:$0xff]   ;;  %v5510_v21 = vld [vmem:[#allocation8 + $0x4c] ss:$16 sps:$4 sm:$0xff]   ;;  %v5512_v22 = vld [vmem:[#allocation8 + $0x40] ss:$16 sps:$4 sm:$0xff]  }
  0xb6   : > { %v5513_v23 = vld [vmem:[#allocation8 + $0x48] ss:$16 sps:$4 sm:$0xff]   ;;  %v5514_v24 = vld [vmem:[#allocation8 + $0x24] ss:$16 sps:$4 sm:$0xff]   ;;  %v5516_v25 = vld [vmem:[#allocation8 + $0x2c] ss:$16 sps:$4 sm:$0xff]  }
  0xb7   : > { %v5518_v26 = vld [vmem:[#allocation8 + $0x20] ss:$16 sps:$4 sm:$0xff]   ;;  %v5519_v27 = vld [vmem:[#allocation8 + $0x28] ss:$16 sps:$4 sm:$0xff]   ;;  %v5520_v28 = vld [vmem:[#allocation8 + $0x4] ss:$16 sps:$4 sm:$0xff]  }
  0xb8   : > { %1601 = vmatpush1.bf16.msra.mxu0 %v5494_v10  ;;  %1874 = vmatpush1.bf16.msra.mxu1 %v5495_v11  ;;  %v5522_v29 = vld [vmem:[#allocation8 + $0xc] ss:$16 sps:$4 sm:$0xff]   ;;  %v5524_v30 = vld [vmem:[#allocation8] ss:$16 sps:$4 sm:$0xff]   ;;  %v5525_v31 = vld [vmem:[#allocation8 + $0x8] ss:$16 sps:$4 sm:$0xff]  }
  0xb9   : > { %1602 = vmatprep.subr.bf16.mxu0 %v5496_v12  ;;  %1875 = vmatprep.subr.bf16.mxu1 %v5498_v13  ;;  %v5526_v32 = vld [vmem:[#allocation8 + $0x1e4] ss:$16 sps:$4 sm:$0xff]   ;;  %v5528_v33 = vld [vmem:[#allocation8 + $0x1ec] ss:$16 sps:$4 sm:$0xff]   ;;  %v5530_v34 = vld [vmem:[#allocation8 + $0x1e0] ss:$16 sps:$4 sm:$0xff]  }
  0xba   : > { %v5531_v35 = vld [vmem:[#allocation8 + $0x1e8] ss:$16 sps:$4 sm:$0xff]   ;;  %v5532_v36 = vld [vmem:[#allocation8 + $0x1c4] ss:$16 sps:$4 sm:$0xff]   ;;  %v5534_v37 = vld [vmem:[#allocation8 + $0x1cc] ss:$16 sps:$4 sm:$0xff]  }
  0xbb   : > { %v5536_v38 = vld [vmem:[#allocation8 + $0x1c0] ss:$16 sps:$4 sm:$0xff]   ;;  %v5537_v39 = vld [vmem:[#allocation8 + $0x1c8] ss:$16 sps:$4 sm:$0xff]   ;;  %v5538_v40 = vld [vmem:[#allocation8 + $0x1a4] ss:$16 sps:$4 sm:$0xff]  }
  0xbc   : > { %1603 = vmatpush1.bf16.msra.mxu0 %v5500_v14  ;;  %1876 = vmatpush1.bf16.msra.mxu1 %v5501_v15  ;;  %v5540_v41 = vld [vmem:[#allocation8 + $0x1ac] ss:$16 sps:$4 sm:$0xff]   ;;  %v5542_v42 = vld [vmem:[#allocation8 + $0x1a0] ss:$16 sps:$4 sm:$0xff]   ;;  %v5543_v43 = vld [vmem:[#allocation8 + $0x1a8] ss:$16 sps:$4 sm:$0xff]  }
  0xbd   : > { %1604 = vmatprep.subr.bf16.mxu0 %v5502_v16  ;;  %1877 = vmatprep.subr.bf16.mxu1 %v5504_v17  ;;  %v5544_v44 = vld [vmem:[#allocation8 + $0x184] ss:$16 sps:$4 sm:$0xff]   ;;  %v5546_v45 = vld [vmem:[#allocation8 + $0x18c] ss:$16 sps:$4 sm:$0xff]   ;;  %v5548_v46 = vld [vmem:[#allocation8 + $0x180] ss:$16 sps:$4 sm:$0xff]  }
  0xbe   : > { %v5549_v47 = vld [vmem:[#allocation8 + $0x188] ss:$16 sps:$4 sm:$0xff]   ;;  %v5576_v48 = vld [vmem:[%s6690_s21 + $0x4] ss:$8 sps:$4 sm:$0xff]   ;;  %v5554_v51 = vld [vmem:[#allocation8 + $0x160] ss:$16 sps:$4 sm:$0xff]  }
  0xbf   : > { %v5550_v49 = vld [vmem:[#allocation8 + $0x164] ss:$16 sps:$4 sm:$0xff]   ;;  %v5552_v50 = vld [vmem:[#allocation8 + $0x16c] ss:$16 sps:$4 sm:$0xff]   ;;  %1628 = vmatprep.mubr.bf16.mxu0 %v5576_v48  ;;  %1901 = vmatprep.mubr.bf16.mxu1 %v5576_v48  ;;  %v5555_v52 = vld [vmem:[#allocation8 + $0x168] ss:$16 sps:$4 sm:$0xff]  }
  0xc0   : > { %1605 = vmatpush1.bf16.msra.mxu0 %v5506_v18  ;;  %1878 = vmatpush1.bf16.msra.mxu1 %v5507_v19  ;;  %v5556_v53 = vld [vmem:[#allocation8 + $0x144] ss:$16 sps:$4 sm:$0xff]   ;;  %v5558_v54 = vld [vmem:[#allocation8 + $0x14c] ss:$16 sps:$4 sm:$0xff]   ;;  %v5560_v55 = vld [vmem:[#allocation8 + $0x140] ss:$16 sps:$4 sm:$0xff]  }
  0xc1   : > { %1606 = vmatprep.subr.bf16.mxu0 %v5508_v20  ;;  %1879 = vmatprep.subr.bf16.mxu1 %v5510_v21  ;;  %v5561_v56 = vld [vmem:[#allocation8 + $0x148] ss:$16 sps:$4 sm:$0xff]   ;;  %v5562_v57 = vld [vmem:[#allocation8 + $0x124] ss:$16 sps:$4 sm:$0xff]   ;;  %v5564_v58 = vld [vmem:[#allocation8 + $0x12c] ss:$16 sps:$4 sm:$0xff]  }
  0xc2   : > { %v5566_v59 = vld [vmem:[#allocation8 + $0x120] ss:$16 sps:$4 sm:$0xff]   ;;  %v5567_v60 = vld [vmem:[#allocation8 + $0x128] ss:$16 sps:$4 sm:$0xff]   ;;  %v5568_v61 = vld [vmem:[#allocation8 + $0x104] ss:$16 sps:$4 sm:$0xff]  }
  0xc3   : > { %v5570_v62 = vld [vmem:[#allocation8 + $0x10c] ss:$16 sps:$4 sm:$0xff]   ;;  %v5572_v63 = vld [vmem:[#allocation8 + $0x100] ss:$16 sps:$4 sm:$0xff]   ;;  %v5573_v0 = vld [vmem:[#allocation8 + $0x108] ss:$16 sps:$4 sm:$0xff]  }
  0xc4   : > { %1607 = vmatpush1.bf16.msra.mxu0 %v5512_v22  ;;  %1880 = vmatpush1.bf16.msra.mxu1 %v5513_v23  ;;  %v5582_v1 = vld [vmem:[#allocation10 + $0x74] ss:$8 sps:$4 sm:$0xff]   ;;  %v5574_v3 = vld [vmem:[%s6690_s21] ss:$8 sps:$4 sm:$0xff]   ;;  %v5580_v5 = vld [vmem:[#allocation10 + $0x70] ss:$8 sps:$4 sm:$0xff]  }
  0xc5   : > { %1608 = vmatprep.subr.bf16.mxu0 %v5514_v24  ;;  %1881 = vmatprep.subr.bf16.mxu1 %v5516_v25  ;;  %v5587_v2 = vld [vmem:[#allocation10 + $0x174] ss:$8 sps:$4 sm:$0xff]   ;;  %v5585_v6 = vld [vmem:[#allocation10 + $0x170] ss:$8 sps:$4 sm:$0xff]   ;;  %v5594_v7 = vld [vmem:[#allocation10 + $0x64] ss:$8 sps:$4 sm:$0xff]  }
  0xc6   : > { %v5577_v4 = vld [vmem:[%s6690_s21 + $0x14] ss:$8 sps:$4 sm:$0xff]   ;;  %v5597_v8 = vld [vmem:[#allocation10 + $0x164] ss:$8 sps:$4 sm:$0xff]   ;;  %v5592_v9 = vld [vmem:[#allocation10 + $0x60] ss:$8 sps:$4 sm:$0xff]  }
  0xc7   : > { %v5595_v10 = vld [vmem:[#allocation10 + $0x160] ss:$8 sps:$4 sm:$0xff]   ;;  %v5603_v11 = vld [vmem:[#allocation10 + $0x54] ss:$8 sps:$4 sm:$0xff]   ;;  %v5579_v13 = vld [vmem:[%s6690_s21 + $0x10] ss:$8 sps:$4 sm:$0xff]  }
  0xc8   : > { %1609 = vmatpush1.bf16.msra.mxu0 %v5518_v26  ;;  %1882 = vmatpush1.bf16.msra.mxu1 %v5519_v27  ;;  %v5608_v12 = vld [vmem:[#allocation10 + $0x154] ss:$8 sps:$4 sm:$0xff]   ;;  %v5583_v14 = vld [vmem:[%s6690_s21 + $0x24] ss:$8 sps:$4 sm:$0xff]   ;;  %v5601_v15 = vld [vmem:[#allocation10 + $0x50] ss:$8 sps:$4 sm:$0xff]  }
  0xc9   : > { %1610 = vmatprep.subr.bf16.mxu0 %v5520_v28  ;;  %1883 = vmatprep.subr.bf16.mxu1 %v5522_v29  ;;  %v5606_v16 = vld [vmem:[#allocation10 + $0x150] ss:$8 sps:$4 sm:$0xff]   ;;  %v5615_v17 = vld [vmem:[#allocation10 + $0x44] ss:$8 sps:$4 sm:$0xff]   ;;  %v5613_v19 = vld [vmem:[#allocation10 + $0x40] ss:$8 sps:$4 sm:$0xff]  }
  0xca   : > { %v5618_v18 = vld [vmem:[#allocation10 + $0x144] ss:$8 sps:$4 sm:$0xff]   ;;  %v5616_v20 = vld [vmem:[#allocation10 + $0x140] ss:$8 sps:$4 sm:$0xff]   ;;  %v5624_v21 = vld [vmem:[#allocation10 + $0x34] ss:$8 sps:$4 sm:$0xff]  }
  0xcb   : > { %v5629_v22 = vld [vmem:[#allocation10 + $0x134] ss:$8 sps:$4 sm:$0xff]   ;;  %v5588_v23 = vld [vmem:[%s6690_s21 + $0x20] ss:$8 sps:$4 sm:$0xff]   ;;  %v5622_v25 = vld [vmem:[#allocation10 + $0x30] ss:$8 sps:$4 sm:$0xff]  }
  0xcc   : > { %1611 = vmatpush1.bf16.msra.mxu0 %v5524_v30  ;;  %1884 = vmatpush1.bf16.msra.mxu1 %v5525_v31  ;;  %v5589_v24 = vld [vmem:[%s6690_s21 + $0x34] ss:$8 sps:$4 sm:$0xff]   ;;  %v5627_v26 = vld [vmem:[#allocation10 + $0x130] ss:$8 sps:$4 sm:$0xff]   ;;  %v5636_v27 = vld [vmem:[#allocation10 + $0x24] ss:$8 sps:$4 sm:$0xff]  }
  0xcd   : > { %1612 = vmatprep.subr.bf16.mxu0 %v5526_v32  ;;  %1885 = vmatprep.subr.bf16.mxu1 %v5528_v33  ;;  %v5639_v28 = vld [vmem:[#allocation10 + $0x124] ss:$8 sps:$4 sm:$0xff]   ;;  %v5634_v29 = vld [vmem:[#allocation10 + $0x20] ss:$8 sps:$4 sm:$0xff]   ;;  %v5645_v31 = vld [vmem:[#allocation10 + $0x14] ss:$8 sps:$4 sm:$0xff]  }
  0xce   : > { %v5637_v30 = vld [vmem:[#allocation10 + $0x120] ss:$8 sps:$4 sm:$0xff]   ;;  %v5650_v32 = vld [vmem:[#allocation10 + $0x114] ss:$8 sps:$4 sm:$0xff]   ;;  %v5591_v33 = vld [vmem:[%s6690_s21 + $0x30] ss:$8 sps:$4 sm:$0xff]  }
  0xcf   : > { %v5681_v48 = vld [vmem:[#allocation10 + $0x1e4] ss:$8 sps:$4 sm:$0xff]   ;;  %s7016_s11 = scalar_lea.vmem [#allocation13], %s6686_s12  ;;  %s7128_s24 = scalar_lea.vmem [#allocation14], %s6686_s12 }
  0xd0   : > { %1613 = vmatpush2.bf16.msra.mxu0 %v5530_v34  ;;  %1886 = vmatpush2.bf16.msra.mxu1 %v5531_v35  ;;  %v5598_v34 = vld [vmem:[%s6690_s21 + $0x44] ss:$8 sps:$4 sm:$0xff]   ;;  %v5643_v35 = vld [vmem:[#allocation10 + $0x10] ss:$8 sps:$4 sm:$0xff]   ;;  %s7312_s6 = scalar_lea.vmem [#allocation16], %s6686_s12  ;;  %s7495_s28 = sshll.u32 %s6474_s25, 11 }
  0xd1   : > { %1614 = vmatprep.subr.bf16.mxu0 %v5532_v36  ;;  %1887 = vmatprep.subr.bf16.mxu1 %v5534_v37  ;;  %v5648_v36 = vld [vmem:[#allocation10 + $0x110] ss:$8 sps:$4 sm:$0xff]   ;;  %v5657_v37 = vld [vmem:[#allocation10 + $0x4] ss:$8 sps:$4 sm:$0xff]   ;;  %s7501_s9 = scalar_lea.hbm %s7769_s10, %s7495_s28  ;;  %s7514_s27 = scalar_lea.sflag [#allocation15], %s493_s17 }
  0xd2   : > { %p7912_p7 = scmp.ne.s32.totalorder %s7849_s15, 0  ;;  %s6382_s20 = smov [#allocation14]  }
  0xd3   : > { %s6212_s1 = sshll.u32 %s6382_s20, 4  ;;  %s6213_s1 = int_to_ptr.vmem [resolvable:$false] %s6212_s1 }
  0xd4   : > { %1615 = vmatpush2.bf16.msra.mxu0 %v5536_v38  ;;  %1888 = vmatpush2.bf16.msra.mxu1 %v5537_v39  ;;  %v5660_v38 = vld [vmem:[#allocation10 + $0x104] ss:$8 sps:$4 sm:$0xff]   ;;  %v5655_v39 = vld [vmem:[#allocation10] ss:$8 sps:$4 sm:$0xff]   ;;  %s6214_s16 = scalar_lea.vmem %s6213_s1, 4096 }
  0xd5   : > { %1616 = vmatprep.subr.bf16.mxu0 %v5538_v40  ;;  %1889 = vmatprep.subr.bf16.mxu1 %v5540_v41  ;;  %v5658_v40 = vld [vmem:[#allocation10 + $0x100] ss:$8 sps:$4 sm:$0xff]   ;;  %v5666_v41 = vld [vmem:[#allocation10 + $0xf4] ss:$8 sps:$4 sm:$0xff]  }
  0xd8   : > { %1617 = vmatpush2.bf16.msra.mxu0 %v5542_v42  ;;  %1890 = vmatpush2.bf16.msra.mxu1 %v5543_v43  ;;  %v5671_v42 = vld [vmem:[#allocation10 + $0x1f4] ss:$8 sps:$4 sm:$0xff]   ;;  %v5600_v43 = vld [vmem:[%s6690_s21 + $0x40] ss:$8 sps:$4 sm:$0xff]  }
  0xd9   : > { %1618 = vmatprep.subr.bf16.mxu0 %v5544_v44  ;;  %1891 = vmatprep.subr.bf16.mxu1 %v5546_v45  ;;  %v5604_v44 = vld [vmem:[%s6690_s21 + $0x54] ss:$8 sps:$4 sm:$0xff]   ;;  %v5664_v45 = vld [vmem:[#allocation10 + $0xf0] ss:$8 sps:$4 sm:$0xff]  }
  0xdc   : > { %1619 = vmatpush2.bf16.msra.mxu0 %v5548_v46  ;;  %1892 = vmatpush2.bf16.msra.mxu1 %v5549_v47  ;;  %v5669_v46 = vld [vmem:[#allocation10 + $0x1f0] ss:$8 sps:$4 sm:$0xff]   ;;  %v5678_v47 = vld [vmem:[#allocation10 + $0xe4] ss:$8 sps:$4 sm:$0xff]  }
  0xdd   : > { %1620 = vmatprep.subr.bf16.mxu0 %v5550_v49  ;;  %1893 = vmatprep.subr.bf16.mxu1 %v5552_v50  ;;  %v5676_v49 = vld [vmem:[#allocation10 + $0xe0] ss:$8 sps:$4 sm:$0xff]  }
  0xde   : > { %v5679_v50 = vld [vmem:[#allocation10 + $0x1e0] ss:$8 sps:$4 sm:$0xff]  }
  0xe0   : > { %1621 = vmatpush2.bf16.msra.mxu0 %v5554_v51  ;;  %1894 = vmatpush2.bf16.msra.mxu1 %v5555_v52  ;;  %v5687_v51 = vld [vmem:[#allocation10 + $0xd4] ss:$8 sps:$4 sm:$0xff]  }
  0xe1   : > { %1622 = vmatprep.subr.bf16.mxu0 %v5556_v53  ;;  %1895 = vmatprep.subr.bf16.mxu1 %v5558_v54  ;;  %v5692_v52 = vld [vmem:[#allocation10 + $0x1d4] ss:$8 sps:$4 sm:$0xff]   ;;  %v5609_v53 = vld [vmem:[%s6690_s21 + $0x50] ss:$8 sps:$4 sm:$0xff]   ;;  %v5610_v54 = vld [vmem:[%s6690_s21 + $0x64] ss:$8 sps:$4 sm:$0xff]  }
  0xe4   : > { %1623 = vmatpush2.bf16.msra.mxu0 %v5560_v55  ;;  %1896 = vmatpush2.bf16.msra.mxu1 %v5561_v56  ;;  %v5685_v55 = vld [vmem:[#allocation10 + $0xd0] ss:$8 sps:$4 sm:$0xff]  }
  0xe5   : > { %1624 = vmatprep.subr.bf16.mxu0 %v5562_v57  ;;  %1897 = vmatprep.subr.bf16.mxu1 %v5564_v58  ;;  %v5690_v56 = vld [vmem:[#allocation10 + $0x1d0] ss:$8 sps:$4 sm:$0xff]   ;;  %v5699_v57 = vld [vmem:[#allocation10 + $0xc4] ss:$8 sps:$4 sm:$0xff]  }
  0xe6   : > { %v5702_v58 = vld [vmem:[#allocation10 + $0x1c4] ss:$8 sps:$4 sm:$0xff]  }
  0xe8   : > { %1625 = vmatpush2.bf16.msra.mxu0 %v5566_v59  ;;  %1898 = vmatpush2.bf16.msra.mxu1 %v5567_v60  ;;  %v5697_v59 = vld [vmem:[#allocation10 + $0xc0] ss:$8 sps:$4 sm:$0xff]  }
  0xe9   : > { %1626 = vmatprep.subr.bf16.mxu0 %v5568_v61  ;;  %1899 = vmatprep.subr.bf16.mxu1 %v5570_v62  ;;  %v5612_v60 = vld [vmem:[%s6690_s21 + $0x60] ss:$8 sps:$4 sm:$0xff]   ;;  %v5619_v62 = vld [vmem:[%s6690_s21 + $0x74] ss:$8 sps:$4 sm:$0xff]  }
  0xea   : > { %v5700_v61 = vld [vmem:[#allocation10 + $0x1c0] ss:$8 sps:$4 sm:$0xff]  }
  0xec   : > { %1627 = vmatpush2.bf16.msra.mxu0 %v5572_v63  ;;  %1900 = vmatpush2.bf16.msra.mxu1 %v5573_v0  ;;  %v5708_v63 = vld [vmem:[#allocation10 + $0xb4] ss:$8 sps:$4 sm:$0xff]  }
  0xed   : > { %2826 = vmatprep.subr.bf16.mxu0 %v5582_v1  ;;  %3099 = vmatprep.subr.bf16.mxu1 %v5587_v2  ;;  %v5713_v0 = vld [vmem:[#allocation10 + $0x1b4] ss:$8 sps:$4 sm:$0xff]   ;;  %v5706_v1 = vld [vmem:[#allocation10 + $0xb0] ss:$8 sps:$4 sm:$0xff]  }
  0xee   : > { %v5711_v2 = vld [vmem:[#allocation10 + $0x1b0] ss:$8 sps:$4 sm:$0xff]  }
  0xef   : > { %1629 = vmatmul.mubr.bf16.vlgmr.msra.gmra.mxu0 %v5574_v3  ;;  %1902 = vmatmul.mubr.bf16.vlgmr.msra.gmra.mxu1 %v5574_v3  ;;  %v5720_v3 = vld [vmem:[#allocation10 + $0xa4] ss:$8 sps:$4 sm:$0xff]  }
  0xf0   : > { %1638 = vmatprep.mubr.bf16.mxu0 %v5577_v4  ;;  %1911 = vmatprep.mubr.bf16.mxu1 %v5577_v4  ;;  %v5723_v4 = vld [vmem:[#allocation10 + $0x1a4] ss:$8 sps:$4 sm:$0xff]  }
  0xf1   : > { %2827 = vmatpush1.bf16.msra.mxu0 %v5580_v5  ;;  %3100 = vmatpush1.bf16.msra.mxu1 %v5585_v6  ;;  %v5718_v5 = vld [vmem:[#allocation10 + $0xa0] ss:$8 sps:$4 sm:$0xff]  }
  0xf2   : > { %2828 = vmatprep.subr.bf16.mxu0 %v5594_v7  ;;  %3101 = vmatprep.subr.bf16.mxu1 %v5597_v8  ;;  %v5721_v6 = vld [vmem:[#allocation10 + $0x1a0] ss:$8 sps:$4 sm:$0xff]   ;;  %v5729_v7 = vld [vmem:[#allocation10 + $0x94] ss:$8 sps:$4 sm:$0xff]  }
  0xf3   : > { %v5734_v8 = vld [vmem:[#allocation10 + $0x194] ss:$8 sps:$4 sm:$0xff]  }
  0xf5   : > { %2829 = vmatpush1.bf16.msra.mxu0 %v5592_v9  ;;  %3102 = vmatpush1.bf16.msra.mxu1 %v5595_v10  ;;  %v5621_v9 = vld [vmem:[%s6690_s21 + $0x70] ss:$8 sps:$4 sm:$0xff]   ;;  %v5625_v10 = vld [vmem:[%s6700_s30 + $0x4] ss:$8 sps:$4 sm:$0xff]   ;;  %s4704_s21 = sshll.u32 %s7128_s24, 4  ;;  %s7504_s21 = int_to_ptr.vmem [resolvable:$true] %s4704_s21 }
  0xf6   : > { %2830 = vmatprep.subr.bf16.mxu0 %v5603_v11  ;;  %3103 = vmatprep.subr.bf16.mxu1 %v5608_v12  ;;  %v5727_v11 = vld [vmem:[#allocation10 + $0x90] ss:$8 sps:$4 sm:$0xff]   ;;  %s6208_s29 = scalar_lea.vmem %s7504_s21, 2048  ;;  %p6215_p2 = scmp.lt.s32.totalorder %s7504_s21, %s6213_s1 }
  0xf7   : > { %1639 = vmatmul.mubr.bf16.gmra.mxu0 %v5579_v13  ;;  %1912 = vmatmul.mubr.bf16.gmra.mxu1 %v5579_v13  ;;  %v5732_v12 = vld [vmem:[#allocation10 + $0x190] ss:$8 sps:$4 sm:$0xff]   ;;  %v5630_v13 = vld [vmem:[%s6700_s30] ss:$8 sps:$4 sm:$0xff]   ;;  %p6209_p0 = scmp.ne.s32.totalorder %s7504_s21, %s6208_s29  ;;  %p6216_p3 = scmp.lt.s32.totalorder %s6214_s16, %s6208_s29 }
  0xf8   : > { %1648 = vmatprep.mubr.bf16.mxu0 %v5583_v14  ;;  %1921 = vmatprep.mubr.bf16.mxu1 %v5583_v14  ;;  %v5631_v14 = vld [vmem:[%s6700_s30 + $0x14] ss:$8 sps:$4 sm:$0xff]  }
  0xf9   : > { %2831 = vmatpush1.bf16.msra.mxu0 %v5601_v15  ;;  %3104 = vmatpush1.bf16.msra.mxu1 %v5606_v16  ;;  %v5736_v15 = vld [vmem:[#allocation10 + $0x80] ss:$8 sps:$4 sm:$0xff]   ;;  %v5738_v16 = vld [vmem:[#allocation10 + $0x84] ss:$8 sps:$4 sm:$0xff]   ;;  %p6210_p13 = pnand %p6209_p0, %p7912_p7  ;;  %p6217_p8 = por %p6216_p3, %p6215_p2 }
  0xfa   : > { %2832 = vmatprep.subr.bf16.mxu0 %v5615_v17  ;;  %3105 = vmatprep.subr.bf16.mxu1 %v5618_v18  ;;  %v5633_v17 = vld [vmem:[%s6700_s30 + $0x10] ss:$8 sps:$4 sm:$0xff]   ;;  %v5640_v18 = vld [vmem:[%s6700_s30 + $0x24] ss:$8 sps:$4 sm:$0xff]  }
  0xfb   : > { %p6211_p1 = pneg %p6210_p13 }
  0xfd   : > { %2833 = vmatpush1.bf16.msra.mxu0 %v5613_v19  ;;  %3106 = vmatpush1.bf16.msra.mxu1 %v5616_v20  ;;  %v5741_v19 = vld [vmem:[#allocation10 + $0x184] ss:$8 sps:$4 sm:$0xff]   ;;  %v5739_v20 = vld [vmem:[#allocation10 + $0x180] ss:$8 sps:$4 sm:$0xff]   ;;  %p6218_p9 = pnand %p6217_p8, %p6211_p1 }
  0xfe   : > { %2834 = vmatprep.subr.bf16.mxu0 %v5624_v21  ;;  %3107 = vmatprep.subr.bf16.mxu1 %v5629_v22  ;;  %v5642_v21 = vld [vmem:[%s6700_s30 + $0x20] ss:$8 sps:$4 sm:$0xff]   ;;  %v5646_v22 = vld [vmem:[%s6700_s30 + $0x34] ss:$8 sps:$4 sm:$0xff]  }
  0xff   : > { %1649 = vmatmul.mubr.bf16.gmra.mxu0 %v5588_v23  ;;  %1922 = vmatmul.mubr.bf16.gmra.mxu1 %v5588_v23  ;;  %v5651_v23 = vld [vmem:[%s6700_s30 + $0x30] ss:$8 sps:$4 sm:$0xff]  }
 0x100   : > { %1658 = vmatprep.mubr.bf16.mxu0 %v5589_v24  ;;  %1931 = vmatprep.mubr.bf16.mxu1 %v5589_v24  ;;  %v5652_v24 = vld [vmem:[%s6700_s30 + $0x44] ss:$8 sps:$4 sm:$0xff]  }
 0x101   : > { %2835 = vmatpush1.bf16.msra.mxu0 %v5622_v25  ;;  %3108 = vmatpush1.bf16.msra.mxu1 %v5627_v26  ;;  %v5654_v25 = vld [vmem:[%s6700_s30 + $0x40] ss:$8 sps:$4 sm:$0xff]   ;;  %v5661_v26 = vld [vmem:[%s6700_s30 + $0x54] ss:$8 sps:$4 sm:$0xff]  }
 0x102   : > { %2836 = vmatprep.subr.bf16.mxu0 %v5636_v27  ;;  %3109 = vmatprep.subr.bf16.mxu1 %v5639_v28  ;;  %v5663_v27 = vld [vmem:[%s6700_s30 + $0x50] ss:$8 sps:$4 sm:$0xff]   ;;  %v5667_v28 = vld [vmem:[%s6700_s30 + $0x64] ss:$8 sps:$4 sm:$0xff]  }
 0x105   : > { %2837 = vmatpush1.bf16.msra.mxu0 %v5634_v29  ;;  %3110 = vmatpush1.bf16.msra.mxu1 %v5637_v30  ;;  %v5672_v29 = vld [vmem:[%s6700_s30 + $0x60] ss:$8 sps:$4 sm:$0xff]   ;;  %v5673_v30 = vld [vmem:[%s6700_s30 + $0x74] ss:$8 sps:$4 sm:$0xff]  }
 0x106   : > { %2838 = vmatprep.subr.bf16.mxu0 %v5645_v31  ;;  %3111 = vmatprep.subr.bf16.mxu1 %v5650_v32  ;;  %v5675_v31 = vld [vmem:[%s6700_s30 + $0x70] ss:$8 sps:$4 sm:$0xff]   ;;  %v5682_v32 = vld [vmem:[%s6707_s3 + $0x4] ss:$8 sps:$4 sm:$0xff]  }
 0x107   : > { %1659 = vmatmul.mubr.bf16.gmra.mxu0 %v5591_v33  ;;  %1932 = vmatmul.mubr.bf16.gmra.mxu1 %v5591_v33  ;;  %v5684_v33 = vld [vmem:[%s6707_s3] ss:$8 sps:$4 sm:$0xff]  }
 0x108   : > { %1668 = vmatprep.mubr.bf16.mxu0 %v5598_v34  ;;  %1941 = vmatprep.mubr.bf16.mxu1 %v5598_v34  ;;  %v5688_v34 = vld [vmem:[%s6707_s3 + $0x14] ss:$8 sps:$4 sm:$0xff]  }
 0x109   : > { %2839 = vmatpush1.bf16.msra.mxu0 %v5643_v35  ;;  %3112 = vmatpush1.bf16.msra.mxu1 %v5648_v36  ;;  %v5693_v35 = vld [vmem:[%s6707_s3 + $0x10] ss:$8 sps:$4 sm:$0xff]   ;;  %v5694_v36 = vld [vmem:[%s6707_s3 + $0x24] ss:$8 sps:$4 sm:$0xff]  }
 0x10a   : > { %2840 = vmatprep.subr.bf16.mxu0 %v5657_v37  ;;  %3113 = vmatprep.subr.bf16.mxu1 %v5660_v38  ;;  %v5696_v37 = vld [vmem:[%s6707_s3 + $0x20] ss:$8 sps:$4 sm:$0xff]   ;;  %v5703_v38 = vld [vmem:[%s6707_s3 + $0x34] ss:$8 sps:$4 sm:$0xff]  }
 0x10d   : > { %2841 = vmatpush1.bf16.msra.mxu0 %v5655_v39  ;;  %3114 = vmatpush1.bf16.msra.mxu1 %v5658_v40  ;;  %v5744_v39 = vld [vmem:[#allocation11 + $0x74] ss:$8 sps:$4 sm:$0xff]   ;;  %v5705_v40 = vld [vmem:[%s6707_s3 + $0x30] ss:$8 sps:$4 sm:$0xff]  }
 0x10e   : > { %2842 = vmatprep.subr.bf16.mxu0 %v5666_v41  ;;  %3115 = vmatprep.subr.bf16.mxu1 %v5671_v42  ;;  %v5709_v41 = vld [vmem:[%s6707_s3 + $0x44] ss:$8 sps:$4 sm:$0xff]   ;;  %v5714_v42 = vld [vmem:[%s6707_s3 + $0x40] ss:$8 sps:$4 sm:$0xff]  }
 0x10f   : > { %1669 = vmatmul.mubr.bf16.gmra.mxu0 %v5600_v43  ;;  %1942 = vmatmul.mubr.bf16.gmra.mxu1 %v5600_v43  ;;  %v5715_v43 = vld [vmem:[%s6707_s3 + $0x54] ss:$8 sps:$4 sm:$0xff]  }
 0x110   : > { %1678 = vmatprep.mubr.bf16.mxu0 %v5604_v44  ;;  %1951 = vmatprep.mubr.bf16.mxu1 %v5604_v44  ;;  %v5717_v44 = vld [vmem:[%s6707_s3 + $0x50] ss:$8 sps:$4 sm:$0xff]  }
 0x111   : > { %2843 = vmatpush2.bf16.msra.mxu0 %v5664_v45  ;;  %3116 = vmatpush2.bf16.msra.mxu1 %v5669_v46  ;;  %v5724_v45 = vld [vmem:[%s6707_s3 + $0x64] ss:$8 sps:$4 sm:$0xff]   ;;  %v5726_v46 = vld [vmem:[%s6707_s3 + $0x60] ss:$8 sps:$4 sm:$0xff]  }
 0x112   : > { %2844 = vmatprep.subr.bf16.mxu0 %v5678_v47  ;;  %3117 = vmatprep.subr.bf16.mxu1 %v5681_v48  ;;  %v5730_v47 = vld [vmem:[%s6707_s3 + $0x74] ss:$8 sps:$4 sm:$0xff]   ;;  %v5735_v48 = vld [vmem:[%s6707_s3 + $0x70] ss:$8 sps:$4 sm:$0xff]   ;;  %s7911_s3 = sld [smem:[#allocation55_spill]] }
 0x115   : > { %2845 = vmatpush2.bf16.msra.mxu0 %v5676_v49  ;;  %3118 = vmatpush2.bf16.msra.mxu1 %v5679_v50  ;;  %v7794_v49 = vlaneseq }
 0x116   : > { %2846 = vmatprep.subr.bf16.mxu0 %v5687_v51  ;;  %3119 = vmatprep.subr.bf16.mxu1 %v5692_v52 }
 0x117   : > { %1679 = vmatmul.mubr.bf16.gmra.mxu0 %v5609_v53  ;;  %1952 = vmatmul.mubr.bf16.gmra.mxu1 %v5609_v53  ;;  %v6766_v50 = vshrl.u32 %v7794_v49, 7 }
 0x118   : > { %1688 = vmatprep.mubr.bf16.mxu0 %v5610_v54  ;;  %1961 = vmatprep.mubr.bf16.mxu1 %v5610_v54  ;;  %s7510_s14 = scalar_lea.hbm %s7911_s3, %s7495_s28 }
 0x119   : > { %2847 = vmatpush2.bf16.msra.mxu0 %v5685_v55  ;;  %3120 = vmatpush2.bf16.msra.mxu1 %v5690_v56  ;;  %v6769_v51 = vsub.s32 1, %v6766_v50  ;;  %v1057_v52 = vsub.s32 3, %v6766_v50  ;;  %v6773_v53 = vsub.s32 0, %v6766_v50  ;;  %v1053_v54 = vsub.s32 2, %v6766_v50  ;;  %v1040_v55 = vld [vmem:[%s7763_s4] sm:$0xf] }
 0x11a   : > { %2848 = vmatprep.subr.bf16.mxu0 %v5699_v57  ;;  %3121 = vmatprep.subr.bf16.mxu1 %v5702_v58 }
 0x11b   : > { %v6780_v58 = vrot.slane %v1040_v55, %v6769_v51 }
 0x11d   : > { %2849 = vmatpush2.bf16.msra.mxu0 %v5697_v59  ;;  %3122 = vmatpush2.bf16.msra.mxu1 %v5700_v61  ;;  %v6784_v59 = vrot.slane %v1040_v55, %v1057_v52  ;;  %v6791_v61 = vrot.slane %v1040_v55, %v1053_v54 }
 0x11e   : > { %2850 = vmatprep.subr.bf16.mxu0 %v5708_v63  ;;  %3123 = vmatprep.subr.bf16.mxu1 %v5713_v0 }
 0x11f   : > { %1689 = vmatmul.mubr.bf16.gmra.mxu0 %v5612_v60  ;;  %1962 = vmatmul.mubr.bf16.gmra.mxu1 %v5612_v60  ;;  %v6787_v60 = vrot.slane %v1040_v55, %v6773_v53 }
 0x120   : > { %1698 = vmatprep.mubr.bf16.mxu0 %v5619_v62  ;;  %1971 = vmatprep.mubr.bf16.mxu1 %v5619_v62 }
 0x121   : > { %2851 = vmatpush2.bf16.msra.mxu0 %v5706_v1  ;;  %3124 = vmatpush2.bf16.msra.mxu1 %v5711_v2 }
 0x122   : > { %2852 = vmatprep.subr.bf16.mxu0 %v5720_v3  ;;  %3125 = vmatprep.subr.bf16.mxu1 %v5723_v4 }
 0x125   : > { %2853 = vmatpush2.bf16.msra.mxu0 %v5718_v5  ;;  %3126 = vmatpush2.bf16.msra.mxu1 %v5721_v6 }
 0x126   : > { %2854 = vmatprep.subr.bf16.mxu0 %v5729_v7  ;;  %3127 = vmatprep.subr.bf16.mxu1 %v5734_v8 }
 0x127   : > { %1699 = vmatmul.mubr.bf16.gmra.mxu0 %v5621_v9  ;;  %1972 = vmatmul.mubr.bf16.gmra.mxu1 %v5621_v9 }
 0x128   : > { %1708 = vmatprep.mubr.bf16.mxu0 %v5625_v10  ;;  %1981 = vmatprep.mubr.bf16.mxu1 %v5625_v10 }
 0x129   : > { %2855 = vmatpush2.bf16.msra.mxu0 %v5727_v11  ;;  %3128 = vmatpush2.bf16.msra.mxu1 %v5732_v12 }
 0x12a   : > { %2856 = vmatprep.subr.bf16.mxu0 %v5738_v16  ;;  %3129 = vmatprep.subr.bf16.mxu1 %v5741_v19 }
 0x12d   : > { %2857 = vmatpush2.bf16.msra.mxu0 %v5736_v15  ;;  %3130 = vmatpush2.bf16.msra.mxu1 %v5739_v20 }
 0x12e   : > { %4396 = vmatprep.subr.bf16.mxu0 %v5744_v39  ;;  %5338 = vmatprep.subr.bf16.mxu1 %v5744_v39 }
 0x12f   : > { %1709 = vmatmul.mubr.bf16.gmra.mxu0 %v5630_v13  ;;  %1982 = vmatmul.mubr.bf16.gmra.mxu1 %v5630_v13 }
 0x130   : > { %1718 = vmatprep.mubr.bf16.mxu0 %v5631_v14  ;;  %1991 = vmatprep.mubr.bf16.mxu1 %v5631_v14 }
 0x137   : > { %1719 = vmatmul.mubr.bf16.gmra.mxu0 %v5633_v17  ;;  %1992 = vmatmul.mubr.bf16.gmra.mxu1 %v5633_v17 }
 0x138   : > { %1728 = vmatprep.mubr.bf16.mxu0 %v5640_v18  ;;  %2001 = vmatprep.mubr.bf16.mxu1 %v5640_v18 }
 0x13f   : > { %1729 = vmatmul.mubr.bf16.gmra.mxu0 %v5642_v21  ;;  %2002 = vmatmul.mubr.bf16.gmra.mxu1 %v5642_v21 }
 0x140   : > { %1738 = vmatprep.mubr.bf16.mxu0 %v5646_v22  ;;  %2011 = vmatprep.mubr.bf16.mxu1 %v5646_v22 }
 0x147   : > { %1739 = vmatmul.mubr.bf16.gmra.mxu0 %v5651_v23  ;;  %2012 = vmatmul.mubr.bf16.gmra.mxu1 %v5651_v23 }
 0x148   : > { %1748 = vmatprep.mubr.bf16.mxu0 %v5652_v24  ;;  %2021 = vmatprep.mubr.bf16.mxu1 %v5652_v24 }
 0x14f   : > { %1749 = vmatmul.mubr.bf16.gmra.mxu0 %v5654_v25  ;;  %2022 = vmatmul.mubr.bf16.gmra.mxu1 %v5654_v25 }
 0x150   : > { %1758 = vmatprep.mubr.bf16.mxu0 %v5661_v26  ;;  %2031 = vmatprep.mubr.bf16.mxu1 %v5661_v26  ;;  %v5742_v26 = vld [vmem:[#allocation11 + $0x70] ss:$8 sps:$4 sm:$0xff]  }
 0x157   : > { %1759 = vmatmul.mubr.bf16.gmra.mxu0 %v5663_v27  ;;  %2032 = vmatmul.mubr.bf16.gmra.mxu1 %v5663_v27 }
 0x158   : > { %1768 = vmatprep.mubr.bf16.mxu0 %v5667_v28  ;;  %2041 = vmatprep.mubr.bf16.mxu1 %v5667_v28 }
 0x15f   : > { %1769 = vmatmul.mubr.bf16.gmra.mxu0 %v5672_v29  ;;  %2042 = vmatmul.mubr.bf16.gmra.mxu1 %v5672_v29 }
 0x160   : > { %1778 = vmatprep.mubr.bf16.mxu0 %v5673_v30  ;;  %2051 = vmatprep.mubr.bf16.mxu1 %v5673_v30 }
 0x167   : > { %1779 = vmatmul.mubr.bf16.gmra.mxu0 %v5675_v31  ;;  %2052 = vmatmul.mubr.bf16.gmra.mxu1 %v5675_v31 }
 0x168   : > { %1788 = vmatprep.mubr.bf16.mxu0 %v5682_v32  ;;  %2061 = vmatprep.mubr.bf16.mxu1 %v5682_v32  ;;  %v5747_v32 = vld [vmem:[#allocation11 + $0x64] ss:$8 sps:$4 sm:$0xff]  }
 0x16f   : > { %1789 = vmatmul.mubr.bf16.gmra.mxu0 %v5684_v33  ;;  %2062 = vmatmul.mubr.bf16.gmra.mxu1 %v5684_v33 }
 0x170   : > { %1798 = vmatprep.mubr.bf16.mxu0 %v5688_v34  ;;  %2071 = vmatprep.mubr.bf16.mxu1 %v5688_v34 }
 0x177   : > { %1799 = vmatmul.mubr.bf16.gmra.mxu0 %v5693_v35  ;;  %2072 = vmatmul.mubr.bf16.gmra.mxu1 %v5693_v35 }
 0x178   : > { %1808 = vmatprep.mubr.bf16.mxu0 %v5694_v36  ;;  %2081 = vmatprep.mubr.bf16.mxu1 %v5694_v36 }
 0x17f   : > { %1809 = vmatmul.mubr.bf16.gmra.mxu0 %v5696_v37  ;;  %2082 = vmatmul.mubr.bf16.gmra.mxu1 %v5696_v37 }
 0x180   : > { %1818 = vmatprep.mubr.bf16.mxu0 %v5703_v38  ;;  %2091 = vmatprep.mubr.bf16.mxu1 %v5703_v38 }
 0x187   : > { %1819 = vmatmul.mubr.bf16.gmra.mxu0 %v5705_v40  ;;  %2092 = vmatmul.mubr.bf16.gmra.mxu1 %v5705_v40 }
 0x188   : > { %1828 = vmatprep.mubr.bf16.mxu0 %v5709_v41  ;;  %2101 = vmatprep.mubr.bf16.mxu1 %v5709_v41 }
 0x18f   : > { %1829 = vmatmul.mubr.bf16.gmra.mxu0 %v5714_v42  ;;  %2102 = vmatmul.mubr.bf16.gmra.mxu1 %v5714_v42  ;;  %v5745_v42 = vld [vmem:[#allocation11 + $0x60] ss:$8 sps:$4 sm:$0xff]  }
 0x190   : > { %1838 = vmatprep.mubr.bf16.mxu0 %v5715_v43  ;;  %2111 = vmatprep.mubr.bf16.mxu1 %v5715_v43 }
 0x197   : > { %1839 = vmatmul.mubr.bf16.gmra.mxu0 %v5717_v44  ;;  %2112 = vmatmul.mubr.bf16.gmra.mxu1 %v5717_v44 }
 0x198   : > { %1848 = vmatprep.mubr.bf16.mxu0 %v5724_v45  ;;  %2121 = vmatprep.mubr.bf16.mxu1 %v5724_v45 }
 0x19f   : > { %1849 = vmatmul.mubr.bf16.gmra.mxu0 %v5726_v46  ;;  %2122 = vmatmul.mubr.bf16.gmra.mxu1 %v5726_v46 }
 0x1a0   : > { %1858 = vmatprep.mubr.bf16.mxu0 %v5730_v47  ;;  %2131 = vmatprep.mubr.bf16.mxu1 %v5730_v47  ;;  %v5750_v47 = vld [vmem:[#allocation11 + $0x54] ss:$8 sps:$4 sm:$0xff]  }
 0x1a7   : > { %1859 = vmatmul.mubr.bf16.gmra.mxu0 %v5735_v48  ;;  %2132 = vmatmul.mubr.bf16.gmra.mxu1 %v5735_v48 }
 0x1af   : > { %v1630_v56 = vpop.f32.mrf.mxu0  ;;  %v1903_v57 = vpop.f32.mrf.mxu1 }
 0x1b0   : > { %v1631_v6 = vadd.f32 %v1630_v56, %v6787_v60  ;;  %v1904_v7 = vadd.f32 %v1903_v57, %v6791_v61 }
 0x1b1   : > { %v1632_v62 = vpop.f32.mrf.mxu0  ;;  %v1905_v63 = vpop.f32.mrf.mxu1 }
 0x1b2   : > { %v1633_v2 = vadd.f32 %v1632_v62, %v6780_v58  ;;  %v1906_v3 = vadd.f32 %v1905_v63, %v6784_v59  ;;  %v2142_v20 = vmax.f32 %v1631_v6, 0.0  ;;  %v2144_v21 = vmax.f32 %v1904_v7, 0.0 }
 0x1b3   : > { %v1634_v0 = vpop.f32.mrf.mxu0  ;;  %v1907_v1 = vpop.f32.mrf.mxu1 }
 0x1b4   : > { %v1635_v4 = vadd.f32 %v1634_v0, %v6787_v60  ;;  %v1908_v5 = vadd.f32 %v1907_v1, %v6791_v61  ;;  %v2143_v16 = vmax.f32 %v1633_v2, 0.0  ;;  %v2145_v17 = vmax.f32 %v1906_v3, 0.0 }
 0x1b5   : > { %v1636_v8 = vpop.f32.mrf.mxu0  ;;  %v1909_v9 = vpop.f32.mrf.mxu1 }
 0x1b6   : > { %v1637_v10 = vadd.f32 %v1636_v8, %v6780_v58  ;;  %v1910_v11 = vadd.f32 %v1909_v9, %v6784_v59  ;;  %v2146_v12 = vmax.f32 %v1635_v4, 0.0  ;;  %v2148_v13 = vmax.f32 %v1908_v5, 0.0  ;;  %v5748_v4 = vld [vmem:[#allocation11 + $0x50] ss:$8 sps:$4 sm:$0xff]  }
 0x1b7   : > { %v1640_v14 = vpop.f32.mrf.mxu0  ;;  %v1913_v15 = vpop.f32.mrf.mxu1 }
 0x1b8   : > { %v2147_v18 = vmax.f32 %v1637_v10, 0.0  ;;  %v2149_v19 = vmax.f32 %v1910_v11, 0.0  ;;  %v2334_v27 = vpack.c.bf16 %v2146_v12, %v2142_v20  ;;  %v2336_v28 = vpack.c.bf16 %v2148_v13, %v2144_v21  ;;  %v5753_v10 = vld [vmem:[#allocation11 + $0x44] ss:$8 sps:$4 sm:$0xff]   ;;  %v5751_v20 = vld [vmem:[#allocation11 + $0x40] ss:$8 sps:$4 sm:$0xff]  }
 0x1b9   : > { %v1642_v22 = vpop.f32.mrf.mxu0  ;;  %v1915_v23 = vpop.f32.mrf.mxu1  ;;  %v1641_v36 = vadd.f32 %v1640_v14, %v6787_v60  ;;  %v1914_v37 = vadd.f32 %v1913_v15, %v6791_v61 }
 0x1ba   : > { %v2335_v24 = vpack.c.bf16 %v2147_v18, %v2143_v16  ;;  %v2337_v25 = vpack.c.bf16 %v2149_v19, %v2145_v17  ;;  %v1643_v29 = vadd.f32 %v1642_v22, %v6780_v58  ;;  %v1916_v33 = vadd.f32 %v1915_v23, %v6784_v59 }
 0x1bb   : > { %v1644_v30 = vpop.f32.mrf.mxu0  ;;  %v1917_v31 = vpop.f32.mrf.mxu1  ;;  %v2150_v62 = vmax.f32 %v1641_v36, 0.0  ;;  %v2152_v63 = vmax.f32 %v1914_v37, 0.0  ;;  %v5754_v36 = vld [vmem:[#allocation11 + $0x30] ss:$8 sps:$4 sm:$0xff]  }
 0x1bc   : > { %v1645_v34 = vadd.f32 %v1644_v30, %v6787_v60  ;;  %v1918_v35 = vadd.f32 %v1917_v31, %v6791_v61  ;;  %2858 = vmatprep.mubr.bf16.mxu0 %v2335_v24  ;;  %3131 = vmatprep.mubr.bf16.mxu1 %v2337_v25  ;;  %v2151_v48 = vmax.f32 %v1643_v29, 0.0  ;;  %v2153_v55 = vmax.f32 %v1916_v33, 0.0  ;;  %v5756_v25 = vld [vmem:[#allocation11 + $0x34] ss:$8 sps:$4 sm:$0xff]  }
 0x1bd   : > { %v1646_v38 = vpop.f32.mrf.mxu0  ;;  %v1919_v39 = vpop.f32.mrf.mxu1  ;;  %2859 = vmatmul.mubr.bf16.vlgmr.msra.gmra.mxu0 %v2334_v27  ;;  %3132 = vmatmul.mubr.bf16.vlgmr.msra.gmra.mxu1 %v2336_v28 }
 0x1be   : > { %v1647_v40 = vadd.f32 %v1646_v38, %v6780_v58  ;;  %v1920_v41 = vadd.f32 %v1919_v39, %v6784_v59  ;;  %4397 = vmatpush1.bf16.msra.mxu0 %v5742_v26  ;;  %5354 = vmatpush1.bf16.msra.mxu1 %v5742_v26  ;;  %v2154_v43 = vmax.f32 %v1645_v34, 0.0  ;;  %v2156_v44 = vmax.f32 %v1918_v35, 0.0 }
 0x1bf   : > { %v1650_v45 = vpop.f32.mrf.mxu0  ;;  %v1923_v46 = vpop.f32.mrf.mxu1  ;;  %4398 = vmatprep.subr.bf16.mxu0 %v5747_v32  ;;  %5339 = vmatprep.subr.bf16.mxu1 %v5747_v32 }
 0x1c0   : > { %v2155_v56 = vmax.f32 %v1647_v40, 0.0  ;;  %v2157_v57 = vmax.f32 %v1920_v41, 0.0  ;;  %v2338_v5 = vpack.c.bf16 %v2154_v43, %v2150_v62  ;;  %v2340_v6 = vpack.c.bf16 %v2156_v44, %v2152_v63  ;;  %v5757_v62 = vld [vmem:[#allocation11 + $0x20] ss:$8 sps:$4 sm:$0xff]  }
 0x1c1   : > { %v1652_v0 = vpop.f32.mrf.mxu0  ;;  %v1925_v1 = vpop.f32.mrf.mxu1  ;;  %v1651_v14 = vadd.f32 %v1650_v45, %v6787_v60  ;;  %v1924_v15 = vadd.f32 %v1923_v46, %v6791_v61 }
 0x1c2   : > { %v2339_v2 = vpack.c.bf16 %v2155_v56, %v2151_v48  ;;  %v2341_v3 = vpack.c.bf16 %v2157_v57, %v2153_v55  ;;  %4399 = vmatpush1.bf16.msra.mxu0 %v5745_v42  ;;  %v1653_v7 = vadd.f32 %v1652_v0, %v6780_v58  ;;  %5355 = vmatpush1.bf16.msra.mxu1 %v5745_v42  ;;  %v5759_v42 = vld [vmem:[#allocation11 + $0x24] ss:$8 sps:$4 sm:$0xff]  }
 0x1c3   : > { %v1654_v8 = vpop.f32.mrf.mxu0  ;;  %v1927_v9 = vpop.f32.mrf.mxu1  ;;  %4400 = vmatprep.subr.bf16.mxu0 %v5750_v47  ;;  %v1926_v11 = vadd.f32 %v1925_v1, %v6784_v59  ;;  %5340 = vmatprep.subr.bf16.mxu1 %v5750_v47  ;;  %v2158_v30 = vmax.f32 %v1651_v14, 0.0  ;;  %v2160_v31 = vmax.f32 %v1924_v15, 0.0  ;;  %v5760_v14 = vld [vmem:[#allocation11 + $0x10] ss:$8 sps:$4 sm:$0xff]  }
 0x1c4   : > { %v1655_v12 = vadd.f32 %v1654_v8, %v6787_v60  ;;  %v1928_v13 = vadd.f32 %v1927_v9, %v6791_v61  ;;  %2868 = vmatprep.mubr.bf16.mxu0 %v2339_v2  ;;  %3141 = vmatprep.mubr.bf16.mxu1 %v2341_v3  ;;  %v2159_v26 = vmax.f32 %v1653_v7, 0.0  ;;  %v5762_v3 = vld [vmem:[#allocation11 + $0x14] ss:$8 sps:$4 sm:$0xff]  }
 0x1c5   : > { %v1656_v16 = vpop.f32.mrf.mxu0  ;;  %v1929_v17 = vpop.f32.mrf.mxu1  ;;  %2869 = vmatmul.mubr.bf16.gmra.mxu0 %v2338_v5  ;;  %3142 = vmatmul.mubr.bf16.gmra.mxu1 %v2340_v6  ;;  %v2161_v27 = vmax.f32 %v1926_v11, 0.0 }
 0x1c6   : > { %v1657_v18 = vadd.f32 %v1656_v16, %v6780_v58  ;;  %v1930_v19 = vadd.f32 %v1929_v17, %v6784_v59  ;;  %4401 = vmatpush1.bf16.msra.mxu0 %v5748_v4  ;;  %v2162_v21 = vmax.f32 %v1655_v12, 0.0  ;;  %v2164_v22 = vmax.f32 %v1928_v13, 0.0  ;;  %5356 = vmatpush1.bf16.msra.mxu1 %v5748_v4 }
 0x1c7   : > { %v1660_v23 = vpop.f32.mrf.mxu0  ;;  %v1933_v24 = vpop.f32.mrf.mxu1  ;;  %4402 = vmatprep.subr.bf16.mxu0 %v5753_v10  ;;  %5341 = vmatprep.subr.bf16.mxu1 %v5753_v10 }
 0x1c8   : > { %v2163_v28 = vmax.f32 %v1657_v18, 0.0  ;;  %v2165_v29 = vmax.f32 %v1930_v19, 0.0  ;;  %v2342_v37 = vpack.c.bf16 %v2162_v21, %v2158_v30  ;;  %v2344_v38 = vpack.c.bf16 %v2164_v22, %v2160_v31  ;;  %v5763_v30 = vld [vmem:[#allocation11] ss:$8 sps:$4 sm:$0xff]  }
 0x1c9   : > { %v1662_v32 = vpop.f32.mrf.mxu0  ;;  %v1935_v33 = vpop.f32.mrf.mxu1  ;;  %v1661_v46 = vadd.f32 %v1660_v23, %v6787_v60  ;;  %v1934_v47 = vadd.f32 %v1933_v24, %v6791_v61 }
 0x1ca   : > { %v2343_v34 = vpack.c.bf16 %v2163_v28, %v2159_v26  ;;  %v2345_v35 = vpack.c.bf16 %v2165_v29, %v2161_v27  ;;  %4403 = vmatpush1.bf16.msra.mxu0 %v5751_v20  ;;  %v1663_v39 = vadd.f32 %v1662_v32, %v6780_v58  ;;  %5357 = vmatpush1.bf16.msra.mxu1 %v5751_v20  ;;  %v5765_v20 = vld [vmem:[#allocation11 + $0x4] ss:$8 sps:$4 sm:$0xff]  }
 0x1cb   : > { %v1664_v40 = vpop.f32.mrf.mxu0  ;;  %v1937_v41 = vpop.f32.mrf.mxu1  ;;  %4404 = vmatprep.subr.bf16.mxu0 %v5756_v25  ;;  %v1936_v43 = vadd.f32 %v1935_v33, %v6784_v59  ;;  %5342 = vmatprep.subr.bf16.mxu1 %v5756_v25  ;;  %v2166_v8 = vmax.f32 %v1661_v46, 0.0  ;;  %v2168_v9 = vmax.f32 %v1934_v47, 0.0 }
 0x1cc   : > { %v1665_v44 = vadd.f32 %v1664_v40, %v6787_v60  ;;  %v1938_v45 = vadd.f32 %v1937_v41, %v6791_v61  ;;  %2878 = vmatprep.mubr.bf16.mxu0 %v2343_v34  ;;  %3151 = vmatprep.mubr.bf16.mxu1 %v2345_v35  ;;  %v2167_v4 = vmax.f32 %v1663_v39, 0.0 }
 0x1cd   : > { %v1666_v48 = vpop.f32.mrf.mxu0  ;;  %v1939_v55 = vpop.f32.mrf.mxu1  ;;  %2879 = vmatmul.mubr.bf16.gmra.mxu0 %v2342_v37  ;;  %3152 = vmatmul.mubr.bf16.gmra.mxu1 %v2344_v38  ;;  %v2169_v5 = vmax.f32 %v1936_v43, 0.0 }
 0x1ce   : > { %v1667_v56 = vadd.f32 %v1666_v48, %v6780_v58  ;;  %v1940_v57 = vadd.f32 %v1939_v55, %v6784_v59  ;;  %4405 = vmatpush1.bf16.msra.mxu0 %v5754_v36  ;;  %v2170_v63 = vmax.f32 %v1665_v44, 0.0  ;;  %v2172_v0 = vmax.f32 %v1938_v45, 0.0  ;;  %5358 = vmatpush1.bf16.msra.mxu1 %v5754_v36 }
 0x1cf   : > { %v1670_v1 = vpop.f32.mrf.mxu0  ;;  %v1943_v2 = vpop.f32.mrf.mxu1  ;;  %4406 = vmatprep.subr.bf16.mxu0 %v5759_v42  ;;  %5343 = vmatprep.subr.bf16.mxu1 %v5759_v42 }
 0x1d0   : > { %v2171_v6 = vmax.f32 %v1667_v56, 0.0  ;;  %v2173_v7 = vmax.f32 %v1940_v57, 0.0  ;;  %v2346_v15 = vpack.c.bf16 %v2170_v63, %v2166_v8  ;;  %v2348_v16 = vpack.c.bf16 %v2172_v0, %v2168_v9 }
 0x1d1   : > { %v1672_v10 = vpop.f32.mrf.mxu0  ;;  %v1945_v11 = vpop.f32.mrf.mxu1  ;;  %v1671_v24 = vadd.f32 %v1670_v1, %v6787_v60  ;;  %v1944_v25 = vadd.f32 %v1943_v2, %v6791_v61 }
 0x1d2   : > { %v2347_v12 = vpack.c.bf16 %v2171_v6, %v2167_v4  ;;  %v2349_v13 = vpack.c.bf16 %v2173_v7, %v2169_v5  ;;  %4407 = vmatpush1.bf16.msra.mxu0 %v5757_v62  ;;  %v1673_v17 = vadd.f32 %v1672_v10, %v6780_v58  ;;  %5359 = vmatpush1.bf16.msra.mxu1 %v5757_v62 }
 0x1d3   : > { %v1674_v18 = vpop.f32.mrf.mxu0  ;;  %v1947_v19 = vpop.f32.mrf.mxu1  ;;  %4408 = vmatprep.subr.bf16.mxu0 %v5762_v3  ;;  %v1946_v21 = vadd.f32 %v1945_v11, %v6784_v59  ;;  %5344 = vmatprep.subr.bf16.mxu1 %v5762_v3  ;;  %v2174_v39 = vmax.f32 %v1671_v24, 0.0  ;;  %v2176_v40 = vmax.f32 %v1944_v25, 0.0 }
 0x1d4   : > { %v1675_v22 = vadd.f32 %v1674_v18, %v6787_v60  ;;  %v1948_v23 = vadd.f32 %v1947_v19, %v6791_v61  ;;  %2888 = vmatprep.mubr.bf16.mxu0 %v2347_v12  ;;  %3161 = vmatprep.mubr.bf16.mxu1 %v2349_v13  ;;  %v2175_v35 = vmax.f32 %v1673_v17, 0.0  ;;  %v5766_v13 = vld [vmem:[#allocation11 + $0xf0] ss:$8 sps:$4 sm:$0xff]  }
 0x1d5   : > { %v1676_v26 = vpop.f32.mrf.mxu0  ;;  %v1949_v27 = vpop.f32.mrf.mxu1  ;;  %2889 = vmatmul.mubr.bf16.gmra.mxu0 %v2346_v15  ;;  %3162 = vmatmul.mubr.bf16.gmra.mxu1 %v2348_v16  ;;  %v2177_v36 = vmax.f32 %v1946_v21, 0.0 }
 0x1d6   : > { %v1677_v28 = vadd.f32 %v1676_v26, %v6780_v58  ;;  %v1950_v29 = vadd.f32 %v1949_v27, %v6784_v59  ;;  %4409 = vmatpush1.bf16.msra.mxu0 %v5760_v14  ;;  %v2178_v31 = vmax.f32 %v1675_v22, 0.0  ;;  %v2180_v32 = vmax.f32 %v1948_v23, 0.0  ;;  %5360 = vmatpush1.bf16.msra.mxu1 %v5760_v14  ;;  %v5768_v14 = vld [vmem:[#allocation11 + $0xf4] ss:$8 sps:$4 sm:$0xff]  }
 0x1d7   : > { %v1680_v33 = vpop.f32.mrf.mxu0  ;;  %v1953_v34 = vpop.f32.mrf.mxu1  ;;  %4410 = vmatprep.subr.bf16.mxu0 %v5765_v20  ;;  %5345 = vmatprep.subr.bf16.mxu1 %v5765_v20 }
 0x1d8   : > { %v2179_v37 = vmax.f32 %v1677_v28, 0.0  ;;  %v2181_v38 = vmax.f32 %v1950_v29, 0.0  ;;  %v2350_v45 = vpack.c.bf16 %v2178_v31, %v2174_v39  ;;  %v2352_v46 = vpack.c.bf16 %v2180_v32, %v2176_v40 }
 0x1d9   : > { %v1682_v41 = vpop.f32.mrf.mxu0  ;;  %v1955_v42 = vpop.f32.mrf.mxu1  ;;  %v1681_v63 = vadd.f32 %v1680_v33, %v6787_v60  ;;  %v1954_v0 = vadd.f32 %v1953_v34, %v6791_v61 }
 0x1da   : > { %v2351_v43 = vpack.c.bf16 %v2179_v37, %v2175_v35  ;;  %v2353_v44 = vpack.c.bf16 %v2181_v38, %v2177_v36  ;;  %4411 = vmatpush1.bf16.msra.mxu0 %v5763_v30  ;;  %v1683_v47 = vadd.f32 %v1682_v41, %v6780_v58  ;;  %v1956_v48 = vadd.f32 %v1955_v42, %v6784_v59 }
 0x1db   : > { %v1684_v55 = vpop.f32.mrf.mxu0  ;;  %v1957_v56 = vpop.f32.mrf.mxu1  ;;  %5361 = vmatpush1.bf16.msra.mxu1 %v5763_v30  ;;  %v2182_v15 = vmax.f32 %v1681_v63, 0.0  ;;  %v2184_v16 = vmax.f32 %v1954_v0, 0.0  ;;  %4412 = vmatprep.subr.bf16.mxu0 %v5768_v14 }
 0x1dc   : > { %v1685_v57 = vadd.f32 %v1684_v55, %v6787_v60  ;;  %v1958_v62 = vadd.f32 %v1957_v56, %v6791_v61  ;;  %2898 = vmatprep.mubr.bf16.mxu0 %v2351_v43  ;;  %3171 = vmatprep.mubr.bf16.mxu1 %v2353_v44  ;;  %v2183_v5 = vmax.f32 %v1683_v47, 0.0  ;;  %v2185_v6 = vmax.f32 %v1956_v48, 0.0  ;;  %v5771_v55 = vld [vmem:[#allocation11 + $0xe4] ss:$8 sps:$4 sm:$0xff]  }
 0x1dd   : > { %v1686_v1 = vpop.f32.mrf.mxu0  ;;  %v1959_v2 = vpop.f32.mrf.mxu1  ;;  %2899 = vmatmul.mubr.bf16.gmra.mxu0 %v2350_v45  ;;  %3172 = vmatmul.mubr.bf16.gmra.mxu1 %v2352_v46 }
 0x1de   : > { %v1687_v3 = vadd.f32 %v1686_v1, %v6780_v58  ;;  %v1960_v4 = vadd.f32 %v1959_v2, %v6784_v59  ;;  %v2186_v7 = vmax.f32 %v1685_v57, 0.0  ;;  %v2188_v8 = vmax.f32 %v1958_v62, 0.0  ;;  %4413 = vmatpush2.bf16.msra.mxu0 %v5766_v13  ;;  %5346 = vmatprep.subr.bf16.mxu1 %v5768_v14  ;;  %v5769_v1 = vld [vmem:[#allocation11 + $0xe0] ss:$8 sps:$4 sm:$0xff]  }
 0x1df   : > { %v1690_v9 = vpop.f32.mrf.mxu0  ;;  %v1963_v10 = vpop.f32.mrf.mxu1  ;;  %5362 = vmatpush2.bf16.msra.mxu1 %v5766_v13  ;;  %4414 = vmatprep.subr.bf16.mxu0 %v5771_v55 }
 0x1e0   : > { %v2187_v11 = vmax.f32 %v1687_v3, 0.0  ;;  %v2189_v12 = vmax.f32 %v1960_v4, 0.0  ;;  %v2354_v21 = vpack.c.bf16 %v2186_v7, %v2182_v15  ;;  %v2356_v22 = vpack.c.bf16 %v2188_v8, %v2184_v16  ;;  %5347 = vmatprep.subr.bf16.mxu1 %v5771_v55 }
 0x1e1   : > { %v1692_v17 = vpop.f32.mrf.mxu0  ;;  %v1965_v18 = vpop.f32.mrf.mxu1  ;;  %v1691_v29 = vadd.f32 %v1690_v9, %v6787_v60  ;;  %v1964_v30 = vadd.f32 %v1963_v10, %v6791_v61 }
 0x1e2   : > { %v2355_v19 = vpack.c.bf16 %v2187_v11, %v2183_v5  ;;  %v2357_v20 = vpack.c.bf16 %v2189_v12, %v2185_v6  ;;  %v1693_v23 = vadd.f32 %v1692_v17, %v6780_v58  ;;  %v1966_v26 = vadd.f32 %v1965_v18, %v6784_v59  ;;  %4415 = vmatpush2.bf16.msra.mxu0 %v5769_v1 }
 0x1e3   : > { %v1694_v24 = vpop.f32.mrf.mxu0  ;;  %v1967_v25 = vpop.f32.mrf.mxu1  ;;  %v2190_v43 = vmax.f32 %v1691_v29, 0.0  ;;  %v2192_v44 = vmax.f32 %v1964_v30, 0.0  ;;  %5363 = vmatpush2.bf16.msra.mxu1 %v5769_v1 }
 0x1e4   : > { %v1695_v27 = vadd.f32 %v1694_v24, %v6787_v60  ;;  %v1968_v28 = vadd.f32 %v1967_v25, %v6791_v61  ;;  %2908 = vmatprep.mubr.bf16.mxu0 %v2355_v19  ;;  %3181 = vmatprep.mubr.bf16.mxu1 %v2357_v20  ;;  %v2191_v39 = vmax.f32 %v1693_v23, 0.0  ;;  %v2193_v40 = vmax.f32 %v1966_v26, 0.0 }
 0x1e5   : > { %v1696_v31 = vpop.f32.mrf.mxu0  ;;  %v1969_v32 = vpop.f32.mrf.mxu1  ;;  %2909 = vmatmul.mubr.bf16.gmra.mxu0 %v2354_v21  ;;  %3182 = vmatmul.mubr.bf16.gmra.mxu1 %v2356_v22 }
 0x1e6   : > { %v1697_v33 = vadd.f32 %v1696_v31, %v6780_v58  ;;  %v1970_v34 = vadd.f32 %v1969_v32, %v6784_v59  ;;  %v2194_v35 = vmax.f32 %v1695_v27, 0.0  ;;  %v2196_v36 = vmax.f32 %v1968_v28, 0.0 }
 0x1e7   : > { %v1700_v37 = vpop.f32.mrf.mxu0  ;;  %v1973_v38 = vpop.f32.mrf.mxu1 }
 0x1e8   : > { %v2195_v41 = vmax.f32 %v1697_v33, 0.0  ;;  %v2197_v42 = vmax.f32 %v1970_v34, 0.0  ;;  %v2358_v56 = vpack.c.bf16 %v2194_v35, %v2190_v43  ;;  %v2360_v57 = vpack.c.bf16 %v2196_v36, %v2192_v44  ;;  %v5772_v35 = vld [vmem:[#allocation11 + $0xd0] ss:$8 sps:$4 sm:$0xff]   ;;  %v5774_v36 = vld [vmem:[#allocation11 + $0xd4] ss:$8 sps:$4 sm:$0xff]  }
 0x1e9   : > { %v1702_v45 = vpop.f32.mrf.mxu0  ;;  %v1975_v46 = vpop.f32.mrf.mxu1  ;;  %v1701_v5 = vadd.f32 %v1700_v37, %v6787_v60  ;;  %v1974_v6 = vadd.f32 %v1973_v38, %v6791_v61  ;;  %4416 = vmatprep.subr.bf16.mxu0 %v5774_v36  ;;  %5348 = vmatprep.subr.bf16.mxu1 %v5774_v36 }
 0x1ea   : > { %v2359_v47 = vpack.c.bf16 %v2195_v41, %v2191_v39  ;;  %v2361_v48 = vpack.c.bf16 %v2197_v42, %v2193_v40  ;;  %v1703_v62 = vadd.f32 %v1702_v45, %v6780_v58  ;;  %v1976_v2 = vadd.f32 %v1975_v46, %v6784_v59  ;;  %4417 = vmatpush2.bf16.msra.mxu0 %v5772_v35 }
 0x1eb   : > { %v1704_v63 = vpop.f32.mrf.mxu0  ;;  %v1977_v0 = vpop.f32.mrf.mxu1  ;;  %v2198_v19 = vmax.f32 %v1701_v5, 0.0  ;;  %v2200_v20 = vmax.f32 %v1974_v6, 0.0  ;;  %5364 = vmatpush2.bf16.msra.mxu1 %v5772_v35 }
 0x1ec   : > { %v1705_v3 = vadd.f32 %v1704_v63, %v6787_v60  ;;  %v1978_v4 = vadd.f32 %v1977_v0, %v6791_v61  ;;  %2918 = vmatprep.mubr.bf16.mxu0 %v2359_v47  ;;  %3191 = vmatprep.mubr.bf16.mxu1 %v2361_v48  ;;  %v2199_v15 = vmax.f32 %v1703_v62, 0.0  ;;  %v2201_v16 = vmax.f32 %v1976_v2, 0.0 }
 0x1ed   : > { %v1706_v7 = vpop.f32.mrf.mxu0  ;;  %v1979_v8 = vpop.f32.mrf.mxu1  ;;  %2919 = vmatmul.mubr.bf16.gmra.mxu0 %v2358_v56  ;;  %3192 = vmatmul.mubr.bf16.gmra.mxu1 %v2360_v57 }
 0x1ee   : > { %v1707_v9 = vadd.f32 %v1706_v7, %v6780_v58  ;;  %v1980_v10 = vadd.f32 %v1979_v8, %v6784_v59  ;;  %v2202_v11 = vmax.f32 %v1705_v3, 0.0  ;;  %v2204_v12 = vmax.f32 %v1978_v4, 0.0 }
 0x1ef   : > { %v1710_v13 = vpop.f32.mrf.mxu0  ;;  %v1983_v14 = vpop.f32.mrf.mxu1 }
 0x1f0   : > { %v2203_v17 = vmax.f32 %v1707_v9, 0.0  ;;  %v2205_v18 = vmax.f32 %v1980_v10, 0.0  ;;  %v1711_v21 = vadd.f32 %v1710_v13, %v6787_v60  ;;  %v1984_v23 = vadd.f32 %v1983_v14, %v6791_v61 }
 0x1f1   : > { %v1712_v22 = vpop.f32.mrf.mxu0  ;;  %v1985_v24 = vpop.f32.mrf.mxu1  ;;  %v2362_v28 = vpack.c.bf16 %v2202_v11, %v2198_v19  ;;  %v2364_v29 = vpack.c.bf16 %v2204_v12, %v2200_v20 }
 0x1f2   : > { %v1713_v25 = vadd.f32 %v1712_v22, %v6780_v58  ;;  %v2363_v26 = vpack.c.bf16 %v2203_v17, %v2199_v15  ;;  %v2365_v27 = vpack.c.bf16 %v2205_v18, %v2201_v16  ;;  %v1986_v31 = vadd.f32 %v1985_v24, %v6784_v59 }
 0x1f3   : > { %v1714_v30 = vpop.f32.mrf.mxu0  ;;  %v1987_v32 = vpop.f32.mrf.mxu1  ;;  %v2206_v37 = vmax.f32 %v1711_v21, 0.0  ;;  %v2208_v39 = vmax.f32 %v1984_v23, 0.0 }
 0x1f4   : > { %v1715_v33 = vadd.f32 %v1714_v30, %v6787_v60  ;;  %2928 = vmatprep.mubr.bf16.mxu0 %v2363_v26  ;;  %3201 = vmatprep.mubr.bf16.mxu1 %v2365_v27  ;;  %v1988_v34 = vadd.f32 %v1987_v32, %v6791_v61  ;;  %v2207_v38 = vmax.f32 %v1713_v25, 0.0  ;;  %v2209_v46 = vmax.f32 %v1986_v31, 0.0 }
 0x1f5   : > { %v1716_v40 = vpop.f32.mrf.mxu0  ;;  %2929 = vmatmul.mubr.bf16.gmra.mxu0 %v2362_v28  ;;  %3202 = vmatmul.mubr.bf16.gmra.mxu1 %v2364_v29  ;;  %v1989_v41 = vpop.f32.mrf.mxu1 }
 0x1f6   : > { %v2210_v42 = vmax.f32 %v1715_v33, 0.0  ;;  %v1717_v43 = vadd.f32 %v1716_v40, %v6780_v58  ;;  %v2212_v44 = vmax.f32 %v1988_v34, 0.0  ;;  %v1990_v45 = vadd.f32 %v1989_v41, %v6784_v59 }
 0x1f7   : > { %v1720_v47 = vpop.f32.mrf.mxu0  ;;  %v1993_v48 = vpop.f32.mrf.mxu1 }
 0x1f8   : > { %v2211_v55 = vmax.f32 %v1717_v43, 0.0  ;;  %v2366_v56 = vpack.c.bf16 %v2210_v42, %v2206_v37  ;;  %v1721_v57 = vadd.f32 %v1720_v47, %v6787_v60  ;;  %v2213_v62 = vmax.f32 %v1990_v45, 0.0 }
 0x1f9   : > { %v1722_v63 = vpop.f32.mrf.mxu0  ;;  %v1994_v0 = vadd.f32 %v1993_v48, %v6791_v61  ;;  %v1995_v1 = vpop.f32.mrf.mxu1  ;;  %v2368_v2 = vpack.c.bf16 %v2212_v44, %v2208_v39 }
 0x1fa   : > { %v1723_v3 = vadd.f32 %v1722_v63, %v6780_v58  ;;  %v2367_v4 = vpack.c.bf16 %v2211_v55, %v2207_v38  ;;  %v1996_v6 = vadd.f32 %v1995_v1, %v6784_v59  ;;  %v2369_v8 = vpack.c.bf16 %v2213_v62, %v2209_v46 }
 0x1fb   : > { %v1724_v5 = vpop.f32.mrf.mxu0  ;;  %v1997_v7 = vpop.f32.mrf.mxu1  ;;  %v2214_v11 = vmax.f32 %v1721_v57, 0.0  ;;  %v2216_v13 = vmax.f32 %v1994_v0, 0.0 }
 0x1fc   : > { %v1725_v9 = vadd.f32 %v1724_v5, %v6787_v60  ;;  %2938 = vmatprep.mubr.bf16.mxu0 %v2367_v4  ;;  %v1998_v10 = vadd.f32 %v1997_v7, %v6791_v61  ;;  %v2215_v12 = vmax.f32 %v1723_v3, 0.0  ;;  %3211 = vmatprep.mubr.bf16.mxu1 %v2369_v8  ;;  %v2217_v20 = vmax.f32 %v1996_v6, 0.0 }
 0x1fd   : > { %v1726_v14 = vpop.f32.mrf.mxu0  ;;  %2939 = vmatmul.mubr.bf16.gmra.mxu0 %v2366_v56  ;;  %v1999_v15 = vpop.f32.mrf.mxu1  ;;  %3212 = vmatmul.mubr.bf16.gmra.mxu1 %v2368_v2 }
 0x1fe   : > { %v2218_v16 = vmax.f32 %v1725_v9, 0.0  ;;  %v1727_v17 = vadd.f32 %v1726_v14, %v6780_v58  ;;  %v2220_v18 = vmax.f32 %v1998_v10, 0.0  ;;  %v2000_v19 = vadd.f32 %v1999_v15, %v6784_v59 }
 0x1ff   : > { %v1730_v21 = vpop.f32.mrf.mxu0  ;;  %v2003_v22 = vpop.f32.mrf.mxu1 }
 0x200   : > { %v2219_v23 = vmax.f32 %v1727_v17, 0.0  ;;  %v2370_v24 = vpack.c.bf16 %v2218_v16, %v2214_v11  ;;  %v1731_v25 = vadd.f32 %v1730_v21, %v6787_v60  ;;  %v2221_v26 = vmax.f32 %v2000_v19, 0.0 }
 0x201   : > { %v1732_v27 = vpop.f32.mrf.mxu0  ;;  %v2004_v28 = vadd.f32 %v2003_v22, %v6791_v61  ;;  %v2005_v29 = vpop.f32.mrf.mxu1  ;;  %v2372_v30 = vpack.c.bf16 %v2220_v18, %v2216_v13 }
 0x202   : > { %v1733_v31 = vadd.f32 %v1732_v27, %v6780_v58  ;;  %v2371_v32 = vpack.c.bf16 %v2219_v23, %v2215_v12  ;;  %v2006_v34 = vadd.f32 %v2005_v29, %v6784_v59  ;;  %v2373_v36 = vpack.c.bf16 %v2221_v26, %v2217_v20 }
 0x203   : > { %v1734_v33 = vpop.f32.mrf.mxu0  ;;  %v2007_v35 = vpop.f32.mrf.mxu1  ;;  %v2222_v39 = vmax.f32 %v1731_v25, 0.0  ;;  %v2224_v41 = vmax.f32 %v2004_v28, 0.0 }
 0x204   : > { %v1735_v37 = vadd.f32 %v1734_v33, %v6787_v60  ;;  %2948 = vmatprep.mubr.bf16.mxu0 %v2371_v32  ;;  %v2008_v38 = vadd.f32 %v2007_v35, %v6791_v61  ;;  %v2223_v40 = vmax.f32 %v1733_v31, 0.0  ;;  %3221 = vmatprep.mubr.bf16.mxu1 %v2373_v36  ;;  %v2225_v48 = vmax.f32 %v2006_v34, 0.0 }
 0x205   : > { %v1736_v42 = vpop.f32.mrf.mxu0  ;;  %2949 = vmatmul.mubr.bf16.gmra.mxu0 %v2370_v24  ;;  %v2009_v43 = vpop.f32.mrf.mxu1  ;;  %3222 = vmatmul.mubr.bf16.gmra.mxu1 %v2372_v30 }
 0x206   : > { %v2226_v44 = vmax.f32 %v1735_v37, 0.0  ;;  %v1737_v45 = vadd.f32 %v1736_v42, %v6780_v58  ;;  %v2228_v46 = vmax.f32 %v2008_v38, 0.0  ;;  %v2010_v47 = vadd.f32 %v2009_v43, %v6784_v59 }
 0x207   : > { %v1740_v55 = vpop.f32.mrf.mxu0  ;;  %v2013_v56 = vpop.f32.mrf.mxu1 }
 0x208   : > { %v2227_v57 = vmax.f32 %v1737_v45, 0.0  ;;  %v2374_v62 = vpack.c.bf16 %v2226_v44, %v2222_v39  ;;  %v1741_v63 = vadd.f32 %v1740_v55, %v6787_v60  ;;  %v2229_v0 = vmax.f32 %v2010_v47, 0.0 }
 0x209   : > { %v1742_v1 = vpop.f32.mrf.mxu0  ;;  %v2014_v2 = vadd.f32 %v2013_v56, %v6791_v61  ;;  %v2015_v3 = vpop.f32.mrf.mxu1  ;;  %v2376_v4 = vpack.c.bf16 %v2228_v46, %v2224_v41 }
 0x20a   : > { %v1743_v5 = vadd.f32 %v1742_v1, %v6780_v58  ;;  %v2375_v6 = vpack.c.bf16 %v2227_v57, %v2223_v40  ;;  %v2016_v8 = vadd.f32 %v2015_v3, %v6784_v59  ;;  %v2377_v10 = vpack.c.bf16 %v2229_v0, %v2225_v48  ;;  %v5775_v0 = vld [vmem:[#allocation11 + $0xc0] ss:$8 sps:$4 sm:$0xff]   ;;  %v5777_v1 = vld [vmem:[#allocation11 + $0xc4] ss:$8 sps:$4 sm:$0xff]  }
 0x20b   : > { %v1744_v7 = vpop.f32.mrf.mxu0  ;;  %v2017_v9 = vpop.f32.mrf.mxu1  ;;  %v2230_v13 = vmax.f32 %v1741_v63, 0.0  ;;  %v2232_v15 = vmax.f32 %v2014_v2, 0.0  ;;  %4418 = vmatprep.subr.bf16.mxu0 %v5777_v1  ;;  %5349 = vmatprep.subr.bf16.mxu1 %v5777_v1 }
 0x20c   : > { %v1745_v11 = vadd.f32 %v1744_v7, %v6787_v60  ;;  %2958 = vmatprep.mubr.bf16.mxu0 %v2375_v6  ;;  %v2018_v12 = vadd.f32 %v2017_v9, %v6791_v61  ;;  %v2231_v14 = vmax.f32 %v1743_v5, 0.0  ;;  %3231 = vmatprep.mubr.bf16.mxu1 %v2377_v10  ;;  %v2233_v22 = vmax.f32 %v2016_v8, 0.0 }
 0x20d   : > { %v1746_v16 = vpop.f32.mrf.mxu0  ;;  %2959 = vmatmul.mubr.bf16.gmra.mxu0 %v2374_v62  ;;  %v2019_v17 = vpop.f32.mrf.mxu1  ;;  %3232 = vmatmul.mubr.bf16.gmra.mxu1 %v2376_v4 }
 0x20e   : > { %v2234_v18 = vmax.f32 %v1745_v11, 0.0  ;;  %v1747_v19 = vadd.f32 %v1746_v16, %v6780_v58  ;;  %v2236_v20 = vmax.f32 %v2018_v12, 0.0  ;;  %v2020_v21 = vadd.f32 %v2019_v17, %v6784_v59  ;;  %4419 = vmatpush2.bf16.msra.mxu0 %v5775_v0  ;;  %5365 = vmatpush2.bf16.msra.mxu1 %v5775_v0  ;;  %v5780_v17 = vld [vmem:[#allocation11 + $0xb4] ss:$8 sps:$4 sm:$0xff]  }
 0x20f   : > { %v1750_v23 = vpop.f32.mrf.mxu0  ;;  %v2023_v24 = vpop.f32.mrf.mxu1  ;;  %4420 = vmatprep.subr.bf16.mxu0 %v5780_v17  ;;  %5350 = vmatprep.subr.bf16.mxu1 %v5780_v17 }
 0x210   : > { %v2235_v25 = vmax.f32 %v1747_v19, 0.0  ;;  %v2378_v26 = vpack.c.bf16 %v2234_v18, %v2230_v13  ;;  %v1751_v27 = vadd.f32 %v1750_v23, %v6787_v60  ;;  %v2237_v28 = vmax.f32 %v2020_v21, 0.0  ;;  %v5778_v23 = vld [vmem:[#allocation11 + $0xb0] ss:$8 sps:$4 sm:$0xff]  }
 0x211   : > { %v1752_v29 = vpop.f32.mrf.mxu0  ;;  %v2024_v30 = vadd.f32 %v2023_v24, %v6791_v61  ;;  %v2025_v31 = vpop.f32.mrf.mxu1  ;;  %v2380_v32 = vpack.c.bf16 %v2236_v20, %v2232_v15 }
 0x212   : > { %v1753_v33 = vadd.f32 %v1752_v29, %v6780_v58  ;;  %v2379_v34 = vpack.c.bf16 %v2235_v25, %v2231_v14  ;;  %v2026_v36 = vadd.f32 %v2025_v31, %v6784_v59  ;;  %v2381_v38 = vpack.c.bf16 %v2237_v28, %v2233_v22  ;;  %4421 = vmatpush2.bf16.msra.mxu0 %v5778_v23 }
 0x213   : > { %v1754_v35 = vpop.f32.mrf.mxu0  ;;  %v2027_v37 = vpop.f32.mrf.mxu1  ;;  %v2238_v41 = vmax.f32 %v1751_v27, 0.0  ;;  %v2240_v43 = vmax.f32 %v2024_v30, 0.0  ;;  %5366 = vmatpush2.bf16.msra.mxu1 %v5778_v23 }
 0x214   : > { %v1755_v39 = vadd.f32 %v1754_v35, %v6787_v60  ;;  %2968 = vmatprep.mubr.bf16.mxu0 %v2379_v34  ;;  %v2028_v40 = vadd.f32 %v2027_v37, %v6791_v61  ;;  %v2239_v42 = vmax.f32 %v1753_v33, 0.0  ;;  %3241 = vmatprep.mubr.bf16.mxu1 %v2381_v38  ;;  %v2241_v56 = vmax.f32 %v2026_v36, 0.0 }
 0x215   : > { %v1756_v44 = vpop.f32.mrf.mxu0  ;;  %2969 = vmatmul.mubr.bf16.gmra.mxu0 %v2378_v26  ;;  %v2029_v45 = vpop.f32.mrf.mxu1  ;;  %3242 = vmatmul.mubr.bf16.gmra.mxu1 %v2380_v32 }
 0x216   : > { %v2242_v46 = vmax.f32 %v1755_v39, 0.0  ;;  %v1757_v47 = vadd.f32 %v1756_v44, %v6780_v58  ;;  %v2244_v48 = vmax.f32 %v2028_v40, 0.0  ;;  %v2030_v55 = vadd.f32 %v2029_v45, %v6784_v59 }
 0x217   : > { %v1760_v57 = vpop.f32.mrf.mxu0  ;;  %v2033_v62 = vpop.f32.mrf.mxu1 }
 0x218   : > { %v2243_v63 = vmax.f32 %v1757_v47, 0.0  ;;  %v2382_v2 = vpack.c.bf16 %v2242_v46, %v2238_v41  ;;  %v1761_v3 = vadd.f32 %v1760_v57, %v6787_v60  ;;  %v2245_v4 = vmax.f32 %v2030_v55, 0.0  ;;  %v5783_v41 = vld [vmem:[#allocation11 + $0xa4] ss:$8 sps:$4 sm:$0xff]   ;;  %v5781_v46 = vld [vmem:[#allocation11 + $0xa0] ss:$8 sps:$4 sm:$0xff]  }
 0x219   : > { %v1762_v5 = vpop.f32.mrf.mxu0  ;;  %v2034_v6 = vadd.f32 %v2033_v62, %v6791_v61  ;;  %v2035_v7 = vpop.f32.mrf.mxu1  ;;  %v2384_v8 = vpack.c.bf16 %v2244_v48, %v2240_v43  ;;  %4422 = vmatprep.subr.bf16.mxu0 %v5783_v41  ;;  %5351 = vmatprep.subr.bf16.mxu1 %v5783_v41 }
 0x21a   : > { %v1763_v9 = vadd.f32 %v1762_v5, %v6780_v58  ;;  %v2383_v10 = vpack.c.bf16 %v2243_v63, %v2239_v42  ;;  %v2036_v12 = vadd.f32 %v2035_v7, %v6784_v59  ;;  %v2385_v14 = vpack.c.bf16 %v2245_v4, %v2241_v56  ;;  %4423 = vmatpush2.bf16.msra.mxu0 %v5781_v46  ;;  %v5786_v4 = vld [vmem:[#allocation11 + $0x94] ss:$8 sps:$4 sm:$0xff]  }
 0x21b   : > { %v1764_v11 = vpop.f32.mrf.mxu0  ;;  %v2037_v13 = vpop.f32.mrf.mxu1  ;;  %v2246_v18 = vmax.f32 %v1761_v3, 0.0  ;;  %v2248_v20 = vmax.f32 %v2034_v6, 0.0  ;;  %4424 = vmatprep.subr.bf16.mxu0 %v5786_v4  ;;  %5367 = vmatpush2.bf16.msra.mxu1 %v5781_v46 }
 0x21c   : > { %v1765_v15 = vadd.f32 %v1764_v11, %v6787_v60  ;;  %2978 = vmatprep.mubr.bf16.mxu0 %v2383_v10  ;;  %v2038_v16 = vadd.f32 %v2037_v13, %v6791_v61  ;;  %v2247_v19 = vmax.f32 %v1763_v9, 0.0  ;;  %3251 = vmatprep.mubr.bf16.mxu1 %v2385_v14  ;;  %v2249_v28 = vmax.f32 %v2036_v12, 0.0  ;;  %v1041_v10 = vld [vmem:[%s7764_s5] sm:$0xf] }
 0x21d   : > { %v1766_v21 = vpop.f32.mrf.mxu0  ;;  %2979 = vmatmul.mubr.bf16.gmra.mxu0 %v2382_v2  ;;  %v2039_v22 = vpop.f32.mrf.mxu1  ;;  %3252 = vmatmul.mubr.bf16.gmra.mxu1 %v2384_v8  ;;  %v5784_v8 = vld [vmem:[#allocation11 + $0x90] ss:$8 sps:$4 sm:$0xff]   ;;  %v6936_v41 = vrot.slane %v1041_v10, %v1057_v52 }
 0x21e   : > { %v2250_v24 = vmax.f32 %v1765_v15, 0.0  ;;  %v1767_v25 = vadd.f32 %v1766_v21, %v6780_v58  ;;  %v2252_v26 = vmax.f32 %v2038_v16, 0.0  ;;  %v2040_v27 = vadd.f32 %v2039_v22, %v6784_v59  ;;  %5352 = vmatprep.subr.bf16.mxu1 %v5786_v4  ;;  %4425 = vmatpush2.bf16.msra.mxu0 %v5784_v8 }
 0x21f   : > { %v1770_v29 = vpop.f32.mrf.mxu0  ;;  %v2043_v30 = vpop.f32.mrf.mxu1  ;;  %5368 = vmatpush2.bf16.msra.mxu1 %v5784_v8 }
 0x220   : > { %v2251_v31 = vmax.f32 %v1767_v25, 0.0  ;;  %v2386_v32 = vpack.c.bf16 %v2250_v24, %v2246_v18  ;;  %v1771_v33 = vadd.f32 %v1770_v29, %v6787_v60  ;;  %v2253_v34 = vmax.f32 %v2040_v27, 0.0 }
 0x221   : > { %v1772_v35 = vpop.f32.mrf.mxu0  ;;  %v2044_v36 = vadd.f32 %v2043_v30, %v6791_v61  ;;  %v2045_v37 = vpop.f32.mrf.mxu1  ;;  %v2388_v38 = vpack.c.bf16 %v2252_v26, %v2248_v20  ;;  %v5789_v20 = vld [vmem:[#allocation11 + $0x84] ss:$8 sps:$4 sm:$0xff]   ;;  %v6921_v25 = vrot.slane %v1041_v10, %v6773_v53  ;;  %v5787_v26 = vld [vmem:[#allocation11 + $0x80] ss:$8 sps:$4 sm:$0xff]   ;;  %v6926_v29 = vrot.slane %v1041_v10, %v6769_v51 }
 0x222   : > { %v1773_v39 = vadd.f32 %v1772_v35, %v6780_v58  ;;  %v2387_v40 = vpack.c.bf16 %v2251_v31, %v2247_v19  ;;  %v2046_v43 = vadd.f32 %v2045_v37, %v6784_v59  ;;  %v2389_v45 = vpack.c.bf16 %v2253_v34, %v2249_v28  ;;  %4426 = vmatprep.subr.bf16.mxu0 %v5789_v20 }
 0x223   : > { %v1774_v42 = vpop.f32.mrf.mxu0  ;;  %v2047_v44 = vpop.f32.mrf.mxu1  ;;  %v2254_v55 = vmax.f32 %v1771_v33, 0.0  ;;  %v2256_v57 = vmax.f32 %v2044_v36, 0.0  ;;  %v6930_v35 = vrot.slane %v1041_v10, %v1053_v54  ;;  %4427 = vmatpush2.bf16.msra.mxu0 %v5787_v26  ;;  %5353 = vmatprep.subr.bf16.mxu1 %v5789_v20 }
 0x224   : > { %v1775_v47 = vadd.f32 %v1774_v42, %v6787_v60  ;;  %2988 = vmatprep.mubr.bf16.mxu0 %v2387_v40  ;;  %v2048_v48 = vadd.f32 %v2047_v44, %v6791_v61  ;;  %v2255_v56 = vmax.f32 %v1773_v39, 0.0  ;;  %3261 = vmatprep.mubr.bf16.mxu1 %v2389_v45  ;;  %v2257_v5 = vmax.f32 %v2046_v43, 0.0 }
 0x225   : > { %v1776_v62 = vpop.f32.mrf.mxu0  ;;  %2989 = vmatmul.mubr.bf16.gmra.mxu0 %v2386_v32  ;;  %v2049_v63 = vpop.f32.mrf.mxu1  ;;  %3262 = vmatmul.mubr.bf16.gmra.mxu1 %v2388_v38 }
 0x226   : > { %v2258_v0 = vmax.f32 %v1775_v47, 0.0  ;;  %v1777_v1 = vadd.f32 %v1776_v62, %v6780_v58  ;;  %v2260_v2 = vmax.f32 %v2048_v48, 0.0  ;;  %v2050_v3 = vadd.f32 %v2049_v63, %v6784_v59  ;;  %5369 = vmatpush2.bf16.msra.mxu1 %v5787_v26 }
 0x227   : > { %v1780_v6 = vpop.f32.mrf.mxu0  ;;  %v2053_v7 = vpop.f32.mrf.mxu1 }
 0x228   : > { %v2259_v9 = vmax.f32 %v1777_v1, 0.0  ;;  %v2390_v11 = vpack.c.bf16 %v2258_v0, %v2254_v55  ;;  %v1781_v12 = vadd.f32 %v1780_v6, %v6787_v60  ;;  %v2261_v13 = vmax.f32 %v2050_v3, 0.0 }
 0x229   : > { %v1782_v14 = vpop.f32.mrf.mxu0  ;;  %v2054_v15 = vadd.f32 %v2053_v7, %v6791_v61  ;;  %v2055_v16 = vpop.f32.mrf.mxu1  ;;  %v2392_v17 = vpack.c.bf16 %v2260_v2, %v2256_v57 }
 0x22a   : > { %v1783_v18 = vadd.f32 %v1782_v14, %v6780_v58  ;;  %v2391_v19 = vpack.c.bf16 %v2259_v9, %v2255_v56  ;;  %v2056_v22 = vadd.f32 %v2055_v16, %v6784_v59  ;;  %v2393_v24 = vpack.c.bf16 %v2261_v13, %v2257_v5 }
 0x22b   : > { %v1784_v21 = vpop.f32.mrf.mxu0  ;;  %v2057_v23 = vpop.f32.mrf.mxu1  ;;  %v2262_v30 = vmax.f32 %v1781_v12, 0.0  ;;  %v2264_v32 = vmax.f32 %v2054_v15, 0.0 }
 0x22c   : > { %v1785_v27 = vadd.f32 %v1784_v21, %v6787_v60  ;;  %2998 = vmatprep.mubr.bf16.mxu0 %v2391_v19  ;;  %v2058_v28 = vadd.f32 %v2057_v23, %v6791_v61  ;;  %v2263_v31 = vmax.f32 %v1783_v18, 0.0  ;;  %3271 = vmatprep.mubr.bf16.mxu1 %v2393_v24  ;;  %v2265_v38 = vmax.f32 %v2056_v22, 0.0 }
 0x22d   : > { %v1786_v33 = vpop.f32.mrf.mxu0  ;;  %2999 = vmatmul.mubr.bf16.gmra.mxu0 %v2390_v11  ;;  %v2059_v34 = vpop.f32.mrf.mxu1  ;;  %3272 = vmatmul.mubr.bf16.gmra.mxu1 %v2392_v17 }
 0x22e   : > { %v2266_v36 = vmax.f32 %v1785_v27, 0.0  ;;  %v1787_v60 = vadd.f32 %v1786_v33, %v6780_v58  ;;  %v2268_v37 = vmax.f32 %v2058_v28, 0.0  ;;  %v2060_v61 = vadd.f32 %v2059_v34, %v6784_v59 }
 0x22f   : > { %v1790_v39 = vpop.f32.mrf.mxu0  ;;  %v2063_v40 = vpop.f32.mrf.mxu1 }
 0x230   : > { %v2267_v42 = vmax.f32 %v1787_v60, 0.0  ;;  %v2394_v54 = vpack.c.bf16 %v2266_v36, %v2262_v30  ;;  %v1791_v43 = vadd.f32 %v1790_v39, %v6921_v25  ;;  %v2269_v44 = vmax.f32 %v2060_v61, 0.0 }
 0x231   : > { %v1792_v58 = vpop.f32.mrf.mxu0  ;;  %v2064_v45 = vadd.f32 %v2063_v40, %v6930_v35  ;;  %v2065_v59 = vpop.f32.mrf.mxu1  ;;  %v2396_v46 = vpack.c.bf16 %v2268_v37, %v2264_v32 }
 0x232   : > { %v1793_v47 = vadd.f32 %v1792_v58, %v6926_v29  ;;  %v2395_v48 = vpack.c.bf16 %v2267_v42, %v2263_v31  ;;  %v2066_v50 = vadd.f32 %v2065_v59, %v6936_v41  ;;  %v2397_v56 = vpack.c.bf16 %v2269_v44, %v2265_v38 }
 0x233   : > { %v1794_v55 = vpop.f32.mrf.mxu0  ;;  %v2067_v52 = vpop.f32.mrf.mxu1  ;;  %v2270_v63 = vmax.f32 %v1791_v43, 0.0  ;;  %v2272_v1 = vmax.f32 %v2064_v45, 0.0 }
 0x234   : > { %v1795_v57 = vadd.f32 %v1794_v55, %v6921_v25  ;;  %3008 = vmatprep.mubr.bf16.mxu0 %v2395_v48  ;;  %v2068_v62 = vadd.f32 %v2067_v52, %v6930_v35  ;;  %v2271_v0 = vmax.f32 %v1793_v47, 0.0  ;;  %3281 = vmatprep.mubr.bf16.mxu1 %v2397_v56  ;;  %v2273_v8 = vmax.f32 %v2066_v50, 0.0 }
 0x235   : > { %v1796_v2 = vpop.f32.mrf.mxu0  ;;  %3009 = vmatmul.mubr.bf16.gmra.mxu0 %v2394_v54  ;;  %v2069_v3 = vpop.f32.mrf.mxu1  ;;  %3282 = vmatmul.mubr.bf16.gmra.mxu1 %v2396_v46 }
 0x236   : > { %v2274_v4 = vmax.f32 %v1795_v57, 0.0  ;;  %v1797_v5 = vadd.f32 %v1796_v2, %v6926_v29  ;;  %v2276_v6 = vmax.f32 %v2068_v62, 0.0  ;;  %v2070_v7 = vadd.f32 %v2069_v3, %v6936_v41 }
 0x237   : > { %v1800_v9 = vpop.f32.mrf.mxu0  ;;  %v2073_v10 = vpop.f32.mrf.mxu1 }
 0x238   : > { %v2275_v11 = vmax.f32 %v1797_v5, 0.0  ;;  %v2398_v12 = vpack.c.bf16 %v2274_v4, %v2270_v63  ;;  %v1801_v13 = vadd.f32 %v1800_v9, %v6921_v25  ;;  %v2277_v14 = vmax.f32 %v2070_v7, 0.0 }
 0x239   : > { %v1802_v15 = vpop.f32.mrf.mxu0  ;;  %v2074_v16 = vadd.f32 %v2073_v10, %v6930_v35  ;;  %v2075_v17 = vpop.f32.mrf.mxu1  ;;  %v2400_v18 = vpack.c.bf16 %v2276_v6, %v2272_v1 }
 0x23a   : > { %v1803_v19 = vadd.f32 %v1802_v15, %v6926_v29  ;;  %v2399_v20 = vpack.c.bf16 %v2275_v11, %v2271_v0  ;;  %v2076_v22 = vadd.f32 %v2075_v17, %v6936_v41  ;;  %v2401_v24 = vpack.c.bf16 %v2277_v14, %v2273_v8 }
 0x23b   : > { %v1804_v21 = vpop.f32.mrf.mxu0  ;;  %v2077_v23 = vpop.f32.mrf.mxu1  ;;  %v2278_v28 = vmax.f32 %v1801_v13, 0.0  ;;  %v2280_v31 = vmax.f32 %v2074_v16, 0.0 }
 0x23c   : > { %v1805_v26 = vadd.f32 %v1804_v21, %v6921_v25  ;;  %3018 = vmatprep.mubr.bf16.mxu0 %v2399_v20  ;;  %v2078_v27 = vadd.f32 %v2077_v23, %v6930_v35  ;;  %v2279_v30 = vmax.f32 %v1803_v19, 0.0  ;;  %3291 = vmatprep.mubr.bf16.mxu1 %v2401_v24  ;;  %v2281_v61 = vmax.f32 %v2076_v22, 0.0 }
 0x23d   : > { %v1806_v32 = vpop.f32.mrf.mxu0  ;;  %3019 = vmatmul.mubr.bf16.gmra.mxu0 %v2398_v12  ;;  %v2079_v33 = vpop.f32.mrf.mxu1  ;;  %3292 = vmatmul.mubr.bf16.gmra.mxu1 %v2400_v18 }
 0x23e   : > { %v2282_v34 = vmax.f32 %v1805_v26, 0.0  ;;  %v1807_v36 = vadd.f32 %v1806_v32, %v6926_v29  ;;  %v2284_v60 = vmax.f32 %v2078_v27, 0.0  ;;  %v2080_v37 = vadd.f32 %v2079_v33, %v6936_v41 }
 0x23f   : > { %v1810_v38 = vpop.f32.mrf.mxu0  ;;  %v2083_v39 = vpop.f32.mrf.mxu1 }
 0x240   : > { %v2283_v40 = vmax.f32 %v1807_v36, 0.0  ;;  %v2402_v42 = vpack.c.bf16 %v2282_v34, %v2278_v28  ;;  %v1811_v54 = vadd.f32 %v1810_v38, %v6921_v25  ;;  %v2285_v43 = vmax.f32 %v2080_v37, 0.0 }
 0x241   : > { %v1812_v44 = vpop.f32.mrf.mxu0  ;;  %v2084_v58 = vadd.f32 %v2083_v39, %v6930_v35  ;;  %v2085_v45 = vpop.f32.mrf.mxu1  ;;  %v2404_v59 = vpack.c.bf16 %v2284_v60, %v2280_v31 }
 0x242   : > { %v1813_v46 = vadd.f32 %v1812_v44, %v6926_v29  ;;  %v2403_v47 = vpack.c.bf16 %v2283_v40, %v2279_v30  ;;  %v2086_v55 = vadd.f32 %v2085_v45, %v6936_v41  ;;  %v2405_v52 = vpack.c.bf16 %v2285_v43, %v2281_v61 }
 0x243   : > { %v1814_v48 = vpop.f32.mrf.mxu0  ;;  %v2087_v50 = vpop.f32.mrf.mxu1  ;;  %v2286_v62 = vmax.f32 %v1811_v54, 0.0  ;;  %v2288_v0 = vmax.f32 %v2084_v58, 0.0 }
 0x244   : > { %v1815_v56 = vadd.f32 %v1814_v48, %v6921_v25  ;;  %3028 = vmatprep.mubr.bf16.mxu0 %v2403_v47  ;;  %v2088_v57 = vadd.f32 %v2087_v50, %v6930_v35  ;;  %v2287_v63 = vmax.f32 %v1813_v46, 0.0  ;;  %3301 = vmatprep.mubr.bf16.mxu1 %v2405_v52  ;;  %v2289_v7 = vmax.f32 %v2086_v55, 0.0 }
 0x245   : > { %v1816_v1 = vpop.f32.mrf.mxu0  ;;  %3029 = vmatmul.mubr.bf16.gmra.mxu0 %v2402_v42  ;;  %v2089_v2 = vpop.f32.mrf.mxu1  ;;  %3302 = vmatmul.mubr.bf16.gmra.mxu1 %v2404_v59 }
 0x246   : > { %v2290_v3 = vmax.f32 %v1815_v56, 0.0  ;;  %v1817_v4 = vadd.f32 %v1816_v1, %v6926_v29  ;;  %v2292_v5 = vmax.f32 %v2088_v57, 0.0  ;;  %v2090_v6 = vadd.f32 %v2089_v2, %v6936_v41 }
 0x247   : > { %v1820_v8 = vpop.f32.mrf.mxu0  ;;  %v2093_v9 = vpop.f32.mrf.mxu1 }
 0x248   : > { %v2291_v10 = vmax.f32 %v1817_v4, 0.0  ;;  %v2406_v11 = vpack.c.bf16 %v2290_v3, %v2286_v62  ;;  %v1821_v12 = vadd.f32 %v1820_v8, %v6921_v25  ;;  %v2293_v13 = vmax.f32 %v2090_v6, 0.0 }
 0x249   : > { %v1822_v14 = vpop.f32.mrf.mxu0  ;;  %v2094_v15 = vadd.f32 %v2093_v9, %v6930_v35  ;;  %v2095_v16 = vpop.f32.mrf.mxu1  ;;  %v2408_v17 = vpack.c.bf16 %v2292_v5, %v2288_v0 }
 0x24a   : > { %v1823_v18 = vadd.f32 %v1822_v14, %v6926_v29  ;;  %v2407_v19 = vpack.c.bf16 %v2291_v10, %v2287_v63  ;;  %v2096_v21 = vadd.f32 %v2095_v16, %v6936_v41  ;;  %v2409_v23 = vpack.c.bf16 %v2293_v13, %v2289_v7 }
 0x24b   : > { %v1824_v20 = vpop.f32.mrf.mxu0  ;;  %v2097_v22 = vpop.f32.mrf.mxu1  ;;  %v2294_v27 = vmax.f32 %v1821_v12, 0.0  ;;  %v2296_v30 = vmax.f32 %v2094_v15, 0.0 }
 0x24c   : > { %v1825_v24 = vadd.f32 %v1824_v20, %v6921_v25  ;;  %3038 = vmatprep.mubr.bf16.mxu0 %v2407_v19  ;;  %v2098_v26 = vadd.f32 %v2097_v22, %v6930_v35  ;;  %v2295_v28 = vmax.f32 %v1823_v18, 0.0  ;;  %3311 = vmatprep.mubr.bf16.mxu1 %v2409_v23  ;;  %v2297_v37 = vmax.f32 %v2096_v21, 0.0 }
 0x24d   : > { %v1826_v31 = vpop.f32.mrf.mxu0  ;;  %3039 = vmatmul.mubr.bf16.gmra.mxu0 %v2406_v11  ;;  %v2099_v32 = vpop.f32.mrf.mxu1  ;;  %3312 = vmatmul.mubr.bf16.gmra.mxu1 %v2408_v17 }
 0x24e   : > { %v2298_v33 = vmax.f32 %v1825_v24, 0.0  ;;  %v1827_v34 = vadd.f32 %v1826_v31, %v6926_v29  ;;  %v2300_v36 = vmax.f32 %v2098_v26, 0.0  ;;  %v2100_v60 = vadd.f32 %v2099_v32, %v6936_v41 }
 0x24f   : > { %v1830_v61 = vpop.f32.mrf.mxu0  ;;  %v2103_v38 = vpop.f32.mrf.mxu1 }
 0x250   : > { %v2299_v39 = vmax.f32 %v1827_v34, 0.0  ;;  %v2410_v40 = vpack.c.bf16 %v2298_v33, %v2294_v27  ;;  %v1831_v42 = vadd.f32 %v1830_v61, %v6921_v25  ;;  %v2301_v54 = vmax.f32 %v2100_v60, 0.0 }
 0x251   : > { %v1832_v43 = vpop.f32.mrf.mxu0  ;;  %v2104_v44 = vadd.f32 %v2103_v38, %v6930_v35  ;;  %v2105_v58 = vpop.f32.mrf.mxu1  ;;  %v2412_v45 = vpack.c.bf16 %v2300_v36, %v2296_v30 }
 0x252   : > { %v1833_v59 = vadd.f32 %v1832_v43, %v6926_v29  ;;  %v2411_v46 = vpack.c.bf16 %v2299_v39, %v2295_v28  ;;  %v2106_v48 = vadd.f32 %v2105_v58, %v6936_v41  ;;  %v2413_v50 = vpack.c.bf16 %v2301_v54, %v2297_v37 }
 0x253   : > { %v1834_v47 = vpop.f32.mrf.mxu0  ;;  %v2107_v55 = vpop.f32.mrf.mxu1  ;;  %v2302_v57 = vmax.f32 %v1831_v42, 0.0  ;;  %v2304_v63 = vmax.f32 %v2104_v44, 0.0 }
 0x254   : > { %v1835_v52 = vadd.f32 %v1834_v47, %v6921_v25  ;;  %3048 = vmatprep.mubr.bf16.mxu0 %v2411_v46  ;;  %v2108_v56 = vadd.f32 %v2107_v55, %v6930_v35  ;;  %v2303_v62 = vmax.f32 %v1833_v59, 0.0  ;;  %3321 = vmatprep.mubr.bf16.mxu1 %v2413_v50  ;;  %v2305_v6 = vmax.f32 %v2106_v48, 0.0 }
 0x255   : > { %v1836_v0 = vpop.f32.mrf.mxu0  ;;  %3049 = vmatmul.mubr.bf16.gmra.mxu0 %v2410_v40  ;;  %v2109_v1 = vpop.f32.mrf.mxu1  ;;  %3322 = vmatmul.mubr.bf16.gmra.mxu1 %v2412_v45 }
 0x256   : > { %v2306_v2 = vmax.f32 %v1835_v52, 0.0  ;;  %v1837_v3 = vadd.f32 %v1836_v0, %v6926_v29  ;;  %v2308_v4 = vmax.f32 %v2108_v56, 0.0  ;;  %v2110_v5 = vadd.f32 %v2109_v1, %v6936_v41 }
 0x257   : > { %v1840_v7 = vpop.f32.mrf.mxu0  ;;  %v2113_v8 = vpop.f32.mrf.mxu1 }
 0x258   : > { %v2307_v9 = vmax.f32 %v1837_v3, 0.0  ;;  %v2414_v10 = vpack.c.bf16 %v2306_v2, %v2302_v57  ;;  %v1841_v11 = vadd.f32 %v1840_v7, %v6921_v25  ;;  %v2309_v12 = vmax.f32 %v2110_v5, 0.0 }
 0x259   : > { %v1842_v13 = vpop.f32.mrf.mxu0  ;;  %v2114_v14 = vadd.f32 %v2113_v8, %v6930_v35  ;;  %v2115_v15 = vpop.f32.mrf.mxu1  ;;  %v2416_v16 = vpack.c.bf16 %v2308_v4, %v2304_v63 }
 0x25a   : > { %v1843_v17 = vadd.f32 %v1842_v13, %v6926_v29  ;;  %v2415_v18 = vpack.c.bf16 %v2307_v9, %v2303_v62  ;;  %v2116_v20 = vadd.f32 %v2115_v15, %v6936_v41  ;;  %v2417_v22 = vpack.c.bf16 %v2309_v12, %v2305_v6 }
 0x25b   : > { %v1844_v19 = vpop.f32.mrf.mxu0  ;;  %v2117_v21 = vpop.f32.mrf.mxu1  ;;  %v2310_v26 = vmax.f32 %v1841_v11, 0.0  ;;  %v2312_v28 = vmax.f32 %v2114_v14, 0.0 }
 0x25c   : > { %v1845_v23 = vadd.f32 %v1844_v19, %v6921_v25  ;;  %3058 = vmatprep.mubr.bf16.mxu0 %v2415_v18  ;;  %v2118_v24 = vadd.f32 %v2117_v21, %v6930_v35  ;;  %v2311_v27 = vmax.f32 %v1843_v17, 0.0  ;;  %3331 = vmatprep.mubr.bf16.mxu1 %v2417_v22  ;;  %v2313_v60 = vmax.f32 %v2116_v20, 0.0 }
 0x25d   : > { %v1846_v30 = vpop.f32.mrf.mxu0  ;;  %3059 = vmatmul.mubr.bf16.gmra.mxu0 %v2414_v10  ;;  %v2119_v31 = vpop.f32.mrf.mxu1  ;;  %3332 = vmatmul.mubr.bf16.gmra.mxu1 %v2416_v16 }
 0x25e   : > { %v2314_v32 = vmax.f32 %v1845_v23, 0.0  ;;  %v1847_v33 = vadd.f32 %v1846_v30, %v6926_v29  ;;  %v2316_v34 = vmax.f32 %v2118_v24, 0.0  ;;  %v2120_v36 = vadd.f32 %v2119_v31, %v6936_v41 }
 0x25f   : > { %v1850_v37 = vpop.f32.mrf.mxu0  ;;  %v2123_v61 = vpop.f32.mrf.mxu1 }
 0x260   : > { %v2315_v38 = vmax.f32 %v1847_v33, 0.0  ;;  %v2418_v39 = vpack.c.bf16 %v2314_v32, %v2310_v26  ;;  %v1851_v40 = vadd.f32 %v1850_v37, %v6921_v25  ;;  %v2317_v42 = vmax.f32 %v2120_v36, 0.0 }
 0x261   : > { %v1852_v54 = vpop.f32.mrf.mxu0  ;;  %v2124_v43 = vadd.f32 %v2123_v61, %v6930_v35  ;;  %v2125_v44 = vpop.f32.mrf.mxu1  ;;  %v2420_v58 = vpack.c.bf16 %v2316_v34, %v2312_v28 }
 0x262   : > { %v1853_v45 = vadd.f32 %v1852_v54, %v6926_v29  ;;  %v2419_v59 = vpack.c.bf16 %v2315_v38, %v2311_v27  ;;  %v2126_v47 = vadd.f32 %v2125_v44, %v6936_v41  ;;  %v2421_v55 = vpack.c.bf16 %v2317_v42, %v2313_v60 }
 0x263   : > { %v1854_v46 = vpop.f32.mrf.mxu0  ;;  %v2127_v48 = vpop.f32.mrf.mxu1  ;;  %v2318_v56 = vmax.f32 %v1851_v40, 0.0  ;;  %v2320_v62 = vmax.f32 %v2124_v43, 0.0 }
 0x264   : > { %v1855_v50 = vadd.f32 %v1854_v46, %v6921_v25  ;;  %3068 = vmatprep.mubr.bf16.mxu0 %v2419_v59  ;;  %v2128_v52 = vadd.f32 %v2127_v48, %v6930_v35  ;;  %v2319_v57 = vmax.f32 %v1853_v45, 0.0  ;;  %3341 = vmatprep.mubr.bf16.mxu1 %v2421_v55  ;;  %v2321_v5 = vmax.f32 %v2126_v47, 0.0 }
 0x265   : > { %v1856_v63 = vpop.f32.mrf.mxu0  ;;  %3069 = vmatmul.mubr.bf16.gmra.mxu0 %v2418_v39  ;;  %v2129_v0 = vpop.f32.mrf.mxu1  ;;  %3342 = vmatmul.mubr.bf16.gmra.mxu1 %v2420_v58  ;;  %v2494_v39 = vld [vmem:[%s7766_s7] sm:$0x3] }
 0x266   : > { %v2322_v1 = vmax.f32 %v1855_v50, 0.0  ;;  %v1857_v2 = vadd.f32 %v1856_v63, %v6926_v29  ;;  %v2324_v3 = vmax.f32 %v2128_v52, 0.0  ;;  %v2130_v4 = vadd.f32 %v2129_v0, %v6936_v41 }
 0x267   : > { %v1860_v6 = vpop.f32.mrf.mxu0  ;;  %v2133_v7 = vpop.f32.mrf.mxu1 }
 0x268   : > { %v2323_v8 = vmax.f32 %v1857_v2, 0.0  ;;  %v2422_v9 = vpack.c.bf16 %v2322_v1, %v2318_v56  ;;  %v1861_v10 = vadd.f32 %v1860_v6, %v6921_v25  ;;  %v2325_v11 = vmax.f32 %v2130_v4, 0.0 }
 0x269   : > { %v1862_v12 = vpop.f32.mrf.mxu0  ;;  %v2134_v13 = vadd.f32 %v2133_v7, %v6930_v35  ;;  %v2135_v14 = vpop.f32.mrf.mxu1  ;;  %v2424_v15 = vpack.c.bf16 %v2324_v3, %v2320_v62 }
 0x26a   : > { %v1863_v16 = vadd.f32 %v1862_v12, %v6926_v29  ;;  %v2136_v17 = vadd.f32 %v2135_v14, %v6936_v41  ;;  %v2423_v18 = vpack.c.bf16 %v2323_v8, %v2319_v57  ;;  %v2425_v21 = vpack.c.bf16 %v2325_v11, %v2321_v5 }
 0x26b   : > { %v1864_v19 = vpop.f32.mrf.mxu0  ;;  %v2137_v20 = vpop.f32.mrf.mxu1  ;;  %v2326_v24 = vmax.f32 %v1861_v10, 0.0  ;;  %v2328_v27 = vmax.f32 %v2134_v13, 0.0 }
 0x26c   : > { %v1865_v22 = vadd.f32 %v1864_v19, %v6921_v25  ;;  %3078 = vmatprep.mubr.bf16.mxu0 %v2423_v18  ;;  %v2138_v23 = vadd.f32 %v2137_v20, %v6930_v35  ;;  %v2327_v26 = vmax.f32 %v1863_v16, 0.0  ;;  %v2329_v28 = vmax.f32 %v2136_v17, 0.0  ;;  %3351 = vmatprep.mubr.bf16.mxu1 %v2425_v21 }
 0x26d   : > { %v1866_v30 = vpop.f32.mrf.mxu0  ;;  %3079 = vmatmul.mubr.bf16.gmra.mxu0 %v2422_v9  ;;  %v2139_v31 = vpop.f32.mrf.mxu1  ;;  %3352 = vmatmul.mubr.bf16.gmra.mxu1 %v2424_v15 }
 0x26e   : > { %v2330_v32 = vmax.f32 %v1865_v22, 0.0  ;;  %v1867_v33 = vadd.f32 %v1866_v30, %v6926_v29  ;;  %v2332_v34 = vmax.f32 %v2138_v23, 0.0  ;;  %v2140_v36 = vadd.f32 %v2139_v31, %v6936_v41 }
 0x26f   : > { %v7006_v29 = vrot.slane %v2494_v39, %v6773_v53  ;;  %v7009_v41 = vrot.slane %v2494_v39, %v6769_v51 }
 0x270   : > { %v2331_v60 = vmax.f32 %v1867_v33, 0.0  ;;  %v2333_v25 = vmax.f32 %v2140_v36, 0.0  ;;  %v2426_v37 = vpack.c.bf16 %v2330_v32, %v2326_v24  ;;  %v2428_v61 = vpack.c.bf16 %v2332_v34, %v2328_v27 }
 0x272   : > { %v2427_v35 = vpack.c.bf16 %v2331_v60, %v2327_v26  ;;  %v2429_v38 = vpack.c.bf16 %v2333_v25, %v2329_v28 }
 0x274   : > { %3088 = vmatprep.mubr.bf16.mxu0 %v2427_v35  ;;  %3361 = vmatprep.mubr.bf16.mxu1 %v2429_v38 }
 0x275   : > { %3089 = vmatmul.mubr.bf16.gmra.mxu0 %v2426_v37  ;;  %3362 = vmatmul.mubr.bf16.gmra.mxu1 %v2428_v61 }
 0x27d   : > { %v2860_v40 = vpop.f32.mrf.mxu0  ;;  %v3133_v42 = vpop.f32.mrf.mxu1 }
 0x27e   : > { %v2861_v54 = vadd.f32 %v2860_v40, %v7006_v29 }
 0x27f   : > { %v2862_v43 = vpop.f32.mrf.mxu0  ;;  %v3135_v44 = vpop.f32.mrf.mxu1 }
 0x280   : > { %v3134_v58 = vadd.f32 %v3133_v42, %v2861_v54  ;;  %v2863_v45 = vadd.f32 %v2862_v43, %v7009_v41 }
 0x281   : > { %v2864_v59 = vpop.f32.mrf.mxu0  ;;  %v3137_v46 = vpop.f32.mrf.mxu1 }
 0x282   : > { %v3708_v47 = vsub.f32 0.0, %v3134_v58  ;;  %v3136_v48 = vadd.f32 %v3135_v44, %v2863_v45  ;;  %v2865_v53 = vadd.f32 %v2864_v59, %v7006_v29 }
 0x283   : > { %v2866_v55 = vpop.f32.mrf.mxu0  ;;  %v3139_v50 = vpop.f32.mrf.mxu1 }
 0x284   : > { %v3740_v51 = vmul.f32 1.442695, %v3708_v47  ;;  %v5283_v52 = vpack.c.bf16 %v3136_v48, %v3134_v58  ;;  %v3709_v56 = vsub.f32 0.0, %v3136_v48  ;;  %v3138_v57 = vadd.f32 %v3137_v46, %v2865_v53 }
 0x285   : > { %v2867_v62 = vadd.f32 %v2866_v55, %v7009_v41  ;;  %v2870_v63 = vpop.f32.mrf.mxu0  ;;  %v3143_v0 = vpop.f32.mrf.mxu1 }
 0x286   : > { %5790 = vpow2.f32 %v3740_v51  ;;  %3468 = vst [vmem:[%s7016_s11] sm:$0xff] %v5283_v52  ;;  %v3742_v1 = vmul.f32 1.442695, %v3709_v56  ;;  %v3710_v2 = vsub.f32 0.0, %v3138_v57  ;;  %v2871_v3 = vadd.f32 %v2870_v63, %v7006_v29 }
 0x287   : > { %v3140_v4 = vadd.f32 %v3139_v50, %v2867_v62  ;;  %v2872_v5 = vpop.f32.mrf.mxu0  ;;  %v3145_v6 = vpop.f32.mrf.mxu1 }
 0x288   : > { %5792 = vpow2.f32 %v3742_v1  ;;  %v3744_v7 = vmul.f32 1.442695, %v3710_v2  ;;  %v3144_v8 = vadd.f32 %v3143_v0, %v2871_v3  ;;  %v2873_v9 = vadd.f32 %v2872_v5, %v7009_v41 }
 0x289   : > { %v5284_v10 = vpack.c.bf16 %v3140_v4, %v3138_v57  ;;  %v3711_v11 = vsub.f32 0.0, %v3140_v4  ;;  %v2874_v12 = vpop.f32.mrf.mxu0  ;;  %v3147_v13 = vpop.f32.mrf.mxu1 }
 0x28a   : > { %5794 = vpow2.f32 %v3744_v7  ;;  %v3712_v14 = vsub.f32 0.0, %v3144_v8  ;;  %v3146_v15 = vadd.f32 %v3145_v6, %v2873_v9  ;;  %v2875_v16 = vadd.f32 %v2874_v12, %v7006_v29 }
 0x28b   : > { %3469 = vst [vmem:[%s7016_s11 + $0x8] sm:$0xff] %v5284_v10  ;;  %v3746_v17 = vmul.f32 1.442695, %v3711_v11  ;;  %v2876_v18 = vpop.f32.mrf.mxu0  ;;  %v3149_v19 = vpop.f32.mrf.mxu1 }
 0x28c   : > { %v3748_v20 = vmul.f32 1.442695, %v3712_v14  ;;  %v5285_v21 = vpack.c.bf16 %v3146_v15, %v3144_v8  ;;  %v3713_v22 = vsub.f32 0.0, %v3146_v15  ;;  %v3148_v23 = vadd.f32 %v3147_v13, %v2875_v16 }
 0x28d   : > { %5796 = vpow2.f32 %v3746_v17  ;;  %v2877_v24 = vadd.f32 %v2876_v18, %v7009_v41  ;;  %v2880_v26 = vpop.f32.mrf.mxu0  ;;  %v3153_v27 = vpop.f32.mrf.mxu1 }
 0x28e   : > { %5798 = vpow2.f32 %v3748_v20  ;;  %3470 = vst [vmem:[%s7016_s11 + $0x10] sm:$0xff] %v5285_v21  ;;  %v3750_v28 = vmul.f32 1.442695, %v3713_v22  ;;  %v3714_v30 = vsub.f32 0.0, %v3148_v23  ;;  %v2881_v31 = vadd.f32 %v2880_v26, %v7006_v29 }
 0x28f   : > { %v3150_v32 = vadd.f32 %v3149_v19, %v2877_v24  ;;  %v2882_v33 = vpop.f32.mrf.mxu0  ;;  %v3155_v34 = vpop.f32.mrf.mxu1 }
 0x290   : > { %5800 = vpow2.f32 %v3750_v28  ;;  %v3752_v36 = vmul.f32 1.442695, %v3714_v30  ;;  %v3154_v60 = vadd.f32 %v3153_v27, %v2881_v31  ;;  %v2883_v25 = vadd.f32 %v2882_v33, %v7009_v41 }
 0x291   : > { %v5286_v37 = vpack.c.bf16 %v3150_v32, %v3148_v23  ;;  %v3715_v61 = vsub.f32 0.0, %v3150_v32  ;;  %v2884_v35 = vpop.f32.mrf.mxu0  ;;  %v3157_v38 = vpop.f32.mrf.mxu1 }
 0x292   : > { %5802 = vpow2.f32 %v3752_v36  ;;  %v3716_v39 = vsub.f32 0.0, %v3154_v60  ;;  %v3156_v40 = vadd.f32 %v3155_v34, %v2883_v25  ;;  %v2885_v42 = vadd.f32 %v2884_v35, %v7006_v29 }
 0x293   : > { %v5791_v54 = vpop.eup %5790  ;;  %3471 = vst [vmem:[%s7016_s11 + $0x18] sm:$0xff] %v5286_v37  ;;  %v3754_v43 = vmul.f32 1.442695, %v3715_v61  ;;  %v2886_v44 = vpop.f32.mrf.mxu0 }
 0x294   : > { %v3159_v58 = vpop.f32.mrf.mxu1  ;;  %v3804_v45 = vadd.f32 1.0, %v5791_v54  ;;  %v3756_v59 = vmul.f32 1.442695, %v3716_v39  ;;  %v5287_v46 = vpack.c.bf16 %v3156_v40, %v3154_v60  ;;  %v3717_v47 = vsub.f32 0.0, %v3156_v40 }
 0x295   : > { %v5793_v48 = vpop.eup %5792  ;;  %5804 = vpow2.f32 %v3754_v43  ;;  %v3158_v53 = vadd.f32 %v3157_v38, %v2885_v42  ;;  %v2887_v55 = vadd.f32 %v2886_v44, %v7009_v41  ;;  %v2890_v50 = vpop.f32.mrf.mxu0 }
 0x296   : > { %v3163_v51 = vpop.f32.mrf.mxu1  ;;  %5806 = vrcp.f32 %v3804_v45  ;;  %3472 = vst [vmem:[%s7016_s11 + $0x20] sm:$0xff] %v5287_v46  ;;  %v3758_v52 = vmul.f32 1.442695, %v3717_v47  ;;  %v2891_v56 = vadd.f32 %v2890_v50, %v7006_v29  ;;  %v3805_v2 = vadd.f32 1.0, %v5793_v48 }
 0x297   : > { %v5795_v57 = vpop.eup %5794  ;;  %5808 = vpow2.f32 %v3756_v59  ;;  %v3718_v62 = vsub.f32 0.0, %v3158_v53  ;;  %v3160_v63 = vadd.f32 %v3159_v58, %v2887_v55  ;;  %v2892_v0 = vpop.f32.mrf.mxu0 }
 0x298   : > { %v3165_v1 = vpop.f32.mrf.mxu1  ;;  %v3806_v3 = vadd.f32 1.0, %v5795_v57  ;;  %v3164_v4 = vadd.f32 %v3163_v51, %v2891_v56  ;;  %v2893_v5 = vadd.f32 %v2892_v0, %v7009_v41  ;;  %5810 = vpow2.f32 %v3758_v52 }
 0x299   : > { %v3760_v6 = vmul.f32 1.442695, %v3718_v62  ;;  %v5288_v7 = vpack.c.bf16 %v3160_v63, %v3158_v53  ;;  %v3719_v8 = vsub.f32 0.0, %v3160_v63  ;;  %v2894_v9 = vpop.f32.mrf.mxu0 }
 0x29a   : > { %v3167_v10 = vpop.f32.mrf.mxu1  ;;  %v5797_v11 = vpop.eup %5796  ;;  %5812 = vrcp.f32 %v3806_v3  ;;  %v3720_v12 = vsub.f32 0.0, %v3164_v4  ;;  %v3166_v13 = vadd.f32 %v3165_v1, %v2893_v5  ;;  %v2895_v14 = vadd.f32 %v2894_v9, %v7006_v29 }
 0x29b   : > { %v5799_v15 = vpop.eup %5798  ;;  %v3807_v16 = vadd.f32 1.0, %v5797_v11  ;;  %5814 = vpow2.f32 %v3760_v6  ;;  %3473 = vst [vmem:[%s7016_s11 + $0x28] sm:$0xff] %v5288_v7  ;;  %v3762_v17 = vmul.f32 1.442695, %v3719_v8  ;;  %v2896_v18 = vpop.f32.mrf.mxu0 }
 0x29c   : > { %v3169_v19 = vpop.f32.mrf.mxu1  ;;  %5816 = vrcp.f32 %v3805_v2  ;;  %v3808_v20 = vadd.f32 1.0, %v5799_v15  ;;  %v5289_v21 = vpack.c.bf16 %v3166_v13, %v3164_v4  ;;  %v3721_v22 = vsub.f32 0.0, %v3166_v13 }
 0x29d   : > { %v5801_v23 = vpop.eup %5800  ;;  %5818 = vrcp.f32 %v3807_v16  ;;  %v3764_v24 = vmul.f32 1.442695, %v3720_v12  ;;  %v3168_v26 = vadd.f32 %v3167_v10, %v2895_v14  ;;  %v2897_v27 = vadd.f32 %v2896_v18, %v7009_v41  ;;  %v2900_v28 = vpop.f32.mrf.mxu0 }
 0x29e   : > { %v3173_v30 = vpop.f32.mrf.mxu1  ;;  %5820 = vrcp.f32 %v3808_v20  ;;  %v3809_v31 = vadd.f32 1.0, %v5801_v23  ;;  %3474 = vst [vmem:[%s7016_s11 + $0x30] sm:$0xff] %v5289_v21  ;;  %v2901_v32 = vadd.f32 %v2900_v28, %v7006_v29  ;;  %v3766_v34 = vmul.f32 1.442695, %v3721_v22 }
 0x29f   : > { %v5803_v33 = vpop.eup %5802  ;;  %5822 = vpow2.f32 %v3762_v17  ;;  %v3722_v36 = vsub.f32 0.0, %v3168_v26  ;;  %v3170_v60 = vadd.f32 %v3169_v19, %v2897_v27  ;;  %v2902_v25 = vpop.f32.mrf.mxu0 }
 0x2a0   : > { %v3175_v37 = vpop.f32.mrf.mxu1  ;;  %5824 = vrcp.f32 %v3809_v31  ;;  %v3810_v61 = vadd.f32 1.0, %v5803_v33  ;;  %v3174_v35 = vadd.f32 %v3173_v30, %v2901_v32  ;;  %v2903_v38 = vadd.f32 %v2902_v25, %v7009_v41 }
 0x2a1   : > { %5826 = vpow2.f32 %v3764_v24  ;;  %v3768_v39 = vmul.f32 1.442695, %v3722_v36  ;;  %v5290_v40 = vpack.c.bf16 %v3170_v60, %v3168_v26  ;;  %v3723_v42 = vsub.f32 0.0, %v3170_v60  ;;  %v2904_v54 = vpop.f32.mrf.mxu0 }
 0x2a2   : > { %v3177_v43 = vpop.f32.mrf.mxu1  ;;  %v5805_v44 = vpop.eup %5804  ;;  %5828 = vrcp.f32 %v3810_v61  ;;  %v3724_v58 = vsub.f32 0.0, %v3174_v35  ;;  %v3176_v45 = vadd.f32 %v3175_v37, %v2903_v38  ;;  %v2905_v59 = vadd.f32 %v2904_v54, %v7006_v29 }
 0x2a3   : > { %v7040_v46 = vpop.eup %5806  ;;  %v3811_v47 = vadd.f32 1.0, %v5805_v44  ;;  %5830 = vpow2.f32 %v3766_v34  ;;  %3475 = vst [vmem:[%s7016_s11 + $0x38] sm:$0xff] %v5290_v40  ;;  %v3770_v48 = vmul.f32 1.442695, %v3723_v42  ;;  %v2906_v53 = vpop.f32.mrf.mxu0 }
 0x2a4   : > { %v3179_v55 = vpop.f32.mrf.mxu1  ;;  %v5809_v50 = vpop.eup %5808  ;;  %5832 = vpow2.f32 %v3768_v39  ;;  %v3772_v51 = vmul.f32 1.442695, %v3724_v58  ;;  %v5291_v52 = vpack.c.bf16 %v3176_v45, %v3174_v35  ;;  %v3725_v56 = vsub.f32 0.0, %v3176_v45 }
 0x2a5   : > { %5834 = vrcp.f32 %v3811_v47  ;;  %v3812_v57 = vadd.f32 1.0, %v5809_v50  ;;  %v3178_v62 = vadd.f32 %v3177_v43, %v2905_v59  ;;  %v2907_v63 = vadd.f32 %v2906_v53, %v7009_v41  ;;  %v2910_v0 = vpop.f32.mrf.mxu0  ;;  %v5811_v2 = vpop.eup %5810 }
 0x2a6   : > { %v3183_v1 = vpop.f32.mrf.mxu1  ;;  %5836 = vpow2.f32 %v3770_v48  ;;  %3476 = vst [vmem:[%s7016_s11 + $0x40] sm:$0xff] %v5291_v52  ;;  %v3774_v3 = vmul.f32 1.442695, %v3725_v56  ;;  %v2911_v4 = vadd.f32 %v2910_v0, %v7006_v29  ;;  %v3813_v6 = vadd.f32 1.0, %v5811_v2 }
 0x2a7   : > { %v7046_v5 = vpop.eup %5812  ;;  %5838 = vrcp.f32 %v3812_v57  ;;  %v3726_v7 = vsub.f32 0.0, %v3178_v62  ;;  %v3180_v8 = vadd.f32 %v3179_v55, %v2907_v63  ;;  %v2912_v9 = vpop.f32.mrf.mxu0 }
 0x2a8   : > { %v3185_v10 = vpop.f32.mrf.mxu1  ;;  %v5815_v11 = vpop.eup %5814  ;;  %5840 = vpow2.f32 %v3772_v51  ;;  %v3184_v12 = vadd.f32 %v3183_v1, %v2911_v4  ;;  %v2913_v13 = vadd.f32 %v2912_v9, %v7009_v41  ;;  %v4188_v31 = vpack.c.bf16 %v7046_v5, %v7040_v46 }
 0x2a9   : > { %v7049_v14 = vpop.eup %5816  ;;  %5842 = vrcp.f32 %v3813_v6  ;;  %v3814_v15 = vadd.f32 1.0, %v5815_v11  ;;  %v3776_v16 = vmul.f32 1.442695, %v3726_v7  ;;  %v5292_v17 = vpack.c.bf16 %v3180_v8, %v3178_v62  ;;  %v2914_v18 = vpop.f32.mrf.mxu0 }
 0x2aa   : > { %v3187_v19 = vpop.f32.mrf.mxu1  ;;  %v7051_v20 = vpop.eup %5818  ;;  %5844 = vpow2.f32 %v3774_v3  ;;  %v3727_v21 = vsub.f32 0.0, %v3180_v8  ;;  %v3728_v22 = vsub.f32 0.0, %v3184_v12  ;;  %v3186_v23 = vadd.f32 %v3185_v10, %v2913_v13 }
 0x2ab   : > { %v7053_v24 = vpop.eup %5820  ;;  %5846 = vrcp.f32 %v3814_v15  ;;  %3477 = vst [vmem:[%s7016_s11 + $0x48] sm:$0xff] %v5292_v17  ;;  %v2915_v26 = vadd.f32 %v2914_v18, %v7006_v29  ;;  %v2916_v27 = vpop.f32.mrf.mxu0  ;;  %v4189_v30 = vpack.c.bf16 %v7051_v20, %v7049_v14 }
 0x2ac   : > { %v3189_v28 = vpop.f32.mrf.mxu1  ;;  %v5823_v32 = vpop.eup %5822  ;;  %5848 = vpow2.f32 %v3776_v16  ;;  %v3778_v33 = vmul.f32 1.442695, %v3727_v21  ;;  %v3780_v34 = vmul.f32 1.442695, %v3728_v22  ;;  %v5293_v36 = vpack.c.bf16 %v3186_v23, %v3184_v12 }
 0x2ad   : > { %v7061_v60 = vpop.eup %5824  ;;  %v3815_v25 = vadd.f32 1.0, %v5823_v32  ;;  %v3729_v37 = vsub.f32 0.0, %v3186_v23  ;;  %v3188_v61 = vadd.f32 %v3187_v19, %v2915_v26  ;;  %v2917_v35 = vadd.f32 %v2916_v27, %v7009_v41  ;;  %4428 = vmatprep.mubr.bf16.mxu0 %v4189_v30  ;;  %v2920_v38 = vpop.f32.mrf.mxu0 }
 0x2ae   : > { %v3193_v39 = vpop.f32.mrf.mxu1  ;;  %v5827_v40 = vpop.eup %5826  ;;  %5850 = vpow2.f32 %v3778_v33  ;;  %3478 = vst [vmem:[%s7016_s11 + $0x50] sm:$0xff] %v5293_v36  ;;  %v2921_v42 = vadd.f32 %v2920_v38, %v7006_v29  ;;  %4429 = vmatmul.mubr.bf16.vlgmr.msra.gmra.mxu0 %v4188_v31 }
 0x2af   : > { %v7066_v54 = vpop.eup %5828  ;;  %5852 = vrcp.f32 %v3815_v25  ;;  %v3816_v43 = vadd.f32 1.0, %v5827_v40  ;;  %v3782_v44 = vmul.f32 1.442695, %v3729_v37  ;;  %v3730_v58 = vsub.f32 0.0, %v3188_v61  ;;  %v2922_v45 = vpop.f32.mrf.mxu0 }
 0x2b0   : > { %v3195_v59 = vpop.f32.mrf.mxu1  ;;  %v5831_v47 = vpop.eup %5830  ;;  %5854 = vpow2.f32 %v3780_v34  ;;  %v3190_v48 = vadd.f32 %v3189_v28, %v2917_v35  ;;  %v3194_v53 = vadd.f32 %v3193_v39, %v2921_v42  ;;  %v2923_v55 = vadd.f32 %v2922_v45, %v7009_v41 }
 0x2b1   : > { %v5833_v50 = vpop.eup %5832  ;;  %5856 = vrcp.f32 %v3816_v43  ;;  %v3817_v51 = vadd.f32 1.0, %v5831_v47  ;;  %v3784_v52 = vmul.f32 1.442695, %v3730_v58  ;;  %v2924_v56 = vpop.f32.mrf.mxu0  ;;  %v4190_v62 = vpack.c.bf16 %v7066_v54, %v7053_v24 }
 0x2b2   : > { %v3197_v57 = vpop.f32.mrf.mxu1  ;;  %v7071_v63 = vpop.eup %5834  ;;  %v3818_v0 = vadd.f32 1.0, %v5833_v50  ;;  %5858 = vpow2.f32 %v3782_v44  ;;  %v5294_v1 = vpack.c.bf16 %v3190_v48, %v3188_v61  ;;  %v3731_v2 = vsub.f32 0.0, %v3190_v48 }
 0x2b3   : > { %v5837_v3 = vpop.eup %5836  ;;  %5860 = vrcp.f32 %v3817_v51  ;;  %v3732_v4 = vsub.f32 0.0, %v3194_v53  ;;  %v3196_v6 = vadd.f32 %v3195_v59, %v2923_v55  ;;  %v2925_v7 = vadd.f32 %v2924_v56, %v7006_v29  ;;  %v2926_v8 = vpop.f32.mrf.mxu0 }
 0x2b4   : > { %v3199_v9 = vpop.f32.mrf.mxu1  ;;  %v7074_v10 = vpop.eup %5838  ;;  %5862 = vrcp.f32 %v3818_v0  ;;  %v3819_v11 = vadd.f32 1.0, %v5837_v3  ;;  %3479 = vst [vmem:[%s7016_s11 + $0x58] sm:$0xff] %v5294_v1  ;;  %v3786_v12 = vmul.f32 1.442695, %v3731_v2  ;;  %v2927_v13 = vadd.f32 %v2926_v8, %v7009_v41 }
 0x2b5   : > { %v5841_v15 = vpop.eup %5840  ;;  %5864 = vpow2.f32 %v3784_v52  ;;  %v3788_v16 = vmul.f32 1.442695, %v3732_v4  ;;  %v5295_v17 = vpack.c.bf16 %v3196_v6, %v3194_v53  ;;  %v3733_v18 = vsub.f32 0.0, %v3196_v6  ;;  %v2930_v19 = vpop.f32.mrf.mxu0 }
 0x2b6   : > { %v3203_v21 = vpop.f32.mrf.mxu1  ;;  %v7078_v22 = vpop.eup %5842  ;;  %5866 = vrcp.f32 %v3819_v11  ;;  %v3820_v23 = vadd.f32 1.0, %v5841_v15  ;;  %v3198_v26 = vadd.f32 %v3197_v57, %v2925_v7  ;;  %v3200_v27 = vadd.f32 %v3199_v9, %v2927_v13 }
 0x2b7   : > { %v5845_v28 = vpop.eup %5844  ;;  %5868 = vpow2.f32 %v3786_v12  ;;  %3480 = vst [vmem:[%s7016_s11 + $0x60] sm:$0xff] %v5295_v17  ;;  %v3790_v30 = vmul.f32 1.442695, %v3733_v18  ;;  %v4191_v31 = vpack.c.bf16 %v7071_v63, %v7061_v60  ;;  %v2931_v32 = vadd.f32 %v2930_v19, %v7006_v29  ;;  %v2932_v33 = vpop.f32.mrf.mxu0 }
 0x2b8   : > { %v3205_v34 = vpop.f32.mrf.mxu1  ;;  %v7084_v36 = vpop.eup %5846  ;;  %5870 = vrcp.f32 %v3820_v23  ;;  %v3821_v25 = vadd.f32 1.0, %v5845_v28  ;;  %v3734_v37 = vsub.f32 0.0, %v3198_v26  ;;  %v5296_v61 = vpack.c.bf16 %v3200_v27, %v3198_v26 }
 0x2b9   : > { %v5849_v35 = vpop.eup %5848  ;;  %5872 = vpow2.f32 %v3788_v16  ;;  %v3735_v38 = vsub.f32 0.0, %v3200_v27  ;;  %4438 = vmatprep.mubr.bf16.mxu0 %v4191_v31  ;;  %v3204_v39 = vadd.f32 %v3203_v21, %v2931_v32  ;;  %v2933_v40 = vadd.f32 %v2932_v33, %v7009_v41  ;;  %v2934_v42 = vpop.f32.mrf.mxu0 }
 0x2ba   : > { %v3207_v43 = vpop.f32.mrf.mxu1  ;;  %5874 = vrcp.f32 %v3821_v25  ;;  %v3822_v44 = vadd.f32 1.0, %v5849_v35  ;;  %v3792_v58 = vmul.f32 1.442695, %v3734_v37  ;;  %3481 = vst [vmem:[%s7016_s11 + $0x68] sm:$0xff] %v5296_v61  ;;  %4439 = vmatmul.mubr.bf16.gmra.mxu0 %v4190_v62  ;;  %v2935_v45 = vadd.f32 %v2934_v42, %v7006_v29 }
 0x2bb   : > { %v5851_v59 = vpop.eup %5850  ;;  %5876 = vpow2.f32 %v3790_v30  ;;  %v3794_v47 = vmul.f32 1.442695, %v3735_v38  ;;  %v3736_v48 = vsub.f32 0.0, %v3204_v39  ;;  %v3206_v53 = vadd.f32 %v3205_v34, %v2933_v40  ;;  %v2936_v55 = vpop.f32.mrf.mxu0 }
 0x2bc   : > { %v7089_v50 = vpop.eup %5852  ;;  %5878 = vrcp.f32 %v3822_v44  ;;  %v3823_v51 = vadd.f32 1.0, %v5851_v59  ;;  %v3208_v52 = vadd.f32 %v3207_v43, %v2935_v45  ;;  %v2937_v56 = vadd.f32 %v2936_v55, %v7009_v41  ;;  %v3209_v57 = vpop.f32.mrf.mxu1 }
 0x2bd   : > { %v5855_v0 = vpop.eup %5854  ;;  %5880 = vpow2.f32 %v3792_v58  ;;  %v3796_v62 = vmul.f32 1.442695, %v3736_v48  ;;  %v5297_v1 = vpack.c.bf16 %v3206_v53, %v3204_v39  ;;  %v3737_v2 = vsub.f32 0.0, %v3206_v53  ;;  %v2940_v3 = vpop.f32.mrf.mxu0 }
 0x2be   : > { %v7092_v4 = vpop.eup %5856  ;;  %5882 = vrcp.f32 %v3823_v51  ;;  %v3738_v6 = vsub.f32 0.0, %v3208_v52  ;;  %v3210_v7 = vadd.f32 %v3209_v57, %v2937_v56  ;;  %v3213_v8 = vpop.f32.mrf.mxu1  ;;  %v4193_v12 = vpack.c.bf16 %v7089_v50, %v7078_v22 }
 0x2bf   : > { %7871 = vst [vmem:[#allocation31_spill] sm:$0xff] %v7092_v4  ;;  %v5859_v9 = vpop.eup %5858  ;;  %5884 = vpow2.f32 %v3794_v47  ;;  %3482 = vst [vmem:[%s7016_s11 + $0x70] sm:$0xff] %v5297_v1  ;;  %v3798_v11 = vmul.f32 1.442695, %v3737_v2  ;;  %v2941_v13 = vadd.f32 %v2940_v3, %v7006_v29  ;;  %v2942_v15 = vpop.f32.mrf.mxu0  ;;  %v4192_v27 = vpack.c.bf16 %v7084_v36, %v7074_v10 }
 0x2c0   : > { %v7098_v16 = vpop.eup %5860  ;;  %v3825_v17 = vadd.f32 1.0, %v5859_v9  ;;  %v3800_v18 = vmul.f32 1.442695, %v3738_v6  ;;  %v5298_v19 = vpack.c.bf16 %v3210_v7, %v3208_v52  ;;  %v3215_v21 = vpop.f32.mrf.mxu1  ;;  %5886 = vpow2.f32 %v3796_v62  ;;  %4448 = vmatprep.mubr.bf16.mxu0 %v4193_v12 }
 0x2c1   : > { %7872 = vst [vmem:[#allocation32_spill] sm:$0xff] %v7098_v16  ;;  %v7100_v23 = vpop.eup %5862  ;;  %v3739_v26 = vsub.f32 0.0, %v3210_v7  ;;  %v2943_v28 = vadd.f32 %v2942_v15, %v7009_v41  ;;  %v2944_v30 = vpop.f32.mrf.mxu0  ;;  %v3824_v32 = vadd.f32 1.0, %v5855_v0  ;;  %v7106_v33 = vadd.f32 %v3213_v8, %v2941_v13 }
 0x2c2   : > { %7873 = vst [vmem:[#allocation33_spill] sm:$0xff] %v7100_v23  ;;  %v5865_v31 = vpop.eup %5864  ;;  %5888 = vrcp.f32 %v3825_v17  ;;  %3483 = vst [vmem:[%s7016_s11 + $0x78] sm:$0xff] %v5298_v19  ;;  %v2945_v34 = vadd.f32 %v2944_v30, %v7006_v29  ;;  %v3217_v25 = vpop.f32.mrf.mxu1  ;;  %4449 = vmatmul.mubr.bf16.gmra.mxu0 %v4192_v27  ;;  %v4194_v8 = vpack.c.bf16 %v7100_v23, %v7092_v4 }
 0x2c3   : > { %v7109_v37 = vpop.eup %5866  ;;  %v3826_v61 = vadd.f32 1.0, %v5865_v31  ;;  %5890 = vpow2.f32 %v3798_v11  ;;  %v3802_v35 = vmul.f32 1.442695, %v3739_v26  ;;  %v7111_v38 = vadd.f32 %v3215_v21, %v2943_v28  ;;  %v2946_v39 = vpop.f32.mrf.mxu0 }
 0x2c4   : > { %7874 = vst [vmem:[#allocation34_spill] sm:$0xff] %v7109_v37  ;;  %v5869_v40 = vpop.eup %5868  ;;  %5892 = vpow2.f32 %v3800_v18  ;;  %v2947_v42 = vadd.f32 %v2946_v39, %v7009_v41  ;;  %v7114_v43 = vadd.f32 %v3217_v25, %v2945_v34  ;;  %v4195_v44 = vpack.c.bf16 %v7109_v37, %v7098_v16  ;;  %v3219_v58 = vpop.f32.mrf.mxu1 }
 0x2c5   : > { %v7118_v45 = vpop.eup %5870  ;;  %5894 = vrcp.f32 %v3826_v61  ;;  %v3827_v59 = vadd.f32 1.0, %v5869_v40  ;;  %v5299_v47 = vpack.c.bf16 %v7111_v38, %v7106_v33  ;;  %v2950_v48 = vpop.f32.mrf.mxu0 }
 0x2c6   : > { %7875 = vst [vmem:[#allocation35_spill] sm:$0xff] %v7118_v45  ;;  %v5873_v53 = vpop.eup %5872  ;;  %5896 = vpow2.f32 %v3802_v35  ;;  %4458 = vmatprep.mubr.bf16.mxu0 %v4195_v44  ;;  %v2951_v55 = vadd.f32 %v2950_v48, %v7006_v29  ;;  %v7123_v51 = vadd.f32 %v3219_v58, %v2947_v42  ;;  %v3223_v52 = vpop.f32.mrf.mxu1 }
 0x2c7   : > { %v7125_v56 = vpop.eup %5874  ;;  %5898 = vrcp.f32 %v3827_v59  ;;  %3580 = vst [vmem:[%s7128_s24] sm:$0xff] %v5299_v47  ;;  %v2952_v57 = vpop.f32.mrf.mxu0  ;;  %v3828_v18 = vadd.f32 1.0, %v5873_v53 }
 0x2c8   : > { %7876 = vst [vmem:[#allocation36_spill] sm:$0xff] %v7125_v56  ;;  %v5877_v0 = vpop.eup %5876  ;;  %5900 = vrcp.f32 %v3824_v32  ;;  %v5300_v62 = vpack.c.bf16 %v7123_v51, %v7114_v43  ;;  %v2953_v1 = vadd.f32 %v2952_v57, %v7009_v41  ;;  %v7134_v2 = vadd.f32 %v3223_v52, %v2951_v55  ;;  %v3225_v3 = vpop.f32.mrf.mxu1 }
 0x2c9   : > { %v7136_v6 = vpop.eup %5878  ;;  %v3829_v7 = vadd.f32 1.0, %v5877_v0  ;;  %v2954_v9 = vpop.f32.mrf.mxu0 }
 0x2ca   : > { %7877 = vst [vmem:[#allocation37_spill] sm:$0xff] %v7136_v6  ;;  %v5881_v11 = vpop.eup %5880  ;;  %3581 = vst [vmem:[%s7128_s24 + $0x8] sm:$0xff] %v5300_v62  ;;  %v2955_v12 = vadd.f32 %v2954_v9, %v7006_v29  ;;  %v7142_v13 = vadd.f32 %v3225_v3, %v2953_v1  ;;  %v3227_v15 = vpop.f32.mrf.mxu1  ;;  %4459 = vmatmul.mubr.bf16.gmra.mxu0 %v4194_v8  ;;  %v4196_v61 = vpack.c.bf16 %v7136_v6, %v7118_v45 }
 0x2cb   : > { %v7144_v17 = vpop.eup %5882  ;;  %v3830_v19 = vadd.f32 1.0, %v5881_v11  ;;  %v2956_v21 = vpop.f32.mrf.mxu0  ;;  %5902 = vrcp.f32 %v3829_v7 }
 0x2cc   : > { %7878 = vst [vmem:[#allocation38_spill] sm:$0xff] %v7144_v17  ;;  %v5885_v26 = vpop.eup %5884  ;;  %v5301_v27 = vpack.c.bf16 %v7142_v13, %v7134_v2  ;;  %v2957_v28 = vadd.f32 %v2956_v21, %v7009_v41  ;;  %v7149_v30 = vadd.f32 %v3227_v15, %v2955_v12  ;;  %v4197_v31 = vpack.c.bf16 %v7144_v17, %v7125_v56  ;;  %v3229_v32 = vpop.f32.mrf.mxu1 }
 0x2cd   : > { %v3831_v34 = vadd.f32 1.0, %v5885_v26  ;;  %v2960_v25 = vpop.f32.mrf.mxu0  ;;  %v5887_v35 = vpop.eup %5886  ;;  %5904 = vrcp.f32 %v3830_v19 }
 0x2ce   : > { %3582 = vst [vmem:[%s7128_s24 + $0x10] sm:$0xff] %v5301_v27  ;;  %4468 = vmatprep.mubr.bf16.mxu1 %v4197_v31  ;;  %v2961_v39 = vadd.f32 %v2960_v25, %v7006_v29  ;;  %v7157_v40 = vadd.f32 %v3229_v32, %v2957_v28  ;;  %v3233_v42 = vpop.f32.mrf.mxu1  ;;  %v3832_v11 = vadd.f32 1.0, %v5887_v35 }
 0x2cf   : > { %v7159_v44 = vpop.eup %5888  ;;  %5906 = vrcp.f32 %v3831_v34  ;;  %4469 = vmatmul.mubr.bf16.vlgmr.msra.gmra.mxu1 %v4196_v61  ;;  %v2962_v58 = vpop.f32.mrf.mxu0 }
 0x2d0   : > { %7879 = vst [vmem:[#allocation39_spill] sm:$0xff] %v7159_v44  ;;  %v5891_v59 = vpop.eup %5890  ;;  %5908 = vrcp.f32 %v3828_v18  ;;  %v5302_v47 = vpack.c.bf16 %v7157_v40, %v7149_v30  ;;  %v2963_v48 = vadd.f32 %v2962_v58, %v7009_v41  ;;  %v7164_v53 = vadd.f32 %v3233_v42, %v2961_v39  ;;  %v3235_v55 = vpop.f32.mrf.mxu1 }
 0x2d1   : > { %v5893_v52 = vpop.eup %5892  ;;  %v3833_v57 = vadd.f32 1.0, %v5891_v59  ;;  %v2964_v0 = vpop.f32.mrf.mxu0 }
 0x2d2   : > { %v7166_v62 = vpop.eup %5894  ;;  %v3834_v1 = vadd.f32 1.0, %v5893_v52  ;;  %3583 = vst [vmem:[%s7128_s24 + $0x18] sm:$0xff] %v5302_v47  ;;  %v2965_v3 = vadd.f32 %v2964_v0, %v7006_v29  ;;  %v7170_v7 = vadd.f32 %v3235_v55, %v2963_v48  ;;  %v3237_v8 = vpop.f32.mrf.mxu1 }
 0x2d3   : > { %7880 = vst [vmem:[#allocation40_spill] sm:$0xff] %v7166_v62  ;;  %v5897_v9 = vpop.eup %5896  ;;  %v2966_v12 = vpop.f32.mrf.mxu0  ;;  %5910 = vrcp.f32 %v3833_v57 }
 0x2d4   : > { %v7172_v15 = vpop.eup %5898  ;;  %v3835_v18 = vadd.f32 1.0, %v5897_v9  ;;  %v5303_v19 = vpack.c.bf16 %v7170_v7, %v7164_v53  ;;  %v2967_v21 = vadd.f32 %v2966_v12, %v7009_v41  ;;  %v3239_v26 = vpop.f32.mrf.mxu1  ;;  %5912 = vrcp.f32 %v3834_v1 }
 0x2d5   : > { %7881 = vst [vmem:[#allocation41_spill] sm:$0xff] %v7172_v15  ;;  %v7177_v27 = vpop.eup %5900  ;;  %v7179_v28 = vadd.f32 %v3237_v8, %v2965_v3  ;;  %v4199_v31 = vpack.c.bf16 %v7172_v15, %v7159_v44  ;;  %v2970_v32 = vpop.f32.mrf.mxu0 }
 0x2d6   : > { %7882 = vst [vmem:[#allocation42_spill] sm:$0xff] %v7177_v27  ;;  %5914 = vrcp.f32 %v3835_v18  ;;  %3584 = vst [vmem:[%s7128_s24 + $0x20] sm:$0xff] %v5303_v19  ;;  %v2971_v34 = vadd.f32 %v2970_v32, %v7006_v29  ;;  %v7185_v25 = vadd.f32 %v3239_v26, %v2967_v21  ;;  %v4198_v61 = vpack.c.bf16 %v7166_v62, %v7177_v27  ;;  %v3243_v35 = vpop.f32.mrf.mxu1 }
 0x2d7   : > { %4478 = vmatprep.mubr.bf16.mxu1 %v4199_v31  ;;  %v2972_v39 = vpop.f32.mrf.mxu0  ;;  %5916 = vrcp.f32 %v3832_v11 }
 0x2d8   : > { %v5304_v42 = vpack.c.bf16 %v7185_v25, %v7179_v28  ;;  %4479 = vmatmul.mubr.bf16.gmra.mxu1 %v4198_v61  ;;  %v2973_v58 = vadd.f32 %v2972_v39, %v7009_v41  ;;  %v7192_v59 = vadd.f32 %v3243_v35, %v2971_v34  ;;  %v3245_v47 = vpop.f32.mrf.mxu1  ;;  %v7194_v55 = vpop.eup %5902 }
 0x2d9   : > { %v2974_v48 = vpop.f32.mrf.mxu0  ;;  %7883 = vst [vmem:[#allocation43_spill] sm:$0xff] %v7194_v55 }
 0x2da   : > { %3585 = vst [vmem:[%s7128_s24 + $0x28] sm:$0xff] %v5304_v42  ;;  %v2975_v52 = vadd.f32 %v2974_v48, %v7006_v29  ;;  %v7198_v57 = vadd.f32 %v3245_v47, %v2973_v58  ;;  %v3247_v0 = vpop.f32.mrf.mxu1  ;;  %v7200_v1 = vpop.eup %5904 }
 0x2db   : > { %7884 = vst [vmem:[#allocation44_spill] sm:$0xff] %v7200_v1  ;;  %v2976_v3 = vpop.f32.mrf.mxu0 }
 0x2dc   : > { %v7202_v8 = vpop.eup %5906  ;;  %v5305_v9 = vpack.c.bf16 %v7198_v57, %v7192_v59  ;;  %v2977_v11 = vadd.f32 %v2976_v3, %v7009_v41  ;;  %v7207_v12 = vadd.f32 %v3247_v0, %v2975_v52  ;;  %v3249_v18 = vpop.f32.mrf.mxu1 }
 0x2dd   : > { %7885 = vst [vmem:[#allocation45_spill] sm:$0xff] %v7202_v8  ;;  %v7209_v19 = vpop.eup %5908  ;;  %v4201_v21 = vpack.c.bf16 %v7202_v8, %v7194_v55  ;;  %v2980_v26 = vpop.f32.mrf.mxu0 }
 0x2de   : > { %7886 = vst [vmem:[#allocation46_spill] sm:$0xff] %v7209_v19  ;;  %3586 = vst [vmem:[%s7128_s24 + $0x30] sm:$0xff] %v5305_v9  ;;  %v2981_v31 = vadd.f32 %v2980_v26, %v7006_v29  ;;  %v7215_v32 = vadd.f32 %v3249_v18, %v2977_v11  ;;  %v4200_v34 = vpack.c.bf16 %v7200_v1, %v7209_v19  ;;  %v3253_v61 = vpop.f32.mrf.mxu1 }
 0x2df   : > { %4488 = vmatprep.mubr.bf16.mxu1 %v4201_v21  ;;  %v2982_v35 = vpop.f32.mrf.mxu0 }
 0x2e0   : > { %v5306_v39 = vpack.c.bf16 %v7215_v32, %v7207_v12  ;;  %4489 = vmatmul.mubr.bf16.gmra.mxu1 %v4200_v34  ;;  %v2983_v42 = vadd.f32 %v2982_v35, %v7009_v41  ;;  %v7222_v58 = vadd.f32 %v3253_v61, %v2981_v31  ;;  %v3255_v47 = vpop.f32.mrf.mxu1  ;;  %v7224_v48 = vpop.eup %5910 }
 0x2e1   : > { %7887 = vst [vmem:[#allocation47_spill] sm:$0xff] %v7224_v48  ;;  %v2984_v52 = vpop.f32.mrf.mxu0  ;;  %v7226_v0 = vpop.eup %5912 }
 0x2e2   : > { %7888 = vst [vmem:[#allocation48_spill] sm:$0xff] %v7226_v0  ;;  %3587 = vst [vmem:[%s7128_s24 + $0x38] sm:$0xff] %v5306_v39  ;;  %v2985_v3 = vadd.f32 %v2984_v52, %v7006_v29  ;;  %v7230_v9 = vadd.f32 %v3255_v47, %v2983_v42  ;;  %v3257_v11 = vpop.f32.mrf.mxu1 }
 0x2e3   : > { %v7232_v18 = vpop.eup %5914  ;;  %v2986_v21 = vpop.f32.mrf.mxu0 }
 0x2e4   : > { %7889 = vst [vmem:[#allocation49_spill] sm:$0xff] %v7232_v18  ;;  %v5307_v26 = vpack.c.bf16 %v7230_v9, %v7222_v58  ;;  %v2987_v31 = vadd.f32 %v2986_v21, %v7009_v41  ;;  %v7237_v34 = vadd.f32 %v3257_v11, %v2985_v3  ;;  %v4203_v61 = vpack.c.bf16 %v7232_v18, %v7224_v48  ;;  %v3259_v35 = vpop.f32.mrf.mxu1  ;;  %v7241_v39 = vpop.eup %5916 }
 0x2e5   : > { %7890 = vst [vmem:[#allocation50_spill] sm:$0xff] %v7241_v39  ;;  %v2990_v42 = vpop.f32.mrf.mxu0  ;;  %v4202_v49 = vpack.c.bf16 %v7226_v0, %v7241_v39 }
 0x2e6   : > { %3588 = vst [vmem:[%s7128_s24 + $0x40] sm:$0xff] %v5307_v26  ;;  %4498 = vmatprep.mubr.bf16.mxu1 %v4203_v61  ;;  %v2991_v47 = vadd.f32 %v2990_v42, %v7006_v29  ;;  %v7245_v52 = vadd.f32 %v3259_v35, %v2987_v31  ;;  %v3263_v21 = vpop.f32.mrf.mxu1 }
 0x2e7   : > { %v2992_v3 = vpop.f32.mrf.mxu0 }
 0x2e8   : > { %v5308_v11 = vpack.c.bf16 %v7245_v52, %v7237_v34  ;;  %4499 = vmatmul.mubr.bf16.gmra.mxu1 %v4202_v49  ;;  %v2993_v18 = vadd.f32 %v2992_v3, %v7009_v41  ;;  %v7252_v48 = vadd.f32 %v3263_v21, %v2991_v47  ;;  %v3265_v26 = vpop.f32.mrf.mxu1 }
 0x2e9   : > { %v2994_v61 = vpop.f32.mrf.mxu0 }
 0x2ea   : > { %3589 = vst [vmem:[%s7128_s24 + $0x48] sm:$0xff] %v5308_v11  ;;  %v2995_v31 = vadd.f32 %v2994_v61, %v7006_v29  ;;  %v7256_v35 = vadd.f32 %v3265_v26, %v2993_v18  ;;  %v3267_v42 = vpop.f32.mrf.mxu1 }
 0x2eb   : > { %v2996_v0 = vpop.f32.mrf.mxu0 }
 0x2ec   : > { %v5309_v39 = vpack.c.bf16 %v7256_v35, %v7252_v48  ;;  %v2997_v8 = vadd.f32 %v2996_v0, %v7009_v41  ;;  %v7261_v49 = vadd.f32 %v3267_v42, %v2995_v31  ;;  %v3269_v3 = vpop.f32.mrf.mxu1 }
 0x2ed   : > { %v3000_v47 = vpop.f32.mrf.mxu0 }
 0x2ee   : > { %3590 = vst [vmem:[%s7128_s24 + $0x50] sm:$0xff] %v5309_v39  ;;  %v3001_v21 = vadd.f32 %v3000_v47, %v7006_v29  ;;  %v7265_v11 = vadd.f32 %v3269_v3, %v2997_v8  ;;  %v3273_v61 = vpop.f32.mrf.mxu1 }
 0x2ef   : > { %v3002_v18 = vpop.f32.mrf.mxu0 }
 0x2f0   : > { %v5310_v26 = vpack.c.bf16 %v7265_v11, %v7261_v49  ;;  %v3003_v1 = vadd.f32 %v3002_v18, %v7009_v41  ;;  %v7270_v55 = vadd.f32 %v3273_v61, %v3001_v21  ;;  %v3275_v0 = vpop.f32.mrf.mxu1 }
 0x2f1   : > { %v3004_v31 = vpop.f32.mrf.mxu0 }
 0x2f2   : > { %3591 = vst [vmem:[%s7128_s24 + $0x58] sm:$0xff] %v5310_v26  ;;  %v3005_v42 = vadd.f32 %v3004_v31, %v7006_v29  ;;  %v7274_v39 = vadd.f32 %v3275_v0, %v3003_v1  ;;  %v3277_v47 = vpop.f32.mrf.mxu1 }
 0x2f3   : > { %v3006_v8 = vpop.f32.mrf.mxu0 }
 0x2f4   : > { %v5311_v3 = vpack.c.bf16 %v7274_v39, %v7270_v55  ;;  %v3007_v19 = vadd.f32 %v3006_v8, %v7009_v41  ;;  %v7279_v15 = vadd.f32 %v3277_v47, %v3005_v42  ;;  %v3279_v18 = vpop.f32.mrf.mxu1 }
 0x2f5   : > { %v3010_v21 = vpop.f32.mrf.mxu0 }
 0x2f6   : > { %3592 = vst [vmem:[%s7128_s24 + $0x60] sm:$0xff] %v5311_v3  ;;  %v3011_v61 = vadd.f32 %v3010_v21, %v7006_v29  ;;  %v7283_v26 = vadd.f32 %v3279_v18, %v3007_v19  ;;  %v3283_v31 = vpop.f32.mrf.mxu1 }
 0x2f7   : > { %v3012_v1 = vpop.f32.mrf.mxu0 }
 0x2f8   : > { %v5312_v0 = vpack.c.bf16 %v7283_v26, %v7279_v15  ;;  %v3013_v62 = vadd.f32 %v3012_v1, %v7009_v41  ;;  %v7288_v44 = vadd.f32 %v3283_v31, %v3011_v61  ;;  %v3285_v8 = vpop.f32.mrf.mxu1 }
 0x2f9   : > { %v3014_v42 = vpop.f32.mrf.mxu0 }
 0x2fa   : > { %3593 = vst [vmem:[%s7128_s24 + $0x68] sm:$0xff] %v5312_v0  ;;  %v3015_v47 = vadd.f32 %v3014_v42, %v7006_v29  ;;  %v7292_v3 = vadd.f32 %v3285_v8, %v3013_v62  ;;  %v3287_v21 = vpop.f32.mrf.mxu1 }
 0x2fb   : > { %v3016_v19 = vpop.f32.mrf.mxu0 }
 0x2fc   : > { %v5313_v18 = vpack.c.bf16 %v7292_v3, %v7288_v44  ;;  %v3017_v27 = vadd.f32 %v3016_v19, %v7009_v41  ;;  %v7297_v17 = vadd.f32 %v3287_v21, %v3015_v47  ;;  %v3289_v1 = vpop.f32.mrf.mxu1 }
 0x2fd   : > { %v3020_v61 = vpop.f32.mrf.mxu0 }
 0x2fe   : > { %3594 = vst [vmem:[%s7128_s24 + $0x70] sm:$0xff] %v5313_v18  ;;  %v3021_v31 = vadd.f32 %v3020_v61, %v7006_v29  ;;  %v7301_v0 = vadd.f32 %v3289_v1, %v3017_v27  ;;  %v3293_v42 = vpop.f32.mrf.mxu1 }
 0x2ff   : > { %v3022_v62 = vpop.f32.mrf.mxu0 }
 0x300   : > { %v5314_v8 = vpack.c.bf16 %v7301_v0, %v7297_v17  ;;  %v3023_v6 = vadd.f32 %v3022_v62, %v7009_v41  ;;  %v3294_v56 = vadd.f32 %v3293_v42, %v3021_v31  ;;  %v3295_v45 = vpop.f32.mrf.mxu1 }
 0x301   : > { %v3024_v19 = vpop.f32.mrf.mxu0 }
 0x302   : > { %3595 = vst [vmem:[%s7128_s24 + $0x78] sm:$0xff] %v5314_v8  ;;  %v3868_v47 = vadd.f32 %v3294_v56, %v7106_v33  ;;  %v3025_v21 = vadd.f32 %v3024_v19, %v7006_v29  ;;  %v3296_v18 = vadd.f32 %v3295_v45, %v3023_v6  ;;  %v3297_v61 = vpop.f32.mrf.mxu1 }
 0x303   : > { %v3026_v27 = vpop.f32.mrf.mxu0 }
 0x304   : > { %v3900_v1 = vsub.f32 0.0, %v3868_v47  ;;  %v5315_v37 = vpack.c.bf16 %v3296_v18, %v3294_v56  ;;  %v3869_v23 = vadd.f32 %v3296_v18, %v7111_v38  ;;  %v3027_v16 = vadd.f32 %v3026_v27, %v7009_v41  ;;  %v3299_v4 = vpop.f32.mrf.mxu1 }
 0x305   : > { %v3298_v62 = vadd.f32 %v3297_v61, %v3025_v21  ;;  %v3030_v31 = vpop.f32.mrf.mxu0 }
 0x306   : > { %v3932_v42 = vmul.f32 1.442695, %v3900_v1  ;;  %3692 = vst [vmem:[%s7312_s6] sm:$0xff] %v5315_v37  ;;  %v3901_v33 = vsub.f32 0.0, %v3869_v23  ;;  %v3031_v45 = vadd.f32 %v3030_v31, %v7006_v29  ;;  %v3300_v6 = vadd.f32 %v3299_v4, %v3027_v16  ;;  %v3303_v8 = vpop.f32.mrf.mxu1 }
 0x307   : > { %v3870_v56 = vadd.f32 %v3298_v62, %v7114_v43  ;;  %v3032_v19 = vpop.f32.mrf.mxu0 }
 0x308   : > { %5918 = vpow2.f32 %v3932_v42  ;;  %v3934_v38 = vmul.f32 1.442695, %v3901_v33  ;;  %v5316_v47 = vpack.c.bf16 %v3300_v6, %v3298_v62  ;;  %v3871_v21 = vadd.f32 %v3300_v6, %v7123_v51  ;;  %v3305_v18 = vpop.f32.mrf.mxu1 }
 0x309   : > { %v3902_v61 = vsub.f32 0.0, %v3870_v56  ;;  %v3033_v27 = vadd.f32 %v3032_v19, %v7009_v41  ;;  %v3304_v1 = vadd.f32 %v3303_v8, %v3031_v45  ;;  %v3034_v37 = vpop.f32.mrf.mxu0 }
 0x30a   : > { %5920 = vpow2.f32 %v3934_v38  ;;  %3693 = vst [vmem:[%s7312_s6 + $0x8] sm:$0xff] %v5316_v47  ;;  %v3903_v23 = vsub.f32 0.0, %v3871_v21  ;;  %v3035_v4 = vadd.f32 %v3034_v37, %v7006_v29  ;;  %v3307_v16 = vpop.f32.mrf.mxu1 }
 0x30b   : > { %v3936_v31 = vmul.f32 1.442695, %v3902_v61  ;;  %v3872_v43 = vadd.f32 %v3304_v1, %v7134_v2  ;;  %v3306_v42 = vadd.f32 %v3305_v18, %v3033_v27  ;;  %v3036_v33 = vpop.f32.mrf.mxu0 }
 0x30c   : > { %v3938_v62 = vmul.f32 1.442695, %v3903_v23  ;;  %v3037_v51 = vadd.f32 %v3036_v33, %v7009_v41  ;;  %v3308_v6 = vadd.f32 %v3307_v16, %v3035_v4  ;;  %v3309_v56 = vpop.f32.mrf.mxu1 }
 0x30d   : > { %5922 = vpow2.f32 %v3936_v31  ;;  %v3904_v45 = vsub.f32 0.0, %v3872_v43  ;;  %v5317_v8 = vpack.c.bf16 %v3306_v42, %v3304_v1  ;;  %v3873_v19 = vadd.f32 %v3306_v42, %v7142_v13  ;;  %v3040_v38 = vpop.f32.mrf.mxu0 }
 0x30e   : > { %5924 = vpow2.f32 %v3938_v62  ;;  %v3874_v47 = vadd.f32 %v3308_v6, %v7149_v30  ;;  %v3041_v21 = vadd.f32 %v3040_v38, %v7006_v29  ;;  %v3310_v2 = vadd.f32 %v3309_v56, %v3037_v51  ;;  %v3313_v18 = vpop.f32.mrf.mxu1 }
 0x30f   : > { %v3940_v61 = vmul.f32 1.442695, %v3904_v45  ;;  %3694 = vst [vmem:[%s7312_s6 + $0x10] sm:$0xff] %v5317_v8  ;;  %v3905_v27 = vsub.f32 0.0, %v3873_v19  ;;  %v3042_v37 = vpop.f32.mrf.mxu0 }
 0x310   : > { %v3906_v23 = vsub.f32 0.0, %v3874_v47  ;;  %v5318_v4 = vpack.c.bf16 %v3310_v2, %v3308_v6  ;;  %v3875_v16 = vadd.f32 %v3310_v2, %v7157_v40  ;;  %v3043_v1 = vadd.f32 %v3042_v37, %v7009_v41  ;;  %v3315_v13 = vpop.f32.mrf.mxu1 }
 0x311   : > { %5926 = vpow2.f32 %v3940_v61  ;;  %v3942_v31 = vmul.f32 1.442695, %v3905_v27  ;;  %v3314_v43 = vadd.f32 %v3313_v18, %v3041_v21  ;;  %v3044_v30 = vpop.f32.mrf.mxu0 }
 0x312   : > { %v3944_v42 = vmul.f32 1.442695, %v3906_v23  ;;  %3695 = vst [vmem:[%s7312_s6 + $0x18] sm:$0xff] %v5318_v4  ;;  %v3907_v33 = vsub.f32 0.0, %v3875_v16  ;;  %v3045_v62 = vadd.f32 %v3044_v30, %v7006_v29  ;;  %v3316_v51 = vadd.f32 %v3315_v13, %v3043_v1  ;;  %v3317_v56 = vpop.f32.mrf.mxu1 }
 0x313   : > { %5928 = vpow2.f32 %v3942_v31  ;;  %v3876_v6 = vadd.f32 %v3314_v43, %v7164_v53  ;;  %v3046_v45 = vpop.f32.mrf.mxu0 }
 0x314   : > { %5930 = vpow2.f32 %v3944_v42  ;;  %v3946_v40 = vmul.f32 1.442695, %v3907_v33  ;;  %v5319_v8 = vpack.c.bf16 %v3316_v51, %v3314_v43  ;;  %v3877_v19 = vadd.f32 %v3316_v51, %v7170_v7  ;;  %v3319_v38 = vpop.f32.mrf.mxu1 }
 0x315   : > { %v5919_v47 = vpop.eup %5918  ;;  %v3908_v21 = vsub.f32 0.0, %v3876_v6  ;;  %v3047_v2 = vadd.f32 %v3046_v45, %v7009_v41  ;;  %v3318_v18 = vadd.f32 %v3317_v56, %v3045_v62  ;;  %v3050_v61 = vpop.f32.mrf.mxu0 }
 0x316   : > { %v3996_v27 = vadd.f32 1.0, %v5919_v47  ;;  %5932 = vpow2.f32 %v3946_v40  ;;  %3696 = vst [vmem:[%s7312_s6 + $0x20] sm:$0xff] %v5319_v8  ;;  %v3909_v37 = vsub.f32 0.0, %v3877_v19  ;;  %v3051_v23 = vadd.f32 %v3050_v61, %v7006_v29  ;;  %v3323_v53 = vpop.f32.mrf.mxu1 }
 0x317   : > { %v5921_v4 = vpop.eup %5920  ;;  %v3948_v16 = vmul.f32 1.442695, %v3908_v21  ;;  %v3878_v1 = vadd.f32 %v3318_v18, %v7179_v28  ;;  %v3320_v13 = vadd.f32 %v3319_v38, %v3047_v2  ;;  %v3052_v7 = vpop.f32.mrf.mxu0 }
 0x318   : > { %5934 = vrcp.f32 %v3996_v27  ;;  %v3997_v31 = vadd.f32 1.0, %v5921_v4  ;;  %v3950_v43 = vmul.f32 1.442695, %v3909_v37  ;;  %v3053_v30 = vadd.f32 %v3052_v7, %v7009_v41  ;;  %v3325_v42 = vpop.f32.mrf.mxu1 }
 0x319   : > { %5936 = vpow2.f32 %v3948_v16  ;;  %v3910_v33 = vsub.f32 0.0, %v3878_v1  ;;  %v5320_v62 = vpack.c.bf16 %v3320_v13, %v3318_v18  ;;  %v3879_v51 = vadd.f32 %v3320_v13, %v7185_v25  ;;  %v3054_v56 = vpop.f32.mrf.mxu0 }
 0x31a   : > { %v5923_v6 = vpop.eup %5922  ;;  %5938 = vrcp.f32 %v3997_v31  ;;  %v3324_v45 = vadd.f32 %v3323_v53, %v3051_v23  ;;  %v3055_v28 = vadd.f32 %v3054_v56, %v7006_v29  ;;  %v3326_v40 = vadd.f32 %v3325_v42, %v3053_v30  ;;  %v3327_v8 = vpop.f32.mrf.mxu1 }
 0x31b   : > { %v5925_v19 = vpop.eup %5924  ;;  %v3998_v38 = vadd.f32 1.0, %v5923_v6  ;;  %5940 = vpow2.f32 %v3950_v43  ;;  %v3952_v47 = vmul.f32 1.442695, %v3910_v33  ;;  %3697 = vst [vmem:[%s7312_s6 + $0x28] sm:$0xff] %v5320_v62  ;;  %v3911_v21 = vsub.f32 0.0, %v3879_v51  ;;  %v3056_v2 = vpop.f32.mrf.mxu0 }
 0x31c   : > { %v3999_v61 = vadd.f32 1.0, %v5925_v19  ;;  %v3880_v18 = vadd.f32 %v3324_v45, %v7192_v59  ;;  %v5321_v25 = vpack.c.bf16 %v3326_v40, %v3324_v45  ;;  %v3881_v27 = vadd.f32 %v3326_v40, %v7198_v57  ;;  %v3329_v37 = vpop.f32.mrf.mxu1 }
 0x31d   : > { %5942 = vrcp.f32 %v3998_v38  ;;  %v3954_v23 = vmul.f32 1.442695, %v3911_v21  ;;  %v3057_v53 = vadd.f32 %v3056_v2, %v7009_v41  ;;  %v3328_v4 = vadd.f32 %v3327_v8, %v3055_v28  ;;  %v3060_v16 = vpop.f32.mrf.mxu0 }
 0x31e   : > { %v5927_v1 = vpop.eup %5926  ;;  %5944 = vrcp.f32 %v3999_v61  ;;  %v3912_v13 = vsub.f32 0.0, %v3880_v18  ;;  %3698 = vst [vmem:[%s7312_s6 + $0x30] sm:$0xff] %v5321_v25  ;;  %v3913_v7 = vsub.f32 0.0, %v3881_v27  ;;  %v3061_v31 = vadd.f32 %v3060_v16, %v7006_v29  ;;  %v3333_v43 = vpop.f32.mrf.mxu1 }
 0x31f   : > { %v4000_v30 = vadd.f32 1.0, %v5927_v1  ;;  %5946 = vpow2.f32 %v3952_v47  ;;  %v3882_v59 = vadd.f32 %v3328_v4, %v7207_v12  ;;  %v3330_v57 = vadd.f32 %v3329_v37, %v3057_v53  ;;  %v3062_v42 = vpop.f32.mrf.mxu0 }
 0x320   : > { %v5929_v33 = vpop.eup %5928  ;;  %5948 = vpow2.f32 %v3954_v23  ;;  %v3956_v62 = vmul.f32 1.442695, %v3912_v13  ;;  %v3958_v51 = vmul.f32 1.442695, %v3913_v7  ;;  %v3063_v56 = vadd.f32 %v3062_v42, %v7009_v41  ;;  %v3335_v6 = vpop.f32.mrf.mxu1 }
 0x321   : > { %v5931_v45 = vpop.eup %5930  ;;  %5950 = vrcp.f32 %v4000_v30  ;;  %v4001_v28 = vadd.f32 1.0, %v5929_v33  ;;  %v3914_v40 = vsub.f32 0.0, %v3882_v59  ;;  %v5322_v8 = vpack.c.bf16 %v3330_v57, %v3328_v4  ;;  %v3064_v19 = vpop.f32.mrf.mxu0 }
 0x322   : > { %v4002_v38 = vadd.f32 1.0, %v5931_v45  ;;  %5952 = vpow2.f32 %v3956_v62  ;;  %v3883_v12 = vadd.f32 %v3330_v57, %v7215_v32  ;;  %v3334_v47 = vadd.f32 %v3333_v43, %v3061_v31  ;;  %v3337_v21 = vpop.f32.mrf.mxu1 }
 0x323   : > { %v5933_v2 = vpop.eup %5932  ;;  %5954 = vrcp.f32 %v4001_v28  ;;  %v3960_v61 = vmul.f32 1.442695, %v3914_v40  ;;  %3699 = vst [vmem:[%s7312_s6 + $0x38] sm:$0xff] %v5322_v8  ;;  %v3065_v18 = vadd.f32 %v3064_v19, %v7006_v29  ;;  %v3336_v25 = vadd.f32 %v3335_v6, %v3063_v56  ;;  %v3066_v27 = vpop.f32.mrf.mxu0 }
 0x324   : > { %5956 = vrcp.f32 %v4002_v38  ;;  %v4003_v37 = vadd.f32 1.0, %v5933_v2  ;;  %v3915_v23 = vsub.f32 0.0, %v3883_v12  ;;  %v3884_v53 = vadd.f32 %v3334_v47, %v7222_v58  ;;  %v3339_v4 = vpop.f32.mrf.mxu1 }
 0x325   : > { %v7352_v16 = vpop.eup %5934  ;;  %5958 = vpow2.f32 %v3958_v51  ;;  %v5323_v32 = vpack.c.bf16 %v3336_v25, %v3334_v47  ;;  %v3885_v1 = vadd.f32 %v3336_v25, %v7230_v9  ;;  %v3067_v13 = vadd.f32 %v3066_v27, %v7009_v41  ;;  %v3070_v7 = vpop.f32.mrf.mxu0 }
 0x326   : > { %v5937_v31 = vpop.eup %5936  ;;  %5960 = vrcp.f32 %v4003_v37  ;;  %v3962_v43 = vmul.f32 1.442695, %v3915_v23  ;;  %v3916_v30 = vsub.f32 0.0, %v3884_v53  ;;  %v3338_v59 = vadd.f32 %v3337_v21, %v3065_v18  ;;  %v3343_v57 = vpop.f32.mrf.mxu1 }
 0x327   : > { %v7356_v42 = vpop.eup %5938  ;;  %v4004_v58 = vadd.f32 1.0, %v5937_v31  ;;  %5962 = vpow2.f32 %v3960_v61  ;;  %3700 = vst [vmem:[%s7312_s6 + $0x40] sm:$0xff] %v5323_v32  ;;  %v3917_v33 = vsub.f32 0.0, %v3885_v1  ;;  %v3071_v62 = vadd.f32 %v3070_v7, %v7006_v29  ;;  %v3072_v51 = vpop.f32.mrf.mxu0 }
 0x328   : > { %v5941_v56 = vpop.eup %5940  ;;  %5964 = vpow2.f32 %v3962_v43  ;;  %v3964_v9 = vmul.f32 1.442695, %v3916_v30  ;;  %v3886_v6 = vadd.f32 %v3338_v59, %v7237_v34  ;;  %v3340_v45 = vadd.f32 %v3339_v4, %v3067_v13  ;;  %v3345_v28 = vpop.f32.mrf.mxu1 }
 0x329   : > { %5966 = vrcp.f32 %v4004_v58  ;;  %v4005_v40 = vadd.f32 1.0, %v5941_v56  ;;  %v3966_v8 = vmul.f32 1.442695, %v3917_v33  ;;  %v3073_v19 = vadd.f32 %v3072_v51, %v7009_v41  ;;  %v3074_v38 = vpop.f32.mrf.mxu0 }
 0x32a   : > { %v7362_v12 = vpop.eup %5942  ;;  %5968 = vpow2.f32 %v3964_v9  ;;  %v3918_v47 = vsub.f32 0.0, %v3886_v6  ;;  %v5324_v21 = vpack.c.bf16 %v3340_v45, %v3338_v59  ;;  %v3887_v2 = vadd.f32 %v3340_v45, %v7245_v52  ;;  %v3347_v61 = vpop.f32.mrf.mxu1 }
 0x32b   : > { %v7365_v18 = vpop.eup %5944  ;;  %5970 = vrcp.f32 %v4005_v40  ;;  %v3344_v34 = vadd.f32 %v3343_v57, %v3071_v62  ;;  %v3075_v25 = vadd.f32 %v3074_v38, %v7006_v29  ;;  %v3346_v27 = vadd.f32 %v3345_v28, %v3073_v19  ;;  %v3076_v37 = vpop.f32.mrf.mxu0 }
 0x32c   : > { %v5947_v23 = vpop.eup %5946  ;;  %5972 = vpow2.f32 %v3966_v8  ;;  %v3968_v53 = vmul.f32 1.442695, %v3918_v47  ;;  %3701 = vst [vmem:[%s7312_s6 + $0x48] sm:$0xff] %v5324_v21  ;;  %v3919_v4 = vsub.f32 0.0, %v3887_v2  ;;  %v3077_v32 = vadd.f32 %v3076_v37, %v7009_v41  ;;  %v3349_v1 = vpop.f32.mrf.mxu1 }
 0x32d   : > { %v5949_v13 = vpop.eup %5948  ;;  %v4006_v52 = vadd.f32 1.0, %v5947_v23  ;;  %v3888_v7 = vadd.f32 %v3344_v34, %v7252_v48  ;;  %v5325_v31 = vpack.c.bf16 %v3346_v27, %v3344_v34  ;;  %v3889_v43 = vadd.f32 %v3346_v27, %v7256_v35  ;;  %v3080_v30 = vpop.f32.mrf.mxu0 }
 0x32e   : > { %v7372_v59 = vpop.eup %5950  ;;  %v4007_v57 = vadd.f32 1.0, %v5949_v13  ;;  %5974 = vpow2.f32 %v3968_v53  ;;  %v3970_v58 = vmul.f32 1.442695, %v3919_v4  ;;  %v3348_v33 = vadd.f32 %v3347_v61, %v3075_v25  ;;  %v3353_v62 = vpop.f32.mrf.mxu1 }
 0x32f   : > { %v5953_v51 = vpop.eup %5952  ;;  %5976 = vrcp.f32 %v4006_v52  ;;  %v3920_v56 = vsub.f32 0.0, %v3888_v7  ;;  %3702 = vst [vmem:[%s7312_s6 + $0x50] sm:$0xff] %v5325_v31  ;;  %v3921_v9 = vsub.f32 0.0, %v3889_v43  ;;  %v3081_v6 = vadd.f32 %v3080_v30, %v7006_v29  ;;  %v3082_v45 = vpop.f32.mrf.mxu0 }
 0x330   : > { %v7376_v48 = vpop.eup %5954  ;;  %5978 = vrcp.f32 %v4007_v57  ;;  %v4008_v35 = vadd.f32 1.0, %v5953_v51  ;;  %v3890_v28 = vadd.f32 %v3348_v33, %v7261_v49  ;;  %v3350_v40 = vadd.f32 %v3349_v1, %v3077_v32  ;;  %v3355_v8 = vpop.f32.mrf.mxu1 }
 0x331   : > { %v7379_v19 = vpop.eup %5956  ;;  %5980 = vpow2.f32 %v3970_v58  ;;  %v3972_v38 = vmul.f32 1.442695, %v3920_v56  ;;  %v3974_v47 = vmul.f32 1.442695, %v3921_v9  ;;  %v4060_v21 = vsub.f32 %v7040_v46, %v7352_v16  ;;  %v3084_v2 = vpop.f32.mrf.mxu0 }
 0x332   : > { %v5959_v61 = vpop.eup %5958  ;;  %5982 = vrcp.f32 %v4008_v35  ;;  %v3922_v34 = vsub.f32 0.0, %v3890_v28  ;;  %v5326_v25 = vpack.c.bf16 %v3350_v40, %v3348_v33  ;;  %v3891_v27 = vadd.f32 %v3350_v40, %v7265_v11  ;;  %v3357_v37 = vpop.f32.mrf.mxu1 }
 0x333   : > { %v7384_v49 = vpop.eup %5960  ;;  %v4009_v23 = vadd.f32 1.0, %v5959_v61  ;;  %5984 = vpow2.f32 %v3972_v38  ;;  %v4061_v53 = vsub.f32 %v7049_v14, %v7356_v42  ;;  %v4092_v4 = vmul.f32 %v4060_v21, %v4060_v21  ;;  %v3086_v32 = vpop.f32.mrf.mxu0 }
 0x334   : > { %v5963_v1 = vpop.eup %5962  ;;  %5986 = vpow2.f32 %v3974_v47  ;;  %v3976_v16 = vmul.f32 1.442695, %v3922_v34  ;;  %3703 = vst [vmem:[%s7312_s6 + $0x58] sm:$0xff] %v5326_v25  ;;  %v3923_v13 = vsub.f32 0.0, %v3891_v27  ;;  %v3083_v52 = vadd.f32 %v3082_v45, %v7009_v41  ;;  %v3359_v30 = vpop.f32.mrf.mxu1 }
 0x335   : > { %v5965_v7 = vpop.eup %5964  ;;  %5988 = vrcp.f32 %v4009_v23  ;;  %v4010_v11 = vadd.f32 1.0, %v5963_v1  ;;  %v4093_v31 = vmul.f32 %v4061_v53, %v4061_v53  ;;  %v3354_v43 = vadd.f32 %v3353_v62, %v3081_v6  ;;  %v3090_v51 = vpop.f32.mrf.mxu0 }
 0x336   : > { %v7390_v57 = vpop.eup %5966  ;;  %v4011_v58 = vadd.f32 1.0, %v5965_v7  ;;  %5990 = vpow2.f32 %v3976_v16  ;;  %v3978_v42 = vmul.f32 1.442695, %v3923_v13  ;;  %v3085_v33 = vadd.f32 %v3084_v2, %v7006_v29 }
 0x337   : > { %v5969_v56 = vpop.eup %5968  ;;  %5992 = vrcp.f32 %v4010_v11  ;;  %v4124_v9 = vadd.f32 %v4093_v31, %v4092_v4  ;;  %v3892_v35 = vadd.f32 %v3354_v43, %v7270_v55  ;;  %v3356_v45 = vadd.f32 %v3355_v8, %v3083_v52  ;;  %v3363_v55 = vpop.f32.mrf.mxu1 }
 0x338   : > { %v7394_v28 = vpop.eup %5970  ;;  %5994 = vrcp.f32 %v4011_v58  ;;  %v4012_v40 = vadd.f32 1.0, %v5969_v56  ;;  %v4062_v62 = vsub.f32 %v7046_v5, %v7362_v12  ;;  %v4063_v6 = vsub.f32 %v7051_v20, %v7365_v18  ;;  %v3092_v25 = vpop.f32.mrf.mxu0 }
 0x339   : > { %v5973_v38 = vpop.eup %5972  ;;  %5996 = vpow2.f32 %v3978_v42  ;;  %4125 = vadd.xlane.f32.xlu0 %v4124_v9  ;;  %v3924_v47 = vsub.f32 0.0, %v3892_v35  ;;  %v5327_v21 = vpack.c.bf16 %v3356_v45, %v3354_v43  ;;  %v3893_v2 = vadd.f32 %v3356_v45, %v7274_v39  ;;  %v3365_v31 = vpop.f32.mrf.mxu1 }
 0x33a   : > { %5998 = vrcp.f32 %v4012_v40  ;;  %v4013_v8 = vadd.f32 1.0, %v5973_v38  ;;  %v4094_v61 = vmul.f32 %v4062_v62, %v4062_v62  ;;  %v4095_v34 = vmul.f32 %v4063_v6, %v4063_v6  ;;  %v3094_v42 = vpop.f32.mrf.mxu0 }
 0x33b   : > { %v5975_v27 = vpop.eup %5974  ;;  %v3980_v23 = vmul.f32 1.442695, %v3924_v47  ;;  %3704 = vst [vmem:[%s7312_s6 + $0x60] sm:$0xff] %v5327_v21  ;;  %v3925_v12 = vsub.f32 0.0, %v3893_v2  ;;  %v3087_v53 = vadd.f32 %v3086_v32, %v7009_v41  ;;  %v3358_v18 = vadd.f32 %v3357_v37, %v3085_v33  ;;  %v3367_v38 = vpop.f32.mrf.mxu1 }
 0x33c   : > { %v7403_v4 = vpop.eup %5976  ;;  %6000 = vrcp.f32 %v4013_v8  ;;  %v4014_v1 = vadd.f32 1.0, %v5975_v27  ;;  %v4127_v16 = vadd.f32 %v4095_v34, %v4094_v61  ;;  %v3091_v39 = vadd.f32 %v3090_v51, %v7006_v29  ;;  %v3096_v27 = vpop.f32.mrf.mxu0 }
 0x33d   : > { %v7406_v13 = vpop.eup %5978  ;;  %6002 = vpow2.f32 %v3980_v23  ;;  %v3982_v52 = vmul.f32 1.442695, %v3925_v12  ;;  %v3894_v7 = vadd.f32 %v3358_v18, %v7279_v15  ;;  %v3360_v11 = vadd.f32 %v3359_v30, %v3087_v53 }
 0x33e   : > { %v5981_v43 = vpop.eup %5980  ;;  %6004 = vrcp.f32 %v4014_v1  ;;  %4128 = vadd.xlane.f32.xlu0 %v4127_v16  ;;  %v4064_v37 = vsub.f32 %v7053_v24, %v7372_v59  ;;  %v4065_v32 = vsub.f32 %v7061_v60, %v7376_v48  ;;  %v3093_v58 = vadd.f32 %v3092_v25, %v7009_v41 }
 0x33f   : > { %v7414_v33 = vpop.eup %5982  ;;  %v4015_v51 = vadd.f32 1.0, %v5981_v43  ;;  %6006 = vpow2.f32 %v3982_v52  ;;  %v3926_v15 = vsub.f32 0.0, %v3894_v7  ;;  %v5328_v30 = vpack.c.bf16 %v3360_v11, %v3358_v18 }
 0x340   : > { %v5985_v56 = vpop.eup %5984  ;;  %v3895_v9 = vadd.f32 %v3360_v11, %v7283_v26  ;;  %v4096_v35 = vmul.f32 %v4064_v37, %v4064_v37  ;;  %v4097_v45 = vmul.f32 %v4065_v32, %v4065_v32  ;;  %v3364_v40 = vadd.f32 %v3363_v55, %v3091_v39  ;;  %v3369_v39 = vpop.f32.mrf.mxu1 }
 0x341   : > { %v5987_v59 = vpop.eup %5986  ;;  %6008 = vrcp.f32 %v4015_v51  ;;  %v4016_v62 = vadd.f32 1.0, %v5985_v56  ;;  %v3984_v48 = vmul.f32 1.442695, %v3926_v15  ;;  %3705 = vst [vmem:[%s7312_s6 + $0x68] sm:$0xff] %v5328_v30  ;;  %v3095_v6 = vadd.f32 %v3094_v42, %v7006_v29 }
 0x342   : > { %v7419_v47 = vpop.eup %5988  ;;  %v4017_v21 = vadd.f32 1.0, %v5987_v59  ;;  %v3927_v2 = vsub.f32 0.0, %v3895_v9  ;;  %v4130_v8 = vadd.f32 %v4097_v45, %v4096_v35  ;;  %v3896_v61 = vadd.f32 %v3364_v40, %v7288_v44 }
 0x343   : > { %v5991_v34 = vpop.eup %5990  ;;  %6010 = vrcp.f32 %v4016_v62  ;;  %v3366_v26 = vadd.f32 %v3365_v31, %v3093_v58  ;;  %v4066_v55 = vsub.f32 %v7066_v54, %v7379_v19  ;;  %v4067_v25 = vsub.f32 %v7071_v63, %v7384_v49 }
 0x344   : > { %v5993_v23 = vpop.eup %5992  ;;  %6012 = vrcp.f32 %v4017_v21  ;;  %v4018_v29 = vadd.f32 1.0, %v5991_v34  ;;  %v3986_v12 = vmul.f32 1.442695, %v3927_v2  ;;  %4131 = vadd.xlane.f32.xlu1 %v4130_v8  ;;  %v3928_v53 = vsub.f32 0.0, %v3896_v61 }
 0x345   : > { %v5995_v18 = vpop.eup %5994  ;;  %6014 = vpow2.f32 %v3984_v48  ;;  %v5329_v44 = vpack.c.bf16 %v3366_v26, %v3364_v40  ;;  %v3897_v1 = vadd.f32 %v3366_v26, %v7292_v3  ;;  %v4098_v16 = vmul.f32 %v4066_v55, %v4066_v55  ;;  %v7892_v26 = vld [vmem:[#allocation32_spill] sm:$0xff] }
 0x346   : > { %v5997_v52 = vpop.eup %5996  ;;  %6016 = vrcp.f32 %v4018_v29  ;;  %v3988_v19 = vmul.f32 1.442695, %v3928_v53  ;;  %v4099_v7 = vmul.f32 %v4067_v25, %v4067_v25  ;;  %v3097_v49 = vadd.f32 %v3096_v27, %v7009_v41  ;;  %v7893_v27 = vld [vmem:[#allocation33_spill] sm:$0xff]  ;;  %v7895_v53 = vld [vmem:[#allocation35_spill] sm:$0xff] }
 0x347   : > { %v5999_v11 = vpop.eup %5998  ;;  %v4019_v31 = vadd.f32 1.0, %v5997_v52  ;;  %6018 = vpow2.f32 %v3986_v12  ;;  %3706 = vst [vmem:[%s7312_s6 + $0x70] sm:$0xff] %v5329_v44  ;;  %v3929_v43 = vsub.f32 0.0, %v3897_v1  ;;  %v3368_v37 = vadd.f32 %v3367_v38, %v3095_v6  ;;  %v7891_v38 = vld [vmem:[#allocation31_spill] sm:$0xff] }
 0x348   : > { %6020 = vpow2.f32 %v3988_v19  ;;  %v4133_v32 = vadd.f32 %v4099_v7, %v4098_v16  ;;  %v3370_v58 = vadd.f32 %v3369_v39, %v3097_v49  ;;  %v4068_v3 = vsub.f32 %v7074_v10, %v7390_v57  ;;  %v7896_v39 = vld [vmem:[#allocation36_spill] sm:$0xff] }
 0x349   : > { %v6001_v42 = vpop.eup %6000  ;;  %6022 = vrcp.f32 %v4019_v31  ;;  %v3990_v51 = vmul.f32 1.442695, %v3929_v43  ;;  %v3898_v15 = vadd.f32 %v3368_v37, %v7297_v17  ;;  %v4069_v41 = vsub.f32 %v7078_v22, %v7394_v28 }
 0x34a   : > { %v6003_v30 = vpop.eup %6002  ;;  %4134 = vadd.xlane.f32.xlu1 %v4133_v32  ;;  %v5330_v56 = vpack.c.bf16 %v3370_v58, %v3368_v37  ;;  %v3899_v9 = vadd.f32 %v3370_v58, %v7301_v0  ;;  %v4100_v35 = vmul.f32 %v4068_v3, %v4068_v3  ;;  %v4070_v45 = vsub.f32 %v7084_v36, %v7403_v4 }
 0x34b   : > { %v6005_v40 = vpop.eup %6004  ;;  %v4020_v57 = vadd.f32 1.0, %v6003_v30  ;;  %6024 = vpow2.f32 %v3990_v51  ;;  %v3930_v59 = vsub.f32 0.0, %v3898_v15  ;;  %v4101_v62 = vmul.f32 %v4069_v41, %v4069_v41  ;;  %v7899_v15 = vld [vmem:[#allocation42_spill] sm:$0xff]  ;;  %v7900_v30 = vld [vmem:[#allocation39_spill] sm:$0xff] }
 0x34c   : > { %v6007_v48 = vpop.eup %6006  ;;  %3707 = vst [vmem:[%s7312_s6 + $0x78] sm:$0xff] %v5330_v56  ;;  %v3931_v17 = vsub.f32 0.0, %v3899_v9  ;;  %v4071_v28 = vsub.f32 %v7089_v50, %v7406_v13  ;;  %v4102_v6 = vmul.f32 %v4070_v45, %v4070_v45  ;;  %v4072_v21 = vsub.f32 %v7891_v38, %v7414_v33  ;;  %v7894_v13 = vld [vmem:[#allocation34_spill] sm:$0xff] }
 0x34d   : > { %6026 = vrcp.f32 %v4020_v57  ;;  %v4021_v0 = vadd.f32 1.0, %v6007_v48  ;;  %v3992_v2 = vmul.f32 1.442695, %v3930_v59  ;;  %v4136_v8 = vadd.f32 %v4101_v62, %v4100_v35  ;;  %v7901_v48 = vld [vmem:[#allocation40_spill] sm:$0xff] }
 0x34e   : > { %v6009_v4 = vpop.eup %6008  ;;  %v3994_v61 = vmul.f32 1.442695, %v3931_v17  ;;  %v4103_v34 = vmul.f32 %v4071_v28, %v4071_v28  ;;  %v4073_v55 = vsub.f32 %v7892_v26, %v7419_v47  ;;  %v4104_v25 = vmul.f32 %v4072_v21, %v4072_v21 }
 0x34f   : > { %6028 = vrcp.f32 %v4021_v0  ;;  %4137 = vadd.xlane.f32.xlu0 %v4136_v8  ;;  %v4074_v29 = vsub.f32 %v7893_v27, %v5993_v23  ;;  %v4075_v12 = vsub.f32 %v7894_v13, %v5995_v18  ;;  %v4076_v44 = vsub.f32 %v7895_v53, %v5999_v11  ;;  %v7897_v23 = vld [vmem:[#allocation37_spill] sm:$0xff]  ;;  %v7898_v18 = vld [vmem:[#allocation38_spill] sm:$0xff] }
 0x350   : > { %v6011_v33 = vpop.eup %6010  ;;  %6030 = vpow2.f32 %v3992_v2  ;;  %v4139_v1 = vadd.f32 %v4103_v34, %v4102_v6  ;;  %v4105_v16 = vmul.f32 %v4073_v55, %v4073_v55  ;;  %v4077_v52 = vsub.f32 %v7896_v39, %v6001_v42  ;;  %v7902_v0 = vld [vmem:[#allocation41_spill] sm:$0xff] }
 0x351   : > { %v6013_v19 = vpop.eup %6012  ;;  %6032 = vpow2.f32 %v3994_v61  ;;  %v4106_v7 = vmul.f32 %v4074_v29, %v4074_v29  ;;  %v4107_v49 = vmul.f32 %v4075_v12, %v4075_v12  ;;  %v4108_v47 = vmul.f32 %v4076_v44, %v4076_v44  ;;  %v7903_v12 = vld [vmem:[#allocation46_spill] sm:$0xff] }
 0x352   : > { %v6015_v31 = vpop.eup %6014  ;;  %4140 = vadd.xlane.f32.xlu1 %v4139_v1  ;;  %v4142_v43 = vadd.f32 %v4105_v16, %v4104_v25  ;;  %v4109_v37 = vmul.f32 %v4077_v52, %v4077_v52  ;;  %v4078_v32 = vsub.f32 %v7897_v23, %v6005_v40  ;;  %v4079_v58 = vsub.f32 %v7898_v18, %v6009_v4  ;;  %v7904_v16 = vld [vmem:[#allocation43_spill] sm:$0xff] }
 0x353   : > { %v6017_v11 = vpop.eup %6016  ;;  %v4022_v3 = vadd.f32 1.0, %v6015_v31  ;;  %v4145_v51 = vadd.f32 %v4107_v49, %v4106_v7  ;;  %v4080_v41 = vsub.f32 %v7899_v15, %v6011_v33  ;;  %v4081_v42 = vsub.f32 %v7900_v30, %v6013_v19 }
 0x354   : > { %v6019_v56 = vpop.eup %6018  ;;  %4143 = vadd.xlane.f32.xlu0 %v4142_v43  ;;  %v4148_v9 = vadd.f32 %v4109_v37, %v4108_v47  ;;  %v4110_v35 = vmul.f32 %v4078_v32, %v4078_v32  ;;  %v4111_v45 = vmul.f32 %v4079_v58, %v4079_v58  ;;  %v4082_v40 = vsub.f32 %v7901_v48, %v6017_v11  ;;  %v7905_v32 = vld [vmem:[#allocation44_spill] sm:$0xff] }
 0x355   : > { %v6021_v57 = vpop.eup %6020  ;;  %6034 = vrcp.f32 %v4022_v3  ;;  %v4023_v59 = vadd.f32 1.0, %v6019_v56  ;;  %v4113_v62 = vmul.f32 %v4081_v42, %v4081_v42  ;;  %v4112_v21 = vmul.f32 %v4080_v41, %v4080_v41 }
 0x356   : > { %v6023_v17 = vpop.eup %6022  ;;  %v4024_v28 = vadd.f32 1.0, %v6021_v57  ;;  %4146 = vadd.xlane.f32.xlu1 %v4145_v51  ;;  %v4151_v6 = vadd.f32 %v4111_v45, %v4110_v35  ;;  %v4114_v34 = vmul.f32 %v4082_v40, %v4082_v40  ;;  %v7906_v51 = vld [vmem:[#allocation45_spill] sm:$0xff] }
 0x357   : > { %6036 = vrcp.f32 %v4023_v59  ;;  %v4083_v2 = vsub.f32 %v7902_v0, %v6023_v17  ;;  %v4154_v4 = vadd.f32 %v4113_v62, %v4112_v21  ;;  %v7908_v59 = vld [vmem:[#allocation47_spill] sm:$0xff] }
 0x358   : > { %v6025_v8 = vpop.eup %6024  ;;  %6038 = vrcp.f32 %v4024_v28  ;;  %4149 = vadd.xlane.f32.xlu0 %v4148_v9  ;;  %v7907_v9 = vld [vmem:[#allocation50_spill] sm:$0xff] }
 0x359   : > { %v4025_v61 = vadd.f32 1.0, %v6025_v8  ;;  %v4115_v55 = vmul.f32 %v4083_v2, %v4083_v2  ;;  %v7909_v2 = vld [vmem:[#allocation48_spill] sm:$0xff] }
 0x35a   : > { %v6027_v25 = vpop.eup %6026  ;;  %4152 = vadd.xlane.f32.xlu1 %v4151_v6 }
 0x35b   : > { %6040 = vrcp.f32 %v4025_v61  ;;  %v4157_v29 = vadd.f32 %v4115_v55, %v4114_v34  ;;  %v4084_v44 = vsub.f32 %v7903_v12, %v6027_v25  ;;  %v7910_v61 = vld [vmem:[#allocation49_spill] sm:$0xff] }
 0x35c   : > { %v6029_v33 = vpop.eup %6028  ;;  %4155 = vadd.xlane.f32.xlu0 %v4154_v4 }
 0x35d   : > { %v6031_v1 = vpop.eup %6030  ;;  %v4085_v52 = vsub.f32 %v7904_v16, %v6029_v33  ;;  %v4116_v47 = vmul.f32 %v4084_v44, %v4084_v44 }
 0x35e   : > { %v6033_v19 = vpop.eup %6032  ;;  %v4026_v7 = vadd.f32 1.0, %v6031_v1  ;;  %4158 = vadd.xlane.f32.xlu1 %v4157_v29 }
 0x35f   : > { %v4027_v49 = vadd.f32 1.0, %v6033_v19  ;;  %v4117_v31 = vmul.f32 %v4085_v52, %v4085_v52 }
 0x360   : > { %6042 = vrcp.f32 %v4026_v7 }
 0x361   : > { %6044 = vrcp.f32 %v4027_v49  ;;  %v4160_v43 = vadd.f32 %v4117_v31, %v4116_v47 }
 0x362   : > { %v6035_v37 = vpop.eup %6034 }
 0x363   : > { %4161 = vadd.xlane.f32.xlu0 %v4160_v43  ;;  %v4086_v58 = vsub.f32 %v7905_v32, %v6035_v37 }
 0x364   : > { %v6037_v11 = vpop.eup %6036 }
 0x365   : > { %v6039_v3 = vpop.eup %6038  ;;  %v4087_v41 = vsub.f32 %v7906_v51, %v6037_v11  ;;  %v4118_v42 = vmul.f32 %v4086_v58, %v4086_v58 }
 0x366   : > { %v4088_v35 = vsub.f32 %v7907_v9, %v6039_v3 }
 0x367   : > { %v4119_v56 = vmul.f32 %v4087_v41, %v4087_v41 }
 0x368   : > { %v6041_v45 = vpop.eup %6040  ;;  %v4120_v40 = vmul.f32 %v4088_v35, %v4088_v35 }
 0x369   : > { %v4163_v57 = vadd.f32 %v4119_v56, %v4118_v42  ;;  %v4089_v62 = vsub.f32 %v7908_v59, %v6041_v45 }
 0x36b   : > { %4164 = vadd.xlane.f32.xlu1 %v4163_v57  ;;  %v4121_v17 = vmul.f32 %v4089_v62, %v4089_v62 }
 0x36d   : > { %v6043_v28 = vpop.eup %6042  ;;  %v4166_v6 = vadd.f32 %v4121_v17, %v4120_v40 }
 0x36e   : > { %v6045_v21 = vpop.eup %6044  ;;  %v4090_v8 = vsub.f32 %v7909_v2, %v6043_v28  ;;  %v4430_v4 = vpop.f32.mrf.mxu0 }
 0x36f   : > { %4167 = vadd.xlane.f32.xlu0 %v4166_v6  ;;  %v4091_v34 = vsub.f32 %v7910_v61, %v6045_v21  ;;  %v4509_v44 = vmul.f32 %v7040_v46, %v4430_v4 }
 0x370   : > { %v4432_v55 = vpop.f32.mrf.mxu0  ;;  %v4122_v25 = vmul.f32 %v4090_v8, %v4090_v8 }
 0x371   : > { %v4123_v29 = vmul.f32 %v4091_v34, %v4091_v34  ;;  %v4510_v33 = vmul.f32 %v7049_v14, %v4432_v55 }
 0x372   : > { %v4434_v1 = vpop.f32.mrf.mxu0 }
 0x373   : > { %v4169_v52 = vadd.f32 %v4123_v29, %v4122_v25  ;;  %v4541_v19 = vadd.f32 %v4510_v33, %v4509_v44  ;;  %v4511_v49 = vmul.f32 %v7046_v5, %v4434_v1 }
 0x374   : > { %v4436_v7 = vpop.f32.mrf.mxu0 }
 0x375   : > { %4170 = vadd.xlane.f32.xlu1 %v4169_v52  ;;  %v4512_v47 = vmul.f32 %v7051_v20, %v4436_v7  ;;  %4542 = vadd.xlane.f32.xlu0 %v4541_v19 }
 0x377   : > { %v4544_v31 = vadd.f32 %v4512_v47, %v4511_v49 }
 0x379   : > { %4545 = vadd.xlane.f32.xlu1 %v4544_v31 }
 0x37a   : > { %v4440_v43 = vpop.f32.mrf.mxu0 }
 0x37b   : > { %v4513_v58 = vmul.f32 %v7053_v24, %v4440_v43 }
 0x37c   : > { %v4442_v37 = vpop.f32.mrf.mxu0 }
 0x37d   : > { %v4514_v46 = vmul.f32 %v7061_v60, %v4442_v37 }
 0x37e   : > { %v4444_v11 = vpop.f32.mrf.mxu0 }
 0x37f   : > { %v4547_v14 = vadd.f32 %v4514_v46, %v4513_v58  ;;  %v4515_v41 = vmul.f32 %v7066_v54, %v4444_v11 }
 0x380   : > { %v4446_v3 = vpop.f32.mrf.mxu0 }
 0x381   : > { %v4516_v42 = vmul.f32 %v7071_v63, %v4446_v3  ;;  %4548 = vadd.xlane.f32.xlu0 %v4547_v14 }
 0x382   : > { %v4450_v5 = vpop.f32.mrf.mxu0 }
 0x383   : > { %v4550_v56 = vadd.f32 %v4516_v42, %v4515_v41  ;;  %v4517_v35 = vmul.f32 %v7074_v10, %v4450_v5 }
 0x384   : > { %v4452_v20 = vpop.f32.mrf.mxu0 }
 0x385   : > { %4551 = vadd.xlane.f32.xlu1 %v4550_v56  ;;  %v4518_v45 = vmul.f32 %v7078_v22, %v4452_v20 }
 0x386   : > { %v4454_v57 = vpop.f32.mrf.mxu0 }
 0x387   : > { %v4553_v24 = vadd.f32 %v4518_v45, %v4517_v35  ;;  %v4519_v60 = vmul.f32 %v7084_v36, %v4454_v57 }
 0x388   : > { %v4456_v62 = vpop.f32.mrf.mxu0 }
 0x389   : > { %v4520_v40 = vmul.f32 %v7089_v50, %v4456_v62  ;;  %4554 = vadd.xlane.f32.xlu0 %v4553_v24 }
 0x38a   : > { %v4460_v54 = vpop.f32.mrf.mxu0 }
 0x38b   : > { %v4556_v17 = vadd.f32 %v4520_v40, %v4519_v60  ;;  %v4521_v28 = vmul.f32 %v7891_v38, %v4460_v54 }
 0x38c   : > { %v4462_v63 = vpop.f32.mrf.mxu0 }
 0x38d   : > { %v4522_v6 = vmul.f32 %v7892_v26, %v4462_v63  ;;  %4557 = vadd.xlane.f32.xlu1 %v4556_v17 }
 0x38e   : > { %v4464_v21 = vpop.f32.mrf.mxu0 }
 0x38f   : > { %v4470_v10 = vpop.f32.mrf.mxu1  ;;  %v4559_v8 = vadd.f32 %v4522_v6, %v4521_v28  ;;  %v4523_v34 = vmul.f32 %v7893_v27, %v4464_v21 }
 0x390   : > { %v4466_v22 = vpop.f32.mrf.mxu0  ;;  %v4525_v50 = vmul.f32 %v7895_v53, %v4470_v10 }
 0x391   : > { %v4472_v4 = vpop.f32.mrf.mxu1  ;;  %v4524_v36 = vmul.f32 %v7894_v13, %v4466_v22  ;;  %4560 = vadd.xlane.f32.xlu0 %v4559_v8 }
 0x392   : > { %v4526_v55 = vmul.f32 %v7896_v39, %v4472_v4 }
 0x393   : > { %v4474_v25 = vpop.f32.mrf.mxu1  ;;  %v4562_v29 = vadd.f32 %v4524_v36, %v4523_v34 }
 0x394   : > { %v4565_v38 = vadd.f32 %v4526_v55, %v4525_v50  ;;  %v4527_v26 = vmul.f32 %v7897_v23, %v4474_v25 }
 0x395   : > { %v4476_v44 = vpop.f32.mrf.mxu1  ;;  %4563 = vadd.xlane.f32.xlu1 %v4562_v29 }
 0x396   : > { %v4528_v33 = vmul.f32 %v7898_v18, %v4476_v44  ;;  %4566 = vadd.xlane.f32.xlu0 %v4565_v38 }
 0x398   : > { %v4480_v1 = vpop.f32.mrf.mxu1  ;;  %v4568_v52 = vadd.f32 %v4528_v33, %v4527_v26 }
 0x399   : > { %v4529_v13 = vmul.f32 %v7899_v15, %v4480_v1 }
 0x39a   : > { %v4482_v27 = vpop.f32.mrf.mxu1  ;;  %4569 = vadd.xlane.f32.xlu1 %v4568_v52 }
 0x39b   : > { %v4530_v53 = vmul.f32 %v7900_v30, %v4482_v27 }
 0x39c   : > { %v4484_v19 = vpop.f32.mrf.mxu1 }
 0x39d   : > { %v4571_v39 = vadd.f32 %v4530_v53, %v4529_v13  ;;  %v4531_v49 = vmul.f32 %v7901_v48, %v4484_v19 }
 0x39e   : > { %v4486_v7 = vpop.f32.mrf.mxu1 }
 0x39f   : > { %v4532_v47 = vmul.f32 %v7902_v0, %v4486_v7  ;;  %4572 = vadd.xlane.f32.xlu0 %v4571_v39 }
 0x3a0   : > { %v4490_v23 = vpop.f32.mrf.mxu1 }
 0x3a1   : > { %v4574_v31 = vadd.f32 %v4532_v47, %v4531_v49  ;;  %v4533_v43 = vmul.f32 %v7903_v12, %v4490_v23 }
 0x3a2   : > { %v4492_v18 = vpop.f32.mrf.mxu1 }
 0x3a3   : > { %v4534_v37 = vmul.f32 %v7904_v16, %v4492_v18  ;;  %4575 = vadd.xlane.f32.xlu1 %v4574_v31 }
 0x3a4   : > { %v4494_v58 = vpop.f32.mrf.mxu1 }
 0x3a5   : > { %v4577_v15 = vadd.f32 %v4534_v37, %v4533_v43  ;;  %v4535_v30 = vmul.f32 %v7905_v32, %v4494_v58 }
 0x3a6   : > { %v4496_v46 = vpop.f32.mrf.mxu1 }
 0x3a7   : > { %v4536_v11 = vmul.f32 %v7906_v51, %v4496_v46  ;;  %4578 = vadd.xlane.f32.xlu0 %v4577_v15 }
 0x3a8   : > { %v4500_v48 = vpop.f32.mrf.mxu1 }
 0x3a9   : > { %v4580_v0 = vadd.f32 %v4536_v11, %v4535_v30  ;;  %v4537_v3 = vmul.f32 %v7907_v9, %v4500_v48 }
 0x3aa   : > { %v4502_v14 = vpop.f32.mrf.mxu1 }
 0x3ab   : > { %v4538_v12 = vmul.f32 %v7908_v59, %v4502_v14  ;;  %4581 = vadd.xlane.f32.xlu1 %v4580_v0 }
 0x3ac   : > { %v4504_v16 = vpop.f32.mrf.mxu1 }
 0x3ad   : > { %v4583_v41 = vadd.f32 %v4538_v12, %v4537_v3  ;;  %v4539_v32 = vmul.f32 %v7909_v2, %v4504_v16 }
 0x3ae   : > { %v4506_v42 = vpop.f32.mrf.mxu1 }
 0x3af   : > { %v4540_v51 = vmul.f32 %v7910_v61, %v4506_v42  ;;  %4584 = vadd.xlane.f32.xlu0 %v4583_v41 }
 0x3b1   : > { %v4586_v5 = vadd.f32 %v4540_v51, %v4539_v32 }
 0x3b3   : > { %4587 = vadd.xlane.f32.xlu1 %v4586_v5 }
 0x3b4   : > { %6221 = shalt.err (!%p6218_p9)
}
 0x3b5   : > { %s6222_s25 = scalar_lea.hbm %s7501_s9, 2048  ;;  %s6226_s26 = scalar_lea.hbm %s7769_s10, 4096 }
 0x3b6   : > { %p6223_p11 = scmp.ne.s32.totalorder %s7501_s9, %s6222_s25  ;;  %p6227_p5 = scmp.lt.s32.totalorder %s7501_s9, %s7769_s10 }
 0x3b7   : > { %p6228_p12 = scmp.lt.s32.totalorder %s6226_s26, %s6222_s25 }
 0x3b8   : > { %p6224_p10 = pnand %p6223_p11, %p7912_p7 }
 0x3b9   : > { %p6229_p4 = por %p6228_p12, %p6227_p5 }
 0x3ba   : > { %p6225_p6 = pneg %p6224_p10 }
 0x3bc   : > { %p6230_p0 = pnand %p6229_p4, %p6225_p6 }
 0x3be   : > { %6233 = shalt.err (!%p6230_p0)
}
 0x3bf   : > { %s7835_s30 = smov 128   ;;  %s6384_s29 = smov 8  }
 0x3c0   : > { %5389 = dma.vmem_to_hbm [thread:$0]  (%p7912_p7), %s7504_s21, 2048, %s7501_s9, %s7514_s27, %s7835_s30, %s7835_s30, %s6384_s29  }
 0x3c1   : > { %s7913_s16 = sld [smem:[#allocation54_spill]]  ;;  %s4687_s17 = sshll.u32 %s7016_s11, 4  ;;  %s7548_s17 = int_to_ptr.vmem [resolvable:$true] %s4687_s17 }
 0x3c2   : > { %s4721_s24 = sshll.u32 %s7312_s6, 4  ;;  %s4658_s26 = scalar_lea.sflag [#allocation4], %s6683_s18  ;;  %s7550_s24 = int_to_ptr.vmem [resolvable:$true] %s4721_s24 }
 0x3c3   : > { %s6234_s19 = scalar_lea.vmem %s7548_s17, 2048  ;;  %s6385_s9 = smov [#allocation13]  }
 0x3c4   : > { %p6235_p13 = scmp.ne.s32.totalorder %s7548_s17, %s6234_s19  ;;  %s6238_s21 = sshll.u32 %s6385_s9, 4  ;;  %s6239_s21 = int_to_ptr.vmem [resolvable:$false] %s6238_s21 }
 0x3c5   : > { %s6240_s13 = scalar_lea.vmem %s6239_s21, 4096  ;;  %p6241_p3 = scmp.lt.s32.totalorder %s7548_s17, %s6239_s21 }
 0x3c6   : > { %p6236_p1 = pnand %p6235_p13, %p7912_p7  ;;  %p6242_p8 = scmp.lt.s32.totalorder %s6240_s13, %s6234_s19 }
 0x3c7   : > { %s7544_s25 = scalar_lea.hbm %s7913_s16, %s7495_s28 }
 0x3c8   : > { %p6237_p2 = pneg %p6236_p1  ;;  %p6243_p9 = por %p6242_p8, %p6241_p3 }
 0x3ca   : > { %p6244_p11 = pnand %p6243_p9, %p6237_p2 }
 0x3cc   : > { %6247 = shalt.err (!%p6244_p11)
}
 0x3cd   : > { %s6248_s11 = scalar_lea.hbm %s7544_s25, 2048  ;;  %s6252_s1 = scalar_lea.hbm %s7913_s16, 4096 }
 0x3ce   : > { %p6249_p10 = scmp.ne.s32.totalorder %s7544_s25, %s6248_s11  ;;  %p6253_p12 = scmp.lt.s32.totalorder %s7544_s25, %s7913_s16 }
 0x3cf   : > { %p6254_p4 = scmp.lt.s32.totalorder %s6252_s1, %s6248_s11 }
 0x3d0   : > { %p6250_p6 = pnand %p6249_p10, %p7912_p7 }
 0x3d1   : > { %p6255_p0 = por %p6254_p4, %p6253_p12 }
 0x3d2   : > { %p6251_p5 = pneg %p6250_p6 }
 0x3d4   : > { %p6256_p13 = pnand %p6255_p0, %p6251_p5 }
 0x3d6   : > { %6259 = shalt.err (!%p6256_p13)
}
 0x3d7   : > { %s7914_s19 = smov 128   ;;  %s6260_s21 = scalar_lea.vmem %s7550_s24, 2048 }
 0x3d8   : > { %5388 = dma.vmem_to_hbm [thread:$0]  (%p7912_p7), %s7548_s17, 2048, %s7544_s25, %s4658_s26, %s7914_s19, %s7914_s19, %s6384_s29  }
 0x3d9   : > { %p6261_p1 = scmp.ne.s32.totalorder %s7550_s24, %s6260_s21  ;;  %s6386_s30 = smov [#allocation16]  }
 0x3da   : > { %s6264_s13 = sshll.u32 %s6386_s30, 4  ;;  %s6265_s13 = int_to_ptr.vmem [resolvable:$false] %s6264_s13 }
 0x3db   : > { %p6262_p2 = pnand %p6261_p1, %p7912_p7  ;;  %s6266_s11 = scalar_lea.vmem %s6265_s13, 4096 }
 0x3dc   : > { %p6267_p8 = scmp.lt.s32.totalorder %s7550_s24, %s6265_s13  ;;  %p6268_p9 = scmp.lt.s32.totalorder %s6266_s11, %s6260_s21 }
 0x3dd   : > { %p6263_p3 = pneg %p6262_p2 }
 0x3de   : > { %p6269_p11 = por %p6268_p9, %p6267_p8 }
 0x3e0   : > { %p6270_p10 = pnand %p6269_p11, %p6263_p3 }
 0x3e2   : > { %6273 = shalt.err (!%p6270_p10)
}
 0x3e3   : > { %s6274_s6 = scalar_lea.hbm %s7510_s14, 2048  ;;  %s6278_s26 = scalar_lea.hbm %s7911_s3, 4096 }
 0x3e4   : > { %p6275_p6 = scmp.ne.s32.totalorder %s7510_s14, %s6274_s6  ;;  %p6279_p4 = scmp.lt.s32.totalorder %s7510_s14, %s7911_s3 }
 0x3e5   : > { %p6280_p0 = scmp.lt.s32.totalorder %s6278_s26, %s6274_s6 }
 0x3e6   : > { %p6276_p5 = pnand %p6275_p6, %p7912_p7 }
 0x3e7   : > { %p6281_p13 = por %p6280_p0, %p6279_p4 }
 0x3e8   : > { %p6277_p12 = pneg %p6276_p5 }
 0x3ea   : > { %p6282_p1 = pnand %p6281_p13, %p6277_p12 }
 0x3ec   : > { %6285 = shalt.err (!%p6282_p1)
}
 0x3ed   : > { %5390 = dma.vmem_to_hbm [thread:$0]  (%p7912_p7), %s7550_s24, 2048, %s7510_s14, %s7514_s27, %s7914_s19, %s7914_s19, %s6384_s29   ;;  %v4126_v9 = vpop.xlane.xlu0 %4125  ;;  %v4132_v59 = vpop.xlane.xlu1 %4131  ;;  %v7915_v54 = vlaneseq }
 0x3ee   : > { %v4172_v6 = vmul.f32 0.00390625, %v4126_v9  ;;  %s7622_s14 = scalar_lea.vmem [#allocation17], %s6686_s12  ;;  %v4174_v29 = vmul.f32 0.00390625, %v4132_v59  ;;  %s7916_s9 = sld [smem:[#allocation56_spill]] }
 0x3ef   : > { %v7607_v17 = vand.u32 127, %v7915_v54  ;;  %s4737_s12 = sshll.u32 %s7622_s14, 4  ;;  %s4673_s30 = scalar_lea.sflag [#allocation18], %s6683_s18  ;;  %s7710_s12 = int_to_ptr.vmem [resolvable:$true] %s4737_s12 }
 0x3f0   : > { %s6286_s13 = scalar_lea.vmem %s7710_s12, 2048  ;;  %s6387_s11 = smov [#allocation17]  }
 0x3f1   : > { %v4129_v2 = vpop.xlane.xlu0 %4128  ;;  %v4135_v61 = vpop.xlane.xlu1 %4134  ;;  %vm4608_vm0 = vcmp.eq.s32.totalorder %v7607_v17, 1  ;;  %vm4607_vm1 = vcmp.eq.s32.totalorder %v7607_v17, 0  ;;  %p6287_p2 = scmp.ne.s32.totalorder %s7710_s12, %s6286_s13  ;;  %s6290_s6 = sshll.u32 %s6387_s11, 4  ;;  %s6291_s6 = int_to_ptr.vmem [resolvable:$false] %s6290_s6 }
 0x3f2   : > { %v4609_v22 = vsel %vm4608_vm0, %v4172_v6, 0.0  ;;  %v4173_v4 = vmul.f32 0.00390625, %v4129_v2  ;;  %v4611_v26 = vsel %vm4608_vm0, %v4174_v29, 0.0  ;;  %v4175_v33 = vmul.f32 0.00390625, %v4135_v61  ;;  %p6293_p9 = scmp.lt.s32.totalorder %s7710_s12, %s6291_s6 }
 0x3f3   : > { %p6288_p3 = pnand %p6287_p2, %p7912_p7 }
 0x3f4   : > { %v4610_v55 = vsel %vm4608_vm0, %v4173_v4, 0.0  ;;  %v4612_v13 = vsel %vm4608_vm0, %v4175_v33, 0.0  ;;  %s7708_s21 = scalar_lea.hbm %s7916_s9, %s7495_s28  ;;  %s6292_s28 = scalar_lea.vmem %s6291_s6, 4096 }
 0x3f5   : > { %v4138_v56 = vpop.xlane.xlu0 %4137  ;;  %v4141_v20 = vpop.xlane.xlu1 %4140  ;;  %p6289_p8 = pneg %p6288_p3  ;;  %p6294_p11 = scmp.lt.s32.totalorder %s6292_s28, %s6286_s13 }
 0x3f6   : > { %v4176_v53 = vmul.f32 0.00390625, %v4138_v56  ;;  %v4177_v47 = vmul.f32 0.00390625, %v4141_v20 }
 0x3f7   : > { %p6295_p10 = por %p6294_p11, %p6293_p9 }
 0x3f8   : > { %v4613_v49 = vsel %vm4608_vm0, %v4176_v53, 0.0  ;;  %v4614_v43 = vsel %vm4608_vm0, %v4177_v47, 0.0 }
 0x3f9   : > { %v4144_v35 = vpop.xlane.xlu0 %4143  ;;  %v4147_v45 = vpop.xlane.xlu1 %4146  ;;  %p6296_p6 = pnand %p6295_p10, %p6289_p8 }
 0x3fa   : > { %v4178_v37 = vmul.f32 0.00390625, %v4144_v35  ;;  %v4179_v11 = vmul.f32 0.00390625, %v4147_v45 }
 0x3fc   : > { %v4615_v30 = vsel %vm4608_vm0, %v4178_v37, 0.0  ;;  %v4616_v41 = vsel %vm4608_vm0, %v4179_v11, 0.0 }
 0x3fd   : > { %v4150_v57 = vpop.xlane.xlu0 %4149  ;;  %v4153_v24 = vpop.xlane.xlu1 %4152 }
 0x3fe   : > { %v4180_v48 = vmul.f32 0.00390625, %v4150_v57  ;;  %v4181_v32 = vmul.f32 0.00390625, %v4153_v24 }
 0x400   : > { %v4617_v42 = vsel %vm4608_vm0, %v4180_v48, 0.0  ;;  %v4618_v2 = vsel %vm4608_vm0, %v4181_v32, 0.0 }
 0x401   : > { %v7600_v62 = vpop.xlane.xlu0 %4155  ;;  %v7602_v60 = vpop.xlane.xlu1 %4158 }
 0x402   : > { %v4182_v61 = vmul.f32 0.00390625, %v7600_v62  ;;  %v4183_v57 = vmul.f32 0.00390625, %v7602_v60 }
 0x404   : > { %v4619_v45 = vsel %vm4608_vm0, %v4182_v61, 0.0  ;;  %v4620_v62 = vsel %vm4608_vm0, %v4183_v57, 0.0 }
 0x405   : > { %v7604_v40 = vpop.xlane.xlu0 %4161  ;;  %v7609_v63 = vpop.xlane.xlu1 %4164 }
 0x409   : > { %v7611_v28 = vpop.xlane.xlu0 %4167  ;;  %v7614_v21 = vpop.xlane.xlu1 %4170 }
 0x40d   : > { %v4543_v10 = vpop.xlane.xlu0 %4542  ;;  %v4546_v36 = vpop.xlane.xlu1 %4545 }
 0x40e   : > { %v4589_v8 = vmul.f32 0.00390625, %v4543_v10  ;;  %v4590_v50 = vmul.f32 0.00390625, %v4546_v36  ;;  %v4184_v10 = vmul.f32 0.00390625, %v7604_v40 }
 0x410   : > { %v4625_v34 = vsel %vm4607_vm1, %v4589_v8, %v4609_v22  ;;  %v4626_v25 = vsel %vm4607_vm1, %v4590_v50, %v4610_v55  ;;  %v4621_v60 = vsel %vm4608_vm0, %v4184_v10, 0.0 }
 0x411   : > { %4641 = vst [vmem:[%s7622_s14] sm:$0xff] %v4625_v34  ;;  %4642 = vst [vmem:[%s7622_s14 + $0x8] sm:$0xff] %v4626_v25  ;;  %v4549_v38 = vpop.xlane.xlu0 %4548  ;;  %v4552_v52 = vpop.xlane.xlu1 %4551  ;;  %v4185_v34 = vmul.f32 0.00390625, %v7609_v63  ;;  %v4186_v25 = vmul.f32 0.00390625, %v7611_v28 }
 0x412   : > { %v4591_v44 = vmul.f32 0.00390625, %v4549_v38  ;;  %v4592_v27 = vmul.f32 0.00390625, %v4552_v52 }
 0x413   : > { %v4622_v55 = vsel %vm4608_vm0, %v4185_v34, 0.0 }
 0x414   : > { %v4627_v1 = vsel %vm4607_vm1, %v4591_v44, %v4611_v26  ;;  %v4628_v19 = vsel %vm4607_vm1, %v4592_v27, %v4612_v13  ;;  %v4623_v44 = vsel %vm4608_vm0, %v4186_v25, 0.0  ;;  %v4187_v26 = vmul.f32 0.00390625, %v7614_v21 }
 0x415   : > { %4643 = vst [vmem:[%s7622_s14 + $0x10] sm:$0xff] %v4627_v1  ;;  %4644 = vst [vmem:[%s7622_s14 + $0x18] sm:$0xff] %v4628_v19  ;;  %v4555_v39 = vpop.xlane.xlu0 %4554 }
 0x416   : > { %v4593_v7 = vmul.f32 0.00390625, %v4555_v39  ;;  %v4558_v31 = vpop.xlane.xlu1 %4557  ;;  %v4624_v52 = vsel %vm4608_vm0, %v4187_v26, 0.0 }
 0x417   : > { %v4594_v18 = vmul.f32 0.00390625, %v4558_v31 }
 0x418   : > { %v4629_v23 = vsel %vm4607_vm1, %v4593_v7, %v4613_v49 }
 0x419   : > { %4645 = vst [vmem:[%s7622_s14 + $0x20] sm:$0xff] %v4629_v23  ;;  %v4630_v58 = vsel %vm4607_vm1, %v4594_v18, %v4614_v43 }
 0x41a   : > { %4646 = vst [vmem:[%s7622_s14 + $0x28] sm:$0xff] %v4630_v58  ;;  %v4561_v15 = vpop.xlane.xlu0 %4560 }
 0x41b   : > { %v4595_v46 = vmul.f32 0.00390625, %v4561_v15 }
 0x41d   : > { %v4631_v0 = vsel %vm4607_vm1, %v4595_v46, %v4615_v30 }
 0x41e   : > { %4647 = vst [vmem:[%s7622_s14 + $0x30] sm:$0xff] %v4631_v0  ;;  %v4564_v14 = vpop.xlane.xlu1 %4563 }
 0x41f   : > { %v4567_v3 = vpop.xlane.xlu0 %4566  ;;  %v4596_v12 = vmul.f32 0.00390625, %v4564_v14 }
 0x420   : > { %v4597_v16 = vmul.f32 0.00390625, %v4567_v3 }
 0x421   : > { %v4632_v51 = vsel %vm4607_vm1, %v4596_v12, %v4616_v41 }
 0x422   : > { %v4633_v5 = vsel %vm4607_vm1, %v4597_v16, %v4617_v42  ;;  %4648 = vst [vmem:[%s7622_s14 + $0x38] sm:$0xff] %v4632_v51 }
 0x423   : > { %4649 = vst [vmem:[%s7622_s14 + $0x40] sm:$0xff] %v4633_v5  ;;  %v4570_v9 = vpop.xlane.xlu1 %4569 }
 0x424   : > { %v4598_v59 = vmul.f32 0.00390625, %v4570_v9 }
 0x426   : > { %v4634_v56 = vsel %vm4607_vm1, %v4598_v59, %v4618_v2 }
 0x427   : > { %4650 = vst [vmem:[%s7622_s14 + $0x48] sm:$0xff] %v4634_v56 }
 0x428   : > { %v4573_v20 = vpop.xlane.xlu0 %4572 }
 0x429   : > { %v4599_v35 = vmul.f32 0.00390625, %v4573_v20 }
 0x42b   : > { %v4635_v24 = vsel %vm4607_vm1, %v4599_v35, %v4619_v45 }
 0x42c   : > { %4651 = vst [vmem:[%s7622_s14 + $0x50] sm:$0xff] %v4635_v24  ;;  %v4576_v54 = vpop.xlane.xlu1 %4575 }
 0x42d   : > { %v4600_v6 = vmul.f32 0.00390625, %v4576_v54 }
 0x42f   : > { %v4636_v8 = vsel %vm4607_vm1, %v4600_v6, %v4620_v62 }
 0x430   : > { %4652 = vst [vmem:[%s7622_s14 + $0x58] sm:$0xff] %v4636_v8  ;;  %v4579_v22 = vpop.xlane.xlu0 %4578 }
 0x431   : > { %v4601_v4 = vmul.f32 0.00390625, %v4579_v22 }
 0x433   : > { %v4637_v36 = vsel %vm4607_vm1, %v4601_v4, %v4621_v60 }
 0x434   : > { %4653 = vst [vmem:[%s7622_s14 + $0x60] sm:$0xff] %v4637_v36  ;;  %v4582_v50 = vpop.xlane.xlu1 %4581 }
 0x435   : > { %v4602_v40 = vmul.f32 0.00390625, %v4582_v50 }
 0x437   : > { %v4638_v29 = vsel %vm4607_vm1, %v4602_v40, %v4622_v55 }
 0x438   : > { %4654 = vst [vmem:[%s7622_s14 + $0x68] sm:$0xff] %v4638_v29  ;;  %v4585_v38 = vpop.xlane.xlu0 %4584 }
 0x439   : > { %v4603_v63 = vmul.f32 0.00390625, %v4585_v38 }
 0x43b   : > { %v4639_v33 = vsel %vm4607_vm1, %v4603_v63, %v4623_v44 }
 0x43c   : > { %4655 = vst [vmem:[%s7622_s14 + $0x70] sm:$0xff] %v4639_v33  ;;  %v4588_v28 = vpop.xlane.xlu1 %4587 }
 0x43d   : > { %v4604_v1 = vmul.f32 0.00390625, %v4588_v28 }
 0x43f   : > { %v4640_v21 = vsel %vm4607_vm1, %v4604_v1, %v4624_v52 }
 0x440   : > { %4656 = vst [vmem:[%s7622_s14 + $0x78] sm:$0xff] %v4640_v21 }
 0x441   : > { %6299 = shalt.err (!%p6296_p6)
}
 0x442   : > { %s6300_s25 = scalar_lea.hbm %s7708_s21, 2048  ;;  %s6304_s26 = scalar_lea.hbm %s7916_s9, 4096 }
 0x443   : > { %p6301_p5 = scmp.ne.s32.totalorder %s7708_s21, %s6300_s25  ;;  %p6305_p0 = scmp.lt.s32.totalorder %s7708_s21, %s7916_s9 }
 0x444   : > { %p6306_p13 = scmp.lt.s32.totalorder %s6304_s26, %s6300_s25 }
 0x445   : > { %p6302_p12 = pnand %p6301_p5, %p7912_p7 }
 0x446   : > { %p6307_p1 = por %p6306_p13, %p6305_p0 }
 0x447   : > { %p6303_p4 = pneg %p6302_p12 }
 0x449   : > { %p6308_p2 = pnand %p6307_p1, %p6303_p4 }
 0x44b   : > { %6311 = shalt.err (!%p6308_p2)
}
 0x44c   : > { %5391 = dma.vmem_to_hbm [thread:$0]  (%p7912_p7), %s7710_s12, 2048, %s7708_s21, %s4673_s30, %s7914_s19, %s7914_s19, %s6384_s29  }
 0x44d PF: > { %s7917_s14 = sld [smem:[#allocation26_spill]] }
 0x44e   : > { %s7918_s27 = sld [smem:[#allocation30_spill]] }
 0x44f   : > { %s7919_s24 = sld [smem:[#allocation27_spill]] }
 0x453   : > { %s4752_s13 = sand.u32 1, %s7917_s14  }
 0x454   : > { %p7920_p3 = scmp.ne.s32.totalorder %s7918_s27, 0  ;;  %s4753_s11 = scalar_lea.sflag [#allocation4], %s4752_s13 }
 0x455   : > { %p7921_p8 = scmp.ge.s32.totalorder %s7919_s24, 2 }
 0x457   : > { %p5417_p9 = pnand %p7921_p8, %p7920_p3 }
 0x459   : > { %p5418_p11 = pneg %p5417_p9 }
 0x45b   : > { %6345 = dma.done.wait (%p5418_p11), %s4753_s11, 2048  }
 0x45c   : > { %6347 = vsyncadd (%p5418_p11), %s4753_s11, 4294965248  ;;  %s7922_s15 = sadd.s32 4294967294, %s7919_s24  }
 0x45d   : > { %s4761_s6 = sand.u32 1, %s7922_s15  }
 0x45e   : > { %s4762_s28 = scalar_lea.sflag [#allocation15], %s4761_s6 }
 0x45f   : > { %6349 = dma.done.wait (%p5418_p11), %s4762_s28, 4096  }
 0x460   : > { %6351 = vsyncadd (%p5418_p11), %s4762_s28, 4294963200  ;;  %s4780_s25 = scalar_lea.sflag [#allocation18], %s4752_s13 }
 0x461   : > { %6353 = dma.done.wait (%p5418_p11), %s4780_s25, 2048  }
 0x462   : > { %6355 = vsyncadd (%p5418_p11), %s4780_s25, 4294965248  ;;  %s7923_s24 = sld [smem:[#allocation28_spill]]  ;;  %s7925_s21 = smov %s6362_s22 }
 0x463   : > { %s7924_s29 = sld [smem:[#allocation29_spill]]  ;;  %s7926_s22 = smov %s6366_s23 }
 0x468   : > { %p37_p7 = scmp.ge.s32.totalorder %s7923_s24, 4  }
 0x469   : > { %s7927_s23 = smov %s7924_s29 }
 0x46a   :  { %39 = sbr.rel (!%p37_p7) target bundleno = 20 (0x14), region = 186 }
 0x46f   :  { %4785 = vsyncpa [#allocation3], 1 }
 0x470   :  { %4787 = vsyncpa [#allocation3 + $0x1], 1 }
 0x471   :  { %4788 = vsyncpa [#allocation6], 1 }
 0x472   :  { %4790 = vsyncpa [#allocation6 + $0x1], 1 }
 0x473   :  { %4791 = vsyncpa [#allocation9], 1 }
 0x474   :  { %4792 = vsyncpa [#allocation12], 1 }
 0x475   :  { %4793 = vsyncpa [#allocation4], 1 }
 0x476   :  { %4795 = vsyncpa [#allocation4 + $0x1], 1 }
 0x477   :  { %4796 = vsyncpa [#allocation15], 1 }
 0x478   :  { %4798 = vsyncpa [#allocation15 + $0x1], 1 }
 0x479   :  { %4799 = vsyncpa [#allocation18], 1 }
 0x47a   :  { %4801 = vsyncpa [#allocation18 + $0x1], 1 }

</bundles_post_ra>
